<compile_context>
chip_gen: v7x
topology: tpu7x:2x2x1
jax: 0.10.0
libtpu: 0.0.40
codegen_flags: <defaults>
</compile_context>

<pallas_src>
import jax
import jax.numpy as jnp
from jax import lax
from jax.experimental import pallas as pl
from jax.experimental.pallas import tpu as pltpu
import numpy as np


def _make_kernel(S, B, H):
    """Fused bidirectional-LSTM tagger kernel for static S, B, H."""
    H2, H4, H6 = 2 * H, 4 * H, 6 * H

    def kernel(xp_ref, w_in_ref, whh_ref, b_ref,
               woutf_ref, woutr_ref, bout_ref,
               out_ref,
               gx_scr, hsf_scr, hsr_scr):
        # ---- hoisted input projection: all timesteps, both directions ------
        # (S*B, 2E) @ (2E, 8H) + bias (broadcast once).  No dependence on h,
        # so it runs as one big MXU matmul outside the recurrence.
        gx_scr[...] = (
            jnp.dot(xp_ref[...], w_in_ref[...],
                    preferred_element_type=jnp.float32) + b_ref[...])

        whh = whh_ref[...]                      # (2H, 8H) block-diag fwd/rev

        # ---- fused fwd + rev recurrence (statically unrolled, S is small) --
        # TODO(synk): for production-scale S/B, tile S as an "arbitrary" grid
        # axis with h/c carried in scratch and add a "parallel" batch axis so
        # v7x's two TensorCores split the batch; the demo shapes don't need it.
        h = jnp.zeros((B, H2), jnp.float32)     # [h_fwd | h_rev]
        c = jnp.zeros((B, H2), jnp.float32)     # [c_fwd | c_rev]
        for t in range(S):
            gates = gx_scr[t * B:(t + 1) * B, :] + jnp.dot(
                h, whh, preferred_element_type=jnp.float32)      # (B, 8H)
            sig = jax.nn.sigmoid(gates[:, :H6])  # i|f|o, both dirs, one slice
            g = jnp.tanh(gates[:, H6:])          # g, both dirs, one slice
            i = sig[:, 0:H2]
            f = sig[:, H2:H4]
            o = sig[:, H4:H6]
            c = f * c + i * g
            h = o * jnp.tanh(c)
            hsf_scr[t * B:(t + 1) * B, :] = h[:, :H]             # fwd @ t
            hsr_scr[(S - 1 - t) * B:(S - t) * B, :] = h[:, H:]   # rev @ S-1-t

        # ---- output projection: one matmul pair + single dense store -------
        out_ref[...] = (
            jnp.dot(hsf_scr[...], woutf_ref[...],
                    preferred_element_type=jnp.float32)
            + jnp.dot(hsr_scr[...], woutr_ref[...],
                      preferred_element_type=jnp.float32)
            + bout_ref[...])

    return kernel


def pack_params(params):
    """Pack per-direction LSTM weights into the fused-kernel layout.

    Gate slot order along the 8H lane axis (H columns per slot):
        [i_f, i_r, f_f, f_r, o_f, o_r, g_f, g_r]
    so sigmoid covers lanes [0, 6H), tanh covers [6H, 8H), and c/h are the
    direction-concatenated (B, 2H) = [fwd | rev].
    """
    H = params["whh_f"].shape[0]
    E = params["wih_f"].shape[0]

    def gates(w):  # PyTorch column order (i, f, g, o)
        return (w[..., 0:H], w[..., H:2 * H],
                w[..., 2 * H:3 * H], w[..., 3 * H:4 * H])

    i_f, f_f, g_f, o_f = gates(params["wih_f"])
    i_r, f_r, g_r, o_r = gates(params["wih_r"])
    zE = jnp.zeros((E, H), jnp.float32)
    w_in = jnp.concatenate([
        jnp.concatenate([i_f, zE, f_f, zE, o_f, zE, g_f, zE], axis=1),  # x[t]
        jnp.concatenate([zE, i_r, zE, f_r, zE, o_r, zE, g_r], axis=1),  # x[S-1-t]
    ], axis=0)                                                          # (2E, 8H)

    hi_f, hf_f, hg_f, ho_f = gates(params["whh_f"])
    hi_r, hf_r, hg_r, ho_r = gates(params["whh_r"])
    zH = jnp.zeros((H, H), jnp.float32)
    whh = jnp.concatenate([
        jnp.concatenate([hi_f, zH, hf_f, zH, ho_f, zH, hg_f, zH], axis=1),
        jnp.concatenate([zH, hi_r, zH, hf_r, zH, ho_r, zH, hg_r], axis=1),
    ], axis=0)                                                          # (2H, 8H)

    bi_f, bf_f, bg_f, bo_f = gates(params["b_f"])
    bi_r, bf_r, bg_r, bo_r = gates(params["b_r"])
    b = jnp.concatenate([bi_f, bi_r, bf_f, bf_r, bo_f, bo_r, bg_f, bg_r],
                        axis=1)                                         # (1, 8H)

    return {"w_in": w_in, "whh": whh, "b": b,
            "wout_f": params["wout_f"], "wout_r": params["wout_r"],
            "bout": params["bout"]}


def tagger_forward(inputs, params):
    """inputs: int32 (S, B) token ids. Returns float32 (S, B, output_count)."""
    S, B = inputs.shape
    E = params["emb"].shape[1]
    H = params["whh_f"].shape[0]
    O = params["bout"].shape[-1]

    packed = pack_params(params)

    # Embedding gather (glue) -- no one-hot, O(S*B*E) instead of O(S*B*V).
    x_emb = params["emb"][inputs]                               # (S, B, E)
    # Pair each timestep with its time-mirror so one hoisted matmul produces
    # the gate pre-activations for fwd time t AND rev time S-1-t per row block.
    x_pair = jnp.concatenate([x_emb, x_emb[::-1]], axis=-1)     # (S, B, 2E)
    x_pair = x_pair.reshape(S * B, 2 * E)

    args = (x_pair, packed["w_in"], packed["whh"], packed["b"],
            packed["wout_f"], packed["wout_r"], packed["bout"])

    def full_spec(a):
        return pl.BlockSpec(a.shape, lambda i, _nd=a.ndim: (0,) * _nd)

    flops = (2 * (S * B) * (2 * E) * (8 * H)        # hoisted input projection
             + 2 * S * B * (2 * H) * (8 * H)        # recurrence
             + 2 * 2 * (S * B) * H * O)             # output projection
    transcendentals = S * B * 10 * H                # sigmoid(6H)+tanh(2H)+tanh(2H)
    bytes_accessed = (sum(int(np.prod(a.shape)) * 4 for a in args)
                      + S * B * O * 4)

    out_flat = pl.pallas_call(
        _make_kernel(S, B, H),
        out_shape=jax.ShapeDtypeStruct((S * B, O), jnp.float32),
        grid=(1,),
        in_specs=[full_spec(a) for a in args],
        out_specs=pl.BlockSpec((S * B, O), lambda i: (0, 0)),
        scratch_shapes=[pltpu.VMEM((S * B, 8 * H), jnp.float32),  # gate pre-acts
                        pltpu.VMEM((S * B, H), jnp.float32),      # fwd hiddens
                        pltpu.VMEM((S * B, H), jnp.float32)],     # rev hiddens
        compiler_params=pltpu.CompilerParams(
            dimension_semantics=("arbitrary",)),
        cost_estimate=pl.CostEstimate(flops=flops,
                                      transcendentals=transcendentals,
                                      bytes_accessed=bytes_accessed),
    )(*args)
    return out_flat.reshape(S, B, O)


def make_params(key, vocab_size, output_count, emb_dim, hidden):
    ks = jax.random.split(key, 12)
    s = 1.0 / np.sqrt(hidden)

    def u(k, shape):
        return jax.random.uniform(k, shape, jnp.float32, minval=-s, maxval=s)

    # PyTorch LSTM gate order: i, f, g, o ; biases b_ih + b_hh pre-summed.
    params = {
        "emb": jax.random.normal(ks[0], (vocab_size, emb_dim),
                                 jnp.float32) * 0.1,
        "wih_f": u(ks[1], (emb_dim, 4 * hidden)),   # W_ih^T (forward dir)
        "whh_f": u(ks[2], (hidden, 4 * hidden)),    # W_hh^T (forward dir)
        "b_f": u(ks[3], (1, 4 * hidden)),
        "wih_r": u(ks[4], (emb_dim, 4 * hidden)),   # reverse dir
        "whh_r": u(ks[5], (hidden, 4 * hidden)),
        "b_r": u(ks[6], (1, 4 * hidden)),
        # Linear((1+bidir)*hidden -> output_count), W^T split into fwd/rev half
        "wout_f": u(ks[7], (hidden, output_count)),
        "wout_r": u(ks[8], (hidden, output_count)),
        "bout": u(ks[9], (1, output_count)),
    }
    return params


def ref_forward(inputs, params):
    """Pure-JAX reference of the PyTorch forward (for validation)."""
    emb = params["emb"][inputs]  # (S, B, E)

    def run_dir(xs, wih, whh, b):
        H = whh.shape[0]
        Bsz = xs.shape[1]

        def step(carry, x):
            h, c = carry
            gates = x @ wih + h @ whh + b[0]
            i = jax.nn.sigmoid(gates[:, :H])
            f = jax.nn.sigmoid(gates[:, H:2 * H])
            g = jnp.tanh(gates[:, 2 * H:3 * H])
            o = jax.nn.sigmoid(gates[:, 3 * H:])
            c = f * c + i * g
            h = o * jnp.tanh(c)
            return (h, c), h

        init = (jnp.zeros((Bsz, H), jnp.float32),
                jnp.zeros((Bsz, H), jnp.float32))
        _, hs = lax.scan(step, init, xs)
        return hs

    hf = run_dir(emb, params["wih_f"], params["whh_f"], params["b_f"])
    hr = run_dir(emb[::-1], params["wih_r"], params["whh_r"],
                 params["b_r"])[::-1]
    return hf @ params["wout_f"] + hr @ params["wout_r"] + params["bout"][0]


if __name__ == "__main__":
    # Module defaults: emb_dim=64, lstm_hidden_dim=128 (lane-aligned: 2E=128,
    # 8H=1024).  Small seq/batch/vocab for the demo.
    SEQ, BATCH = 8, 2
    VOCAB, OUT, EMB, HID = 64, 8, 64, 128

    key = jax.random.PRNGKey(0)
    k_param, k_inp = jax.random.split(key)
    params = make_params(k_param, VOCAB, OUT, EMB, HID)
    inputs = jax.random.randint(k_inp, (SEQ, BATCH), 0, VOCAB, dtype=jnp.int32)

    out = jax.block_until_ready(tagger_forward(inputs, params))
    ref = jax.block_until_ready(ref_forward(inputs, params))
    np.testing.assert_allclose(np.asarray(out), np.asarray(ref),
                               rtol=1e-3, atol=1e-4)

    print("KERNEL_OK")
</pallas_src>

<mosaic_0001>
module attributes {stable_mosaic.version = 11 : i64} {
  func.func @kernel(%arg0: i32, %arg1: memref<16x128xf32, #tpu.memory_space<vmem>>, %arg2: memref<128x1024xf32, #tpu.memory_space<vmem>>, %arg3: memref<256x1024xf32, #tpu.memory_space<vmem>>, %arg4: memref<1x1024xf32, #tpu.memory_space<vmem>>, %arg5: memref<128x8xf32, #tpu.memory_space<vmem>>, %arg6: memref<128x8xf32, #tpu.memory_space<vmem>>, %arg7: memref<1x8xf32, #tpu.memory_space<vmem>>, %arg8: memref<16x8xf32, #tpu.memory_space<vmem>>, %arg9: memref<16x1024xf32, #tpu.memory_space<vmem>>, %arg10: memref<16x128xf32, #tpu.memory_space<vmem>>, %arg11: memref<16x128xf32, #tpu.memory_space<vmem>>) attributes {dimension_semantics = [#tpu.dimension_semantics<arbitrary>], iteration_bounds = array<i64: 1>, scalar_prefetch = 0 : i64, scratch_operands = 3 : i64, tpu.core_type = #tpu.core_type<tc>, window_params = [{pipeline_mode = #tpu.pipeline_mode<synchronous>, transform_indices = @transform_0, window_bounds = array<i64: 16, 128>}, {pipeline_mode = #tpu.pipeline_mode<synchronous>, transform_indices = @transform_1, window_bounds = array<i64: 128, 1024>}, {pipeline_mode = #tpu.pipeline_mode<synchronous>, transform_indices = @transform_2, window_bounds = array<i64: 256, 1024>}, {pipeline_mode = #tpu.pipeline_mode<synchronous>, transform_indices = @transform_3, window_bounds = array<i64: 1, 1024>}, {pipeline_mode = #tpu.pipeline_mode<synchronous>, transform_indices = @transform_4, window_bounds = array<i64: 128, 8>}, {pipeline_mode = #tpu.pipeline_mode<synchronous>, transform_indices = @transform_5, window_bounds = array<i64: 128, 8>}, {pipeline_mode = #tpu.pipeline_mode<synchronous>, transform_indices = @transform_6, window_bounds = array<i64: 1, 8>}, {pipeline_mode = #tpu.pipeline_mode<synchronous>, transform_indices = @transform_7, window_bounds = array<i64: 16, 8>}]} {
    %c0 = arith.constant 0 : index
    %c0_0 = arith.constant 0 : index
    %0 = vector.load %arg1[%c0, %c0_0] : memref<16x128xf32, #tpu.memory_space<vmem>>, vector<16x128xf32>
    %c0_1 = arith.constant 0 : index
    %c0_2 = arith.constant 0 : index
    %1 = vector.load %arg2[%c0_1, %c0_2] : memref<128x1024xf32, #tpu.memory_space<vmem>>, vector<128x1024xf32>
    %cst = arith.constant dense<0.000000e+00> : vector<16x1024xf32>
    %2 = tpu.matmul %0, %1, %cst {dimension_numbers = #tpu.dot_dimension_numbers<[1], [0], [0], [1], [0, 0, 1, 1], [], []>} : vector<16x128xf32>, vector<128x1024xf32>, vector<16x1024xf32> -> vector<16x1024xf32>
    %c0_3 = arith.constant 0 : index
    %c0_4 = arith.constant 0 : index
    %3 = vector.load %arg4[%c0_3, %c0_4] : memref<1x1024xf32, #tpu.memory_space<vmem>>, vector<1x1024xf32>
    %4 = vector.broadcast %3 : vector<1x1024xf32> to vector<16x1024xf32>
    %5 = arith.addf %2, %4 : vector<16x1024xf32>
    %c0_5 = arith.constant 0 : index
    %c0_6 = arith.constant 0 : index
    %6 = vector.load %arg9[%c0_5, %c0_6] : memref<16x1024xf32, #tpu.memory_space<vmem>>, vector<16x1024xf32>
    tpu.vector_store %arg9[%c0_5, %c0_6], %5 {strides = array<i32>} : memref<16x1024xf32, #tpu.memory_space<vmem>>, vector<16x1024xf32>,
    %c0_7 = arith.constant 0 : index
    %c0_8 = arith.constant 0 : index
    %7 = vector.load %arg3[%c0_7, %c0_8] : memref<256x1024xf32, #tpu.memory_space<vmem>>, vector<256x1024xf32>
    %cst_9 = arith.constant 0.000000e+00 : f32
    %8 = vector.broadcast %cst_9 : f32 to vector<2x256xf32>
    %cst_10 = arith.constant 0.000000e+00 : f32
    %9 = vector.broadcast %cst_10 : f32 to vector<2x256xf32>
    %c0_11 = arith.constant 0 : index
    %c0_12 = arith.constant 0 : index
    %10 = vector.load %arg9[%c0_11, %c0_12] : memref<16x1024xf32, #tpu.memory_space<vmem>>, vector<2x1024xf32>
    %cst_13 = arith.constant dense<0.000000e+00> : vector<2x1024xf32>
    %11 = tpu.matmul %8, %7, %cst_13 {dimension_numbers = #tpu.dot_dimension_numbers<[1], [0], [0], [1], [0, 0, 1, 1], [], []>} : vector<2x256xf32>, vector<256x1024xf32>, vector<2x1024xf32> -> vector<2x1024xf32>
    %12 = arith.addf %10, %11 : vector<2x1024xf32>
    %13 = vector.extract_strided_slice %12 {offsets = [0, 0], sizes = [2, 768], strides = [1, 1]} : vector<2x1024xf32> to vector<2x768xf32>
    %14 = arith.negf %13 : vector<2x768xf32>
    %15 = math.exp %14 : vector<2x768xf32>
    %cst_14 = arith.constant 1.000000e+00 : f32
    %16 = vector.broadcast %cst_14 : f32 to vector<2x768xf32>
    %17 = arith.addf %16, %15 : vector<2x768xf32>
    %18 = arith.divf %16, %17 : vector<2x768xf32>
    %19 = vector.extract_strided_slice %12 {offsets = [0, 768], sizes = [2, 256], strides = [1, 1]} : vector<2x1024xf32> to vector<2x256xf32>
    %20 = math.tanh %19 : vector<2x256xf32>
    %21 = vector.extract_strided_slice %18 {offsets = [0, 0], sizes = [2, 256], strides = [1, 1]} : vector<2x768xf32> to vector<2x256xf32>
    %22 = vector.extract_strided_slice %18 {offsets = [0, 256], sizes = [2, 256], strides = [1, 1]} : vector<2x768xf32> to vector<2x256xf32>
    %23 = vector.extract_strided_slice %18 {offsets = [0, 512], sizes = [2, 256], strides = [1, 1]} : vector<2x768xf32> to vector<2x256xf32>
    %24 = arith.mulf %22, %9 : vector<2x256xf32>
    %25 = arith.mulf %21, %20 : vector<2x256xf32>
    %26 = arith.addf %24, %25 : vector<2x256xf32>
    %27 = math.tanh %26 : vector<2x256xf32>
    %28 = arith.mulf %23, %27 : vector<2x256xf32>
    %29 = vector.extract_strided_slice %28 {offsets = [0, 0], sizes = [2, 128], strides = [1, 1]} : vector<2x256xf32> to vector<2x128xf32>
    %c0_15 = arith.constant 0 : index
    %c0_16 = arith.constant 0 : index
    %30 = vector.load %arg10[%c0_15, %c0_16] : memref<16x128xf32, #tpu.memory_space<vmem>>, vector<2x128xf32>
    tpu.vector_store %arg10[%c0_15, %c0_16], %29 {strides = array<i32>} : memref<16x128xf32, #tpu.memory_space<vmem>>, vector<2x128xf32>,
    %31 = vector.extract_strided_slice %28 {offsets = [0, 128], sizes = [2, 128], strides = [1, 1]} : vector<2x256xf32> to vector<2x128xf32>
    %c14 = arith.constant 14 : index
    %c0_17 = arith.constant 0 : index
    %32 = vector.load %arg11[%c14, %c0_17] : memref<16x128xf32, #tpu.memory_space<vmem>>, vector<2x128xf32>
    tpu.vector_store %arg11[%c14, %c0_17], %31 {strides = array<i32>} : memref<16x128xf32, #tpu.memory_space<vmem>>, vector<2x128xf32>,
    %c2 = arith.constant 2 : index
    %c0_18 = arith.constant 0 : index
    %33 = vector.load %arg9[%c2, %c0_18] : memref<16x1024xf32, #tpu.memory_space<vmem>>, vector<2x1024xf32>
    %cst_19 = arith.constant dense<0.000000e+00> : vector<2x1024xf32>
    %34 = tpu.matmul %28, %7, %cst_19 {dimension_numbers = #tpu.dot_dimension_numbers<[1], [0], [0], [1], [0, 0, 1, 1], [], []>} : vector<2x256xf32>, vector<256x1024xf32>, vector<2x1024xf32> -> vector<2x1024xf32>
    %35 = arith.addf %33, %34 : vector<2x1024xf32>
    %36 = vector.extract_strided_slice %35 {offsets = [0, 0], sizes = [2, 768], strides = [1, 1]} : vector<2x1024xf32> to vector<2x768xf32>
    %37 = arith.negf %36 : vector<2x768xf32>
    %38 = math.exp %37 : vector<2x768xf32>
    %cst_20 = arith.constant 1.000000e+00 : f32
    %39 = vector.broadcast %cst_20 : f32 to vector<2x768xf32>
    %40 = arith.addf %39, %38 : vector<2x768xf32>
    %41 = arith.divf %39, %40 : vector<2x768xf32>
    %42 = vector.extract_strided_slice %35 {offsets = [0, 768], sizes = [2, 256], strides = [1, 1]} : vector<2x1024xf32> to vector<2x256xf32>
    %43 = math.tanh %42 : vector<2x256xf32>
    %44 = vector.extract_strided_slice %41 {offsets = [0, 0], sizes = [2, 256], strides = [1, 1]} : vector<2x768xf32> to vector<2x256xf32>
    %45 = vector.extract_strided_slice %41 {offsets = [0, 256], sizes = [2, 256], strides = [1, 1]} : vector<2x768xf32> to vector<2x256xf32>
    %46 = vector.extract_strided_slice %41 {offsets = [0, 512], sizes = [2, 256], strides = [1, 1]} : vector<2x768xf32> to vector<2x256xf32>
    %47 = arith.mulf %45, %26 : vector<2x256xf32>
    %48 = arith.mulf %44, %43 : vector<2x256xf32>
    %49 = arith.addf %47, %48 : vector<2x256xf32>
    %50 = math.tanh %49 : vector<2x256xf32>
    %51 = arith.mulf %46, %50 : vector<2x256xf32>
    %52 = vector.extract_strided_slice %51 {offsets = [0, 0], sizes = [2, 128], strides = [1, 1]} : vector<2x256xf32> to vector<2x128xf32>
    %c2_21 = arith.constant 2 : index
    %c0_22 = arith.constant 0 : index
    %53 = vector.load %arg10[%c2_21, %c0_22] : memref<16x128xf32, #tpu.memory_space<vmem>>, vector<2x128xf32>
    tpu.vector_store %arg10[%c2_21, %c0_22], %52 {strides = array<i32>} : memref<16x128xf32, #tpu.memory_space<vmem>>, vector<2x128xf32>,
    %54 = vector.extract_strided_slice %51 {offsets = [0, 128], sizes = [2, 128], strides = [1, 1]} : vector<2x256xf32> to vector<2x128xf32>
    %c12 = arith.constant 12 : index
    %c0_23 = arith.constant 0 : index
    %55 = vector.load %arg11[%c12, %c0_23] : memref<16x128xf32, #tpu.memory_space<vmem>>, vector<2x128xf32>
    tpu.vector_store %arg11[%c12, %c0_23], %54 {strides = array<i32>} : memref<16x128xf32, #tpu.memory_space<vmem>>, vector<2x128xf32>,
    %c4 = arith.constant 4 : index
    %c0_24 = arith.constant 0 : index
    %56 = vector.load %arg9[%c4, %c0_24] : memref<16x1024xf32, #tpu.memory_space<vmem>>, vector<2x1024xf32>
    %cst_25 = arith.constant dense<0.000000e+00> : vector<2x1024xf32>
    %57 = tpu.matmul %51, %7, %cst_25 {dimension_numbers = #tpu.dot_dimension_numbers<[1], [0], [0], [1], [0, 0, 1, 1], [], []>} : vector<2x256xf32>, vector<256x1024xf32>, vector<2x1024xf32> -> vector<2x1024xf32>
    %58 = arith.addf %56, %57 : vector<2x1024xf32>
    %59 = vector.extract_strided_slice %58 {offsets = [0, 0], sizes = [2, 768], strides = [1, 1]} : vector<2x1024xf32> to vector<2x768xf32>
    %60 = arith.negf %59 : vector<2x768xf32>
    %61 = math.exp %60 : vector<2x768xf32>
    %cst_26 = arith.constant 1.000000e+00 : f32
    %62 = vector.broadcast %cst_26 : f32 to vector<2x768xf32>
    %63 = arith.addf %62, %61 : vector<2x768xf32>
    %64 = arith.divf %62, %63 : vector<2x768xf32>
    %65 = vector.extract_strided_slice %58 {offsets = [0, 768], sizes = [2, 256], strides = [1, 1]} : vector<2x1024xf32> to vector<2x256xf32>
    %66 = math.tanh %65 : vector<2x256xf32>
    %67 = vector.extract_strided_slice %64 {offsets = [0, 0], sizes = [2, 256], strides = [1, 1]} : vector<2x768xf32> to vector<2x256xf32>
    %68 = vector.extract_strided_slice %64 {offsets = [0, 256], sizes = [2, 256], strides = [1, 1]} : vector<2x768xf32> to vector<2x256xf32>
    %69 = vector.extract_strided_slice %64 {offsets = [0, 512], sizes = [2, 256], strides = [1, 1]} : vector<2x768xf32> to vector<2x256xf32>
    %70 = arith.mulf %68, %49 : vector<2x256xf32>
    %71 = arith.mulf %67, %66 : vector<2x256xf32>
    %72 = arith.addf %70, %71 : vector<2x256xf32>
    %73 = math.tanh %72 : vector<2x256xf32>
    %74 = arith.mulf %69, %73 : vector<2x256xf32>
    %75 = vector.extract_strided_slice %74 {offsets = [0, 0], sizes = [2, 128], strides = [1, 1]} : vector<2x256xf32> to vector<2x128xf32>
    %c4_27 = arith.constant 4 : index
    %c0_28 = arith.constant 0 : index
    %76 = vector.load %arg10[%c4_27, %c0_28] : memref<16x128xf32, #tpu.memory_space<vmem>>, vector<2x128xf32>
    tpu.vector_store %arg10[%c4_27, %c0_28], %75 {strides = array<i32>} : memref<16x128xf32, #tpu.memory_space<vmem>>, vector<2x128xf32>,
    %77 = vector.extract_strided_slice %74 {offsets = [0, 128], sizes = [2, 128], strides = [1, 1]} : vector<2x256xf32> to vector<2x128xf32>
    %c10 = arith.constant 10 : index
    %c0_29 = arith.constant 0 : index
    %78 = vector.load %arg11[%c10, %c0_29] : memref<16x128xf32, #tpu.memory_space<vmem>>, vector<2x128xf32>
    tpu.vector_store %arg11[%c10, %c0_29], %77 {strides = array<i32>} : memref<16x128xf32, #tpu.memory_space<vmem>>, vector<2x128xf32>,
    %c6 = arith.constant 6 : index
    %c0_30 = arith.constant 0 : index
    %79 = vector.load %arg9[%c6, %c0_30] : memref<16x1024xf32, #tpu.memory_space<vmem>>, vector<2x1024xf32>
    %cst_31 = arith.constant dense<0.000000e+00> : vector<2x1024xf32>
    %80 = tpu.matmul %74, %7, %cst_31 {dimension_numbers = #tpu.dot_dimension_numbers<[1], [0], [0], [1], [0, 0, 1, 1], [], []>} : vector<2x256xf32>, vector<256x1024xf32>, vector<2x1024xf32> -> vector<2x1024xf32>
    %81 = arith.addf %79, %80 : vector<2x1024xf32>
    %82 = vector.extract_strided_slice %81 {offsets = [0, 0], sizes = [2, 768], strides = [1, 1]} : vector<2x1024xf32> to vector<2x768xf32>
    %83 = arith.negf %82 : vector<2x768xf32>
    %84 = math.exp %83 : vector<2x768xf32>
    %cst_32 = arith.constant 1.000000e+00 : f32
    %85 = vector.broadcast %cst_32 : f32 to vector<2x768xf32>
    %86 = arith.addf %85, %84 : vector<2x768xf32>
    %87 = arith.divf %85, %86 : vector<2x768xf32>
    %88 = vector.extract_strided_slice %81 {offsets = [0, 768], sizes = [2, 256], strides = [1, 1]} : vector<2x1024xf32> to vector<2x256xf32>
    %89 = math.tanh %88 : vector<2x256xf32>
    %90 = vector.extract_strided_slice %87 {offsets = [0, 0], sizes = [2, 256], strides = [1, 1]} : vector<2x768xf32> to vector<2x256xf32>
    %91 = vector.extract_strided_slice %87 {offsets = [0, 256], sizes = [2, 256], strides = [1, 1]} : vector<2x768xf32> to vector<2x256xf32>
    %92 = vector.extract_strided_slice %87 {offsets = [0, 512], sizes = [2, 256], strides = [1, 1]} : vector<2x768xf32> to vector<2x256xf32>
    %93 = arith.mulf %91, %72 : vector<2x256xf32>
    %94 = arith.mulf %90, %89 : vector<2x256xf32>
    %95 = arith.addf %93, %94 : vector<2x256xf32>
    %96 = math.tanh %95 : vector<2x256xf32>
    %97 = arith.mulf %92, %96 : vector<2x256xf32>
    %98 = vector.extract_strided_slice %97 {offsets = [0, 0], sizes = [2, 128], strides = [1, 1]} : vector<2x256xf32> to vector<2x128xf32>
    %c6_33 = arith.constant 6 : index
    %c0_34 = arith.constant 0 : index
    %99 = vector.load %arg10[%c6_33, %c0_34] : memref<16x128xf32, #tpu.memory_space<vmem>>, vector<2x128xf32>
    tpu.vector_store %arg10[%c6_33, %c0_34], %98 {strides = array<i32>} : memref<16x128xf32, #tpu.memory_space<vmem>>, vector<2x128xf32>,
    %100 = vector.extract_strided_slice %97 {offsets = [0, 128], sizes = [2, 128], strides = [1, 1]} : vector<2x256xf32> to vector<2x128xf32>
    %c8 = arith.constant 8 : index
    %c0_35 = arith.constant 0 : index
    %101 = vector.load %arg11[%c8, %c0_35] : memref<16x128xf32, #tpu.memory_space<vmem>>, vector<2x128xf32>
    tpu.vector_store %arg11[%c8, %c0_35], %100 {strides = array<i32>} : memref<16x128xf32, #tpu.memory_space<vmem>>, vector<2x128xf32>,
    %c8_36 = arith.constant 8 : index
    %c0_37 = arith.constant 0 : index
    %102 = vector.load %arg9[%c8_36, %c0_37] : memref<16x1024xf32, #tpu.memory_space<vmem>>, vector<2x1024xf32>
    %cst_38 = arith.constant dense<0.000000e+00> : vector<2x1024xf32>
    %103 = tpu.matmul %97, %7, %cst_38 {dimension_numbers = #tpu.dot_dimension_numbers<[1], [0], [0], [1], [0, 0, 1, 1], [], []>} : vector<2x256xf32>, vector<256x1024xf32>, vector<2x1024xf32> -> vector<2x1024xf32>
    %104 = arith.addf %102, %103 : vector<2x1024xf32>
    %105 = vector.extract_strided_slice %104 {offsets = [0, 0], sizes = [2, 768], strides = [1, 1]} : vector<2x1024xf32> to vector<2x768xf32>
    %106 = arith.negf %105 : vector<2x768xf32>
    %107 = math.exp %106 : vector<2x768xf32>
    %cst_39 = arith.constant 1.000000e+00 : f32
    %108 = vector.broadcast %cst_39 : f32 to vector<2x768xf32>
    %109 = arith.addf %108, %107 : vector<2x768xf32>
    %110 = arith.divf %108, %109 : vector<2x768xf32>
    %111 = vector.extract_strided_slice %104 {offsets = [0, 768], sizes = [2, 256], strides = [1, 1]} : vector<2x1024xf32> to vector<2x256xf32>
    %112 = math.tanh %111 : vector<2x256xf32>
    %113 = vector.extract_strided_slice %110 {offsets = [0, 0], sizes = [2, 256], strides = [1, 1]} : vector<2x768xf32> to vector<2x256xf32>
    %114 = vector.extract_strided_slice %110 {offsets = [0, 256], sizes = [2, 256], strides = [1, 1]} : vector<2x768xf32> to vector<2x256xf32>
    %115 = vector.extract_strided_slice %110 {offsets = [0, 512], sizes = [2, 256], strides = [1, 1]} : vector<2x768xf32> to vector<2x256xf32>
    %116 = arith.mulf %114, %95 : vector<2x256xf32>
    %117 = arith.mulf %113, %112 : vector<2x256xf32>
    %118 = arith.addf %116, %117 : vector<2x256xf32>
    %119 = math.tanh %118 : vector<2x256xf32>
    %120 = arith.mulf %115, %119 : vector<2x256xf32>
    %121 = vector.extract_strided_slice %120 {offsets = [0, 0], sizes = [2, 128], strides = [1, 1]} : vector<2x256xf32> to vector<2x128xf32>
    %c8_40 = arith.constant 8 : index
    %c0_41 = arith.constant 0 : index
    %122 = vector.load %arg10[%c8_40, %c0_41] : memref<16x128xf32, #tpu.memory_space<vmem>>, vector<2x128xf32>
    tpu.vector_store %arg10[%c8_40, %c0_41], %121 {strides = array<i32>} : memref<16x128xf32, #tpu.memory_space<vmem>>, vector<2x128xf32>,
    %123 = vector.extract_strided_slice %120 {offsets = [0, 128], sizes = [2, 128], strides = [1, 1]} : vector<2x256xf32> to vector<2x128xf32>
    %c6_42 = arith.constant 6 : index
    %c0_43 = arith.constant 0 : index
    %124 = vector.load %arg11[%c6_42, %c0_43] : memref<16x128xf32, #tpu.memory_space<vmem>>, vector<2x128xf32>
    tpu.vector_store %arg11[%c6_42, %c0_43], %123 {strides = array<i32>} : memref<16x128xf32, #tpu.memory_space<vmem>>, vector<2x128xf32>,
    %c10_44 = arith.constant 10 : index
    %c0_45 = arith.constant 0 : index
    %125 = vector.load %arg9[%c10_44, %c0_45] : memref<16x1024xf32, #tpu.memory_space<vmem>>, vector<2x1024xf32>
    %cst_46 = arith.constant dense<0.000000e+00> : vector<2x1024xf32>
    %126 = tpu.matmul %120, %7, %cst_46 {dimension_numbers = #tpu.dot_dimension_numbers<[1], [0], [0], [1], [0, 0, 1, 1], [], []>} : vector<2x256xf32>, vector<256x1024xf32>, vector<2x1024xf32> -> vector<2x1024xf32>
    %127 = arith.addf %125, %126 : vector<2x1024xf32>
    %128 = vector.extract_strided_slice %127 {offsets = [0, 0], sizes = [2, 768], strides = [1, 1]} : vector<2x1024xf32> to vector<2x768xf32>
    %129 = arith.negf %128 : vector<2x768xf32>
    %130 = math.exp %129 : vector<2x768xf32>
    %cst_47 = arith.constant 1.000000e+00 : f32
    %131 = vector.broadcast %cst_47 : f32 to vector<2x768xf32>
    %132 = arith.addf %131, %130 : vector<2x768xf32>
    %133 = arith.divf %131, %132 : vector<2x768xf32>
    %134 = vector.extract_strided_slice %127 {offsets = [0, 768], sizes = [2, 256], strides = [1, 1]} : vector<2x1024xf32> to vector<2x256xf32>
    %135 = math.tanh %134 : vector<2x256xf32>
    %136 = vector.extract_strided_slice %133 {offsets = [0, 0], sizes = [2, 256], strides = [1, 1]} : vector<2x768xf32> to vector<2x256xf32>
    %137 = vector.extract_strided_slice %133 {offsets = [0, 256], sizes = [2, 256], strides = [1, 1]} : vector<2x768xf32> to vector<2x256xf32>
    %138 = vector.extract_strided_slice %133 {offsets = [0, 512], sizes = [2, 256], strides = [1, 1]} : vector<2x768xf32> to vector<2x256xf32>
    %139 = arith.mulf %137, %118 : vector<2x256xf32>
    %140 = arith.mulf %136, %135 : vector<2x256xf32>
    %141 = arith.addf %139, %140 : vector<2x256xf32>
    %142 = math.tanh %141 : vector<2x256xf32>
    %143 = arith.mulf %138, %142 : vector<2x256xf32>
    %144 = vector.extract_strided_slice %143 {offsets = [0, 0], sizes = [2, 128], strides = [1, 1]} : vector<2x256xf32> to vector<2x128xf32>
    %c10_48 = arith.constant 10 : index
    %c0_49 = arith.constant 0 : index
    %145 = vector.load %arg10[%c10_48, %c0_49] : memref<16x128xf32, #tpu.memory_space<vmem>>, vector<2x128xf32>
    tpu.vector_store %arg10[%c10_48, %c0_49], %144 {strides = array<i32>} : memref<16x128xf32, #tpu.memory_space<vmem>>, vector<2x128xf32>,
    %146 = vector.extract_strided_slice %143 {offsets = [0, 128], sizes = [2, 128], strides = [1, 1]} : vector<2x256xf32> to vector<2x128xf32>
    %c4_50 = arith.constant 4 : index
    %c0_51 = arith.constant 0 : index
    %147 = vector.load %arg11[%c4_50, %c0_51] : memref<16x128xf32, #tpu.memory_space<vmem>>, vector<2x128xf32>
    tpu.vector_store %arg11[%c4_50, %c0_51], %146 {strides = array<i32>} : memref<16x128xf32, #tpu.memory_space<vmem>>, vector<2x128xf32>,
    %c12_52 = arith.constant 12 : index
    %c0_53 = arith.constant 0 : index
    %148 = vector.load %arg9[%c12_52, %c0_53] : memref<16x1024xf32, #tpu.memory_space<vmem>>, vector<2x1024xf32>
    %cst_54 = arith.constant dense<0.000000e+00> : vector<2x1024xf32>
    %149 = tpu.matmul %143, %7, %cst_54 {dimension_numbers = #tpu.dot_dimension_numbers<[1], [0], [0], [1], [0, 0, 1, 1], [], []>} : vector<2x256xf32>, vector<256x1024xf32>, vector<2x1024xf32> -> vector<2x1024xf32>
    %150 = arith.addf %148, %149 : vector<2x1024xf32>
    %151 = vector.extract_strided_slice %150 {offsets = [0, 0], sizes = [2, 768], strides = [1, 1]} : vector<2x1024xf32> to vector<2x768xf32>
    %152 = arith.negf %151 : vector<2x768xf32>
    %153 = math.exp %152 : vector<2x768xf32>
    %cst_55 = arith.constant 1.000000e+00 : f32
    %154 = vector.broadcast %cst_55 : f32 to vector<2x768xf32>
    %155 = arith.addf %154, %153 : vector<2x768xf32>
    %156 = arith.divf %154, %155 : vector<2x768xf32>
    %157 = vector.extract_strided_slice %150 {offsets = [0, 768], sizes = [2, 256], strides = [1, 1]} : vector<2x1024xf32> to vector<2x256xf32>
    %158 = math.tanh %157 : vector<2x256xf32>
    %159 = vector.extract_strided_slice %156 {offsets = [0, 0], sizes = [2, 256], strides = [1, 1]} : vector<2x768xf32> to vector<2x256xf32>
    %160 = vector.extract_strided_slice %156 {offsets = [0, 256], sizes = [2, 256], strides = [1, 1]} : vector<2x768xf32> to vector<2x256xf32>
    %161 = vector.extract_strided_slice %156 {offsets = [0, 512], sizes = [2, 256], strides = [1, 1]} : vector<2x768xf32> to vector<2x256xf32>
    %162 = arith.mulf %160, %141 : vector<2x256xf32>
    %163 = arith.mulf %159, %158 : vector<2x256xf32>
    %164 = arith.addf %162, %163 : vector<2x256xf32>
    %165 = math.tanh %164 : vector<2x256xf32>
    %166 = arith.mulf %161, %165 : vector<2x256xf32>
    %167 = vector.extract_strided_slice %166 {offsets = [0, 0], sizes = [2, 128], strides = [1, 1]} : vector<2x256xf32> to vector<2x128xf32>
    %c12_56 = arith.constant 12 : index
    %c0_57 = arith.constant 0 : index
    %168 = vector.load %arg10[%c12_56, %c0_57] : memref<16x128xf32, #tpu.memory_space<vmem>>, vector<2x128xf32>
    tpu.vector_store %arg10[%c12_56, %c0_57], %167 {strides = array<i32>} : memref<16x128xf32, #tpu.memory_space<vmem>>, vector<2x128xf32>,
    %169 = vector.extract_strided_slice %166 {offsets = [0, 128], sizes = [2, 128], strides = [1, 1]} : vector<2x256xf32> to vector<2x128xf32>
    %c2_58 = arith.constant 2 : index
    %c0_59 = arith.constant 0 : index
    %170 = vector.load %arg11[%c2_58, %c0_59] : memref<16x128xf32, #tpu.memory_space<vmem>>, vector<2x128xf32>
    tpu.vector_store %arg11[%c2_58, %c0_59], %169 {strides = array<i32>} : memref<16x128xf32, #tpu.memory_space<vmem>>, vector<2x128xf32>,
    %c14_60 = arith.constant 14 : index
    %c0_61 = arith.constant 0 : index
    %171 = vector.load %arg9[%c14_60, %c0_61] : memref<16x1024xf32, #tpu.memory_space<vmem>>, vector<2x1024xf32>
    %cst_62 = arith.constant dense<0.000000e+00> : vector<2x1024xf32>
    %172 = tpu.matmul %166, %7, %cst_62 {dimension_numbers = #tpu.dot_dimension_numbers<[1], [0], [0], [1], [0, 0, 1, 1], [], []>} : vector<2x256xf32>, vector<256x1024xf32>, vector<2x1024xf32> -> vector<2x1024xf32>
    %173 = arith.addf %171, %172 : vector<2x1024xf32>
    %174 = vector.extract_strided_slice %173 {offsets = [0, 0], sizes = [2, 768], strides = [1, 1]} : vector<2x1024xf32> to vector<2x768xf32>
    %175 = arith.negf %174 : vector<2x768xf32>
    %176 = math.exp %175 : vector<2x768xf32>
    %cst_63 = arith.constant 1.000000e+00 : f32
    %177 = vector.broadcast %cst_63 : f32 to vector<2x768xf32>
    %178 = arith.addf %177, %176 : vector<2x768xf32>
    %179 = arith.divf %177, %178 : vector<2x768xf32>
    %180 = vector.extract_strided_slice %173 {offsets = [0, 768], sizes = [2, 256], strides = [1, 1]} : vector<2x1024xf32> to vector<2x256xf32>
    %181 = math.tanh %180 : vector<2x256xf32>
    %182 = vector.extract_strided_slice %179 {offsets = [0, 0], sizes = [2, 256], strides = [1, 1]} : vector<2x768xf32> to vector<2x256xf32>
    %183 = vector.extract_strided_slice %179 {offsets = [0, 256], sizes = [2, 256], strides = [1, 1]} : vector<2x768xf32> to vector<2x256xf32>
    %184 = vector.extract_strided_slice %179 {offsets = [0, 512], sizes = [2, 256], strides = [1, 1]} : vector<2x768xf32> to vector<2x256xf32>
    %185 = arith.mulf %183, %164 : vector<2x256xf32>
    %186 = arith.mulf %182, %181 : vector<2x256xf32>
    %187 = arith.addf %185, %186 : vector<2x256xf32>
    %188 = math.tanh %187 : vector<2x256xf32>
    %189 = arith.mulf %184, %188 : vector<2x256xf32>
    %190 = vector.extract_strided_slice %189 {offsets = [0, 0], sizes = [2, 128], strides = [1, 1]} : vector<2x256xf32> to vector<2x128xf32>
    %c14_64 = arith.constant 14 : index
    %c0_65 = arith.constant 0 : index
    %191 = vector.load %arg10[%c14_64, %c0_65] : memref<16x128xf32, #tpu.memory_space<vmem>>, vector<2x128xf32>
    tpu.vector_store %arg10[%c14_64, %c0_65], %190 {strides = array<i32>} : memref<16x128xf32, #tpu.memory_space<vmem>>, vector<2x128xf32>,
    %192 = vector.extract_strided_slice %189 {offsets = [0, 128], sizes = [2, 128], strides = [1, 1]} : vector<2x256xf32> to vector<2x128xf32>
    %c0_66 = arith.constant 0 : index
    %c0_67 = arith.constant 0 : index
    %193 = vector.load %arg11[%c0_66, %c0_67] : memref<16x128xf32, #tpu.memory_space<vmem>>, vector<2x128xf32>
    tpu.vector_store %arg11[%c0_66, %c0_67], %192 {strides = array<i32>} : memref<16x128xf32, #tpu.memory_space<vmem>>, vector<2x128xf32>,
    %c0_68 = arith.constant 0 : index
    %c0_69 = arith.constant 0 : index
    %194 = vector.load %arg10[%c0_68, %c0_69] : memref<16x128xf32, #tpu.memory_space<vmem>>, vector<16x128xf32>
    %c0_70 = arith.constant 0 : index
    %c0_71 = arith.constant 0 : index
    %195 = vector.load %arg5[%c0_70, %c0_71] : memref<128x8xf32, #tpu.memory_space<vmem>>, vector<128x8xf32>
    %cst_72 = arith.constant dense<0.000000e+00> : vector<16x8xf32>
    %196 = tpu.matmul %194, %195, %cst_72 {dimension_numbers = #tpu.dot_dimension_numbers<[1], [0], [0], [1], [0, 0, 1, 1], [], []>} : vector<16x128xf32>, vector<128x8xf32>, vector<16x8xf32> -> vector<16x8xf32>
    %c0_73 = arith.constant 0 : index
    %c0_74 = arith.constant 0 : index
    %197 = vector.load %arg11[%c0_73, %c0_74] : memref<16x128xf32, #tpu.memory_space<vmem>>, vector<16x128xf32>
    %c0_75 = arith.constant 0 : index
    %c0_76 = arith.constant 0 : index
    %198 = vector.load %arg6[%c0_75, %c0_76] : memref<128x8xf32, #tpu.memory_space<vmem>>, vector<128x8xf32>
    %cst_77 = arith.constant dense<0.000000e+00> : vector<16x8xf32>
    %199 = tpu.matmul %197, %198, %cst_77 {dimension_numbers = #tpu.dot_dimension_numbers<[1], [0], [0], [1], [0, 0, 1, 1], [], []>} : vector<16x128xf32>, vector<128x8xf32>, vector<16x8xf32> -> vector<16x8xf32>
    %200 = arith.addf %196, %199 : vector<16x8xf32>
    %c0_78 = arith.constant 0 : index
    %c0_79 = arith.constant 0 : index
    %201 = vector.load %arg7[%c0_78, %c0_79] : memref<1x8xf32, #tpu.memory_space<vmem>>, vector<1x8xf32>
    %202 = vector.broadcast %201 : vector<1x8xf32> to vector<16x8xf32>
    %203 = arith.addf %200, %202 : vector<16x8xf32>
    %c0_80 = arith.constant 0 : index
    %c0_81 = arith.constant 0 : index
    %204 = vector.load %arg8[%c0_80, %c0_81] : memref<16x8xf32, #tpu.memory_space<vmem>>, vector<16x8xf32>
    tpu.vector_store %arg8[%c0_80, %c0_81], %203 {strides = array<i32>} : memref<16x8xf32, #tpu.memory_space<vmem>>, vector<16x8xf32>,
    return
  }
  func.func @transform_0(%arg0: i32) -> (i32, i32) {
    %c0_i32 = arith.constant 0 : i32
    %c0_i32_0 = arith.constant 0 : i32
    %c0_i32_1 = arith.constant 0 : i32
    return %c0_i32, %c0_i32_0 : i32, i32
  }
  func.func @transform_1(%arg0: i32) -> (i32, i32) {
    %c0_i32 = arith.constant 0 : i32
    %c0_i32_0 = arith.constant 0 : i32
    %c0_i32_1 = arith.constant 0 : i32
    return %c0_i32, %c0_i32_0 : i32, i32
  }
  func.func @transform_2(%arg0: i32) -> (i32, i32) {
    %c0_i32 = arith.constant 0 : i32
    %c0_i32_0 = arith.constant 0 : i32
    %c0_i32_1 = arith.constant 0 : i32
    return %c0_i32, %c0_i32_0 : i32, i32
  }
  func.func @transform_3(%arg0: i32) -> (i32, i32) {
    %c0_i32 = arith.constant 0 : i32
    %c0_i32_0 = arith.constant 0 : i32
    %c0_i32_1 = arith.constant 0 : i32
    return %c0_i32, %c0_i32_0 : i32, i32
  }
  func.func @transform_4(%arg0: i32) -> (i32, i32) {
    %c0_i32 = arith.constant 0 : i32
    %c0_i32_0 = arith.constant 0 : i32
    %c0_i32_1 = arith.constant 0 : i32
    return %c0_i32, %c0_i32_0 : i32, i32
  }
  func.func @transform_5(%arg0: i32) -> (i32, i32) {
    %c0_i32 = arith.constant 0 : i32
    %c0_i32_0 = arith.constant 0 : i32
    %c0_i32_1 = arith.constant 0 : i32
    return %c0_i32, %c0_i32_0 : i32, i32
  }
  func.func @transform_6(%arg0: i32) -> (i32, i32) {
    %c0_i32 = arith.constant 0 : i32
    %c0_i32_0 = arith.constant 0 : i32
    %c0_i32_1 = arith.constant 0 : i32
    return %c0_i32, %c0_i32_0 : i32, i32
  }
  func.func @transform_7(%arg0: i32) -> (i32, i32) {
    %c0_i32 = arith.constant 0 : i32
    %c0_i32_0 = arith.constant 0 : i32
    %c0_i32_1 = arith.constant 0 : i32
    return %c0_i32, %c0_i32_0 : i32, i32
  }
}

</mosaic_0001>

<bundles_post_ra>
// kernel: tpu_custom_call.1
= control target key start
LH: loop header
LB: loop body
LE: loop exit
PB: predicated region body
PF: predicated region fallthrough
CT: control target
= control target key end

     0   :  { %12 = vsyncpa [#allocation6], 0  ;;  %s8347_s0 = inlined_call_operand.vmem [shape: f32[16,128], index: 0, kind: input, shape index: {}]   ;;  %s8348_s1 = inlined_call_operand.hbm [shape: f32[128,1024], index: 1, kind: input, shape index: {}]   ;;  %s8349_s2 = inlined_call_operand.hbm [shape: f32[256,1024], index: 2, kind: input, shape index: {}]   ;;  %s8350_s3 = inlined_call_operand.vmem [shape: f32[1,1024], index: 3, kind: input, shape index: {}]   ;;  %s8351_s4 = inlined_call_operand.vmem [shape: f32[128,8], index: 4, kind: input, shape index: {}]   ;;  %s8352_s5 = inlined_call_operand.vmem [shape: f32[128,8], index: 5, kind: input, shape index: {}]   ;;  %s8353_s6 = inlined_call_operand.vmem [shape: f32[1,8], index: 6, kind: input, shape index: {}]   ;;  %s8354_s7 = inlined_call_operand.vmem [shape: f32[16,8], index: 7, kind: output, shape index: {}]  }
   0x1   :  { %13 = vsyncpa [#allocation8], 0  ;;  %s6732_s24 = smov [#allocation5]   ;;  %s6684_s28 = scalar_lea.hbm %s8348_s1, 16384 }
   0x2   :  { %s21_s25 = sshll.u32 %s6732_s24, 4  ;;  %p6685_p0 = scmp.ne.s32.totalorder %s8348_s1, %s6684_s28  ;;  %s22_s25 = int_to_ptr.vmem [resolvable:$true] %s21_s25 }
   0x3   :  { %p6688_p1 = scmp.lt.u32.totalorder %s6684_s28, %s8348_s1 }
   0x5   :  { %p6690_p2 = pnand %p6688_p1, %p6685_p0 }
   0x7   :  { %6693 = shalt.err (!%p6690_p2)
}
   0x8   :  { %s6694_s10 = scalar_lea.vmem %s22_s25, 16384  ;;  %p6699_p4 = scmp.lt.s32.totalorder %s22_s25, %s22_s25 }
   0x9   :  { %p6695_p3 = scmp.ne.s32.totalorder %s22_s25, %s6694_s10  ;;  %p6700_p5 = scmp.lt.s32.totalorder %s6694_s10, %s6694_s10 }
   0xb   :  { %p6701_p6 = por %p6700_p5, %p6699_p4 }
   0xd   :  { %p6702_p7 = pnand %p6701_p6, %p6695_p3 }
   0xf   :  { %6705 = shalt.err (!%p6702_p7)
}
  0x10   :  { %s6733_s11 = smov 1024   ;;  %s6734_s12 = smov 64  }
  0x11   :  { %27 = dma.hbm_to_vmem [thread:$0]  %s8348_s1, 16384, %s22_s25, [#allocation6], %s6733_s11, %s6733_s11, %s6734_s12  }
  0x12   :  { %s6735_s15 = smov [#allocation7]   ;;  %s6706_s19 = scalar_lea.hbm %s8349_s2, 32768 }
  0x13   :  { %s33_s16 = sshll.u32 %s6735_s15, 4  ;;  %p6707_p8 = scmp.ne.s32.totalorder %s8349_s2, %s6706_s19  ;;  %s34_s16 = int_to_ptr.vmem [resolvable:$true] %s33_s16 }
  0x14   :  { %p6710_p9 = scmp.lt.u32.totalorder %s6706_s19, %s8349_s2 }
  0x16   :  { %p6712_p10 = pnand %p6710_p9, %p6707_p8 }
  0x18   :  { %6715 = shalt.err (!%p6712_p10)
}
  0x19   :  { %s6716_s24 = scalar_lea.vmem %s34_s16, 32768  ;;  %p6721_p12 = scmp.lt.s32.totalorder %s34_s16, %s34_s16 }
  0x1a   :  { %p6717_p11 = scmp.ne.s32.totalorder %s34_s16, %s6716_s24  ;;  %p6722_p13 = scmp.lt.s32.totalorder %s6716_s24, %s6716_s24 }
  0x1c   :  { %p6723_p0 = por %p6722_p13, %p6721_p12 }
  0x1e   :  { %p6724_p1 = pnand %p6723_p0, %p6717_p11 }
  0x20   :  { %6727 = shalt.err (!%p6724_p1)
}
  0x21   :  { %39 = dma.hbm_to_vmem [thread:$0]  %s8349_s2, 32768, %s34_s16, [#allocation8], %s6733_s11, %s6733_s11, %s6734_s12  }
  0x22   :  { %6728 = dma.done.wait [#allocation6], 16384  }
  0x23   :  { %6729 = vsyncadd [#allocation6], 4294950912 }
  0x24   :  { %6730 = dma.done.wait [#allocation8], 32768  }
  0x25   :  { %6731 = vsyncadd [#allocation8], 4294934528  ;;  %v8355_v0 = vmov 0.0   ;;  %v57_v1 = vld [vmem:[#allocation5 + $0x8] sm:$0xff]  ;;  %v56_v6 = vld [vmem:[#allocation5] sm:$0xff]  ;;  %vm4017_vm0 = vcmask 64512  }
  0x26   :  { %290 = vmatprep.mubr.f32.mxu1 %v8355_v0  ;;  %444 = vmatprep.mubr.f32.mxu0 %v8355_v0  ;;  %v65_v2 = vld [vmem:[#allocation5 + $0x48] sm:$0xff]  ;;  %v64_v7 = vld [vmem:[#allocation5 + $0x40] sm:$0xff] }
  0x27   :  { %v61_v3 = vld [vmem:[#allocation5 + $0x28] sm:$0xff]  ;;  %v4181_v4 = vpack.c.bf16 %v65_v2, %v57_v1  ;;  %v4183_v9 = vpack.c.bf16 %v64_v7, %v56_v6  ;;  %v60_v10 = vld [vmem:[#allocation5 + $0x20] sm:$0xff] }
  0x28   :  { %v69_v5 = vld [vmem:[#allocation5 + $0x68] sm:$0xff]  ;;  %v68_v11 = vld [vmem:[#allocation5 + $0x60] sm:$0xff] }
  0x29   :  { %v4245_v8 = vpack.c.bf16 %v69_v5, %v61_v3  ;;  %v73_v12 = vld [vmem:[#allocation5 + $0x88] sm:$0xff]  ;;  %4182 = vmatprep.subr.bf16.mxu1 %v4181_v4  ;;  %v4247_v13 = vpack.c.bf16 %v68_v11, %v60_v10  ;;  %v72_v19 = vld [vmem:[#allocation5 + $0x80] sm:$0xff] }
  0x2a   :  { %v81_v14 = vld [vmem:[#allocation5 + $0xc8] sm:$0xff]  ;;  %4184 = vmatpush1.bf16.msra.mxu1 %v4183_v9  ;;  %v80_v20 = vld [vmem:[#allocation5 + $0xc0] sm:$0xff] }
  0x2b   :  { %v77_v15 = vld [vmem:[#allocation5 + $0xa8] sm:$0xff]  ;;  %4246 = vmatprep.subr.bf16.mxu0 %v4245_v8  ;;  %v4185_v17 = vpack.c.bf16 %v81_v14, %v73_v12  ;;  %v76_v21 = vld [vmem:[#allocation5 + $0xa0] sm:$0xff]  ;;  %v4187_v22 = vpack.c.bf16 %v80_v20, %v72_v19 }
  0x2c   :  { %v85_v16 = vld [vmem:[#allocation5 + $0xe8] sm:$0xff]  ;;  %4248 = vmatpush1.bf16.msra.mxu0 %v4247_v13  ;;  %v84_v23 = vld [vmem:[#allocation5 + $0xe0] sm:$0xff] }
  0x2d   :  { %v4249_v18 = vpack.c.bf16 %v85_v16, %v77_v15  ;;  %v89_v24 = vld [vmem:[#allocation5 + $0x108] sm:$0xff]  ;;  %4186 = vmatprep.subr.bf16.mxu1 %v4185_v17  ;;  %v4251_v26 = vpack.c.bf16 %v84_v23, %v76_v21  ;;  %v88_v30 = vld [vmem:[#allocation5 + $0x100] sm:$0xff] }
  0x2e   :  { %v97_v25 = vld [vmem:[#allocation5 + $0x148] sm:$0xff]  ;;  %v96_v32 = vld [vmem:[#allocation5 + $0x140] sm:$0xff]  ;;  %4188 = vmatpush1.bf16.msra.mxu1 %v4187_v22 }
  0x2f   :  { %4250 = vmatprep.subr.bf16.mxu0 %v4249_v18  ;;  %v4189_v27 = vpack.c.bf16 %v97_v25, %v89_v24  ;;  %v93_v28 = vld [vmem:[#allocation5 + $0x128] sm:$0xff]  ;;  %v92_v33 = vld [vmem:[#allocation5 + $0x120] sm:$0xff]  ;;  %v4191_v35 = vpack.c.bf16 %v96_v32, %v88_v30  ;;  %v59_v32 = vld [vmem:[#allocation5 + $0x18] sm:$0xff] }
  0x30   :  { %v101_v29 = vld [vmem:[#allocation5 + $0x168] sm:$0xff]  ;;  %v100_v34 = vld [vmem:[#allocation5 + $0x160] sm:$0xff]  ;;  %4252 = vmatpush1.bf16.msra.mxu0 %v4251_v26 }
  0x31   :  { %v4253_v31 = vpack.c.bf16 %v101_v29, %v93_v28  ;;  %v105_v36 = vld [vmem:[#allocation5 + $0x188] sm:$0xff]  ;;  %4190 = vmatprep.subr.bf16.mxu1 %v4189_v27  ;;  %v4255_v39 = vpack.c.bf16 %v100_v34, %v92_v33  ;;  %v104_v42 = vld [vmem:[#allocation5 + $0x180] sm:$0xff]  ;;  %v67_v33 = vld [vmem:[#allocation5 + $0x58] sm:$0xff] }
  0x32   :  { %v113_v37 = vld [vmem:[#allocation5 + $0x1c8] sm:$0xff]  ;;  %v112_v43 = vld [vmem:[#allocation5 + $0x1c0] sm:$0xff]  ;;  %4192 = vmatpush1.bf16.msra.mxu1 %v4191_v35 }
  0x33   :  { %v109_v38 = vld [vmem:[#allocation5 + $0x1a8] sm:$0xff]  ;;  %v4193_v40 = vpack.c.bf16 %v113_v37, %v105_v36  ;;  %4254 = vmatprep.subr.bf16.mxu0 %v4253_v31  ;;  %v108_v45 = vld [vmem:[#allocation5 + $0x1a0] sm:$0xff]  ;;  %v4195_v51 = vpack.c.bf16 %v112_v43, %v104_v42 }
  0x34   :  { %v117_v41 = vld [vmem:[#allocation5 + $0x1e8] sm:$0xff]  ;;  %v116_v46 = vld [vmem:[#allocation5 + $0x1e0] sm:$0xff]  ;;  %4256 = vmatpush1.bf16.msra.mxu0 %v4255_v39  ;;  %v58_v39 = vld [vmem:[#allocation5 + $0x10] sm:$0xff] }
  0x35   :  { %v4257_v44 = vpack.c.bf16 %v117_v41, %v109_v38  ;;  %v121_v47 = vld [vmem:[#allocation5 + $0x208] sm:$0xff]  ;;  %4194 = vmatprep.subr.bf16.mxu1 %v4193_v40  ;;  %v4259_v52 = vpack.c.bf16 %v116_v46, %v108_v45  ;;  %v120_v54 = vld [vmem:[#allocation5 + $0x200] sm:$0xff]  ;;  %v4213_v38 = vpack.c.bf16 %v67_v33, %v59_v32  ;;  %v66_v40 = vld [vmem:[#allocation5 + $0x50] sm:$0xff] }
  0x36   :  { %v129_v48 = vld [vmem:[#allocation5 + $0x248] sm:$0xff]  ;;  %v128_v55 = vld [vmem:[#allocation5 + $0x240] sm:$0xff]  ;;  %4196 = vmatpush1.bf16.msra.mxu1 %v4195_v51  ;;  %v83_v45 = vld [vmem:[#allocation5 + $0xd8] sm:$0xff] }
  0x37   :  { %v125_v49 = vld [vmem:[#allocation5 + $0x228] sm:$0xff]  ;;  %v4197_v53 = vpack.c.bf16 %v129_v48, %v121_v47  ;;  %v124_v56 = vld [vmem:[#allocation5 + $0x220] sm:$0xff]  ;;  %4258 = vmatprep.subr.bf16.mxu0 %v4257_v44  ;;  %v4199_v63 = vpack.c.bf16 %v128_v55, %v120_v54  ;;  %v75_v44 = vld [vmem:[#allocation5 + $0x98] sm:$0xff] }
  0x38   :  { %v133_v50 = vld [vmem:[#allocation5 + $0x268] sm:$0xff]  ;;  %v132_v58 = vld [vmem:[#allocation5 + $0x260] sm:$0xff]  ;;  %4260 = vmatpush1.bf16.msra.mxu0 %v4259_v52  ;;  %v4217_v51 = vpack.c.bf16 %v83_v45, %v75_v44  ;;  %v74_v52 = vld [vmem:[#allocation5 + $0x90] sm:$0xff] }
  0x39   :  { %v4261_v57 = vpack.c.bf16 %v133_v50, %v125_v49  ;;  %v137_v59 = vld [vmem:[#allocation5 + $0x288] sm:$0xff]  ;;  %4198 = vmatprep.subr.bf16.mxu1 %v4197_v53  ;;  %v4263_v1 = vpack.c.bf16 %v132_v58, %v124_v56  ;;  %v136_v3 = vld [vmem:[#allocation5 + $0x280] sm:$0xff]  ;;  %v4215_v49 = vpack.c.bf16 %v66_v40, %v58_v39  ;;  %v82_v53 = vld [vmem:[#allocation5 + $0xd0] sm:$0xff] }
  0x3a   :  { %v145_v60 = vld [vmem:[#allocation5 + $0x2c8] sm:$0xff]  ;;  %v144_v4 = vld [vmem:[#allocation5 + $0x2c0] sm:$0xff]  ;;  %4200 = vmatpush1.bf16.msra.mxu1 %v4199_v63  ;;  %v99_v58 = vld [vmem:[#allocation5 + $0x158] sm:$0xff] }
  0x3b   :  { %v141_v61 = vld [vmem:[#allocation5 + $0x2a8] sm:$0xff]  ;;  %v4201_v2 = vpack.c.bf16 %v145_v60, %v137_v59  ;;  %v140_v5 = vld [vmem:[#allocation5 + $0x2a0] sm:$0xff]  ;;  %4262 = vmatprep.subr.bf16.mxu0 %v4261_v57  ;;  %v4203_v12 = vpack.c.bf16 %v144_v4, %v136_v3  ;;  %v91_v57 = vld [vmem:[#allocation5 + $0x118] sm:$0xff] }
  0x3c   :  { %v149_v62 = vld [vmem:[#allocation5 + $0x2e8] sm:$0xff]  ;;  %v148_v7 = vld [vmem:[#allocation5 + $0x2e0] sm:$0xff]  ;;  %4264 = vmatpush1.bf16.msra.mxu0 %v4263_v1  ;;  %v4221_v63 = vpack.c.bf16 %v99_v58, %v91_v57  ;;  %v90_v1 = vld [vmem:[#allocation5 + $0x110] sm:$0xff] }
  0x3d   :  { %v4265_v6 = vpack.c.bf16 %v149_v62, %v141_v61  ;;  %v153_v8 = vld [vmem:[#allocation5 + $0x308] sm:$0xff]  ;;  %4202 = vmatprep.subr.bf16.mxu1 %v4201_v2  ;;  %v4267_v13 = vpack.c.bf16 %v148_v7, %v140_v5  ;;  %v152_v15 = vld [vmem:[#allocation5 + $0x300] sm:$0xff]  ;;  %v4219_v61 = vpack.c.bf16 %v82_v53, %v74_v52  ;;  %v98_v2 = vld [vmem:[#allocation5 + $0x150] sm:$0xff] }
  0x3e   :  { %v161_v9 = vld [vmem:[#allocation5 + $0x348] sm:$0xff]  ;;  %v160_v16 = vld [vmem:[#allocation5 + $0x340] sm:$0xff]  ;;  %4204 = vmatpush1.bf16.msra.mxu1 %v4203_v12  ;;  %v115_v7 = vld [vmem:[#allocation5 + $0x1d8] sm:$0xff] }
  0x3f   :  { %v157_v10 = vld [vmem:[#allocation5 + $0x328] sm:$0xff]  ;;  %v4205_v14 = vpack.c.bf16 %v161_v9, %v153_v8  ;;  %v156_v17 = vld [vmem:[#allocation5 + $0x320] sm:$0xff]  ;;  %4266 = vmatprep.subr.bf16.mxu0 %v4265_v6  ;;  %v4207_v24 = vpack.c.bf16 %v160_v16, %v152_v15  ;;  %v107_v6 = vld [vmem:[#allocation5 + $0x198] sm:$0xff] }
  0x40   :  { %v165_v11 = vld [vmem:[#allocation5 + $0x368] sm:$0xff]  ;;  %v164_v19 = vld [vmem:[#allocation5 + $0x360] sm:$0xff]  ;;  %4268 = vmatpush1.bf16.msra.mxu0 %v4267_v13  ;;  %v4225_v13 = vpack.c.bf16 %v115_v7, %v107_v6  ;;  %v114_v15 = vld [vmem:[#allocation5 + $0x1d0] sm:$0xff] }
  0x41   :  { %v4269_v18 = vpack.c.bf16 %v165_v11, %v157_v10  ;;  %v169_v20 = vld [vmem:[#allocation5 + $0x388] sm:$0xff]  ;;  %4206 = vmatprep.subr.bf16.mxu1 %v4205_v14  ;;  %v4271_v25 = vpack.c.bf16 %v164_v19, %v156_v17  ;;  %v168_v27 = vld [vmem:[#allocation5 + $0x380] sm:$0xff]  ;;  %v4223_v10 = vpack.c.bf16 %v98_v2, %v90_v1  ;;  %v106_v14 = vld [vmem:[#allocation5 + $0x190] sm:$0xff] }
  0x42   :  { %v177_v21 = vld [vmem:[#allocation5 + $0x3c8] sm:$0xff]  ;;  %v176_v28 = vld [vmem:[#allocation5 + $0x3c0] sm:$0xff]  ;;  %4208 = vmatpush1.bf16.msra.mxu1 %v4207_v24  ;;  %v123_v19 = vld [vmem:[#allocation5 + $0x218] sm:$0xff] }
  0x43   :  { %v173_v22 = vld [vmem:[#allocation5 + $0x3a8] sm:$0xff]  ;;  %v4209_v26 = vpack.c.bf16 %v177_v21, %v169_v20  ;;  %v172_v29 = vld [vmem:[#allocation5 + $0x3a0] sm:$0xff]  ;;  %4270 = vmatprep.subr.bf16.mxu0 %v4269_v18  ;;  %v4211_v36 = vpack.c.bf16 %v176_v28, %v168_v27  ;;  %v131_v20 = vld [vmem:[#allocation5 + $0x258] sm:$0xff] }
  0x44   :  { %v181_v23 = vld [vmem:[#allocation5 + $0x3e8] sm:$0xff]  ;;  %v180_v31 = vld [vmem:[#allocation5 + $0x3e0] sm:$0xff]  ;;  %4272 = vmatpush1.bf16.msra.mxu0 %v4271_v25  ;;  %v4229_v25 = vpack.c.bf16 %v131_v20, %v123_v19  ;;  %v130_v27 = vld [vmem:[#allocation5 + $0x250] sm:$0xff] }
  0x45   :  { %v4273_v30 = vpack.c.bf16 %v181_v23, %v173_v22  ;;  %v551_v34 = vld [vmem:[#allocation7 + $0x8] sm:$0xff]  ;;  %4210 = vmatprep.subr.bf16.mxu1 %v4209_v26  ;;  %v4275_v37 = vpack.c.bf16 %v180_v31, %v172_v29  ;;  %v550_v41 = vld [vmem:[#allocation7] sm:$0xff]  ;;  %v4227_v23 = vpack.c.bf16 %v114_v15, %v106_v14  ;;  %v122_v26 = vld [vmem:[#allocation5 + $0x210] sm:$0xff] }
  0x46   :  { %v559_v35 = vld [vmem:[#allocation7 + $0x48] sm:$0xff]  ;;  %v558_v43 = vld [vmem:[#allocation7 + $0x40] sm:$0xff]  ;;  %4212 = vmatpush1.bf16.msra.mxu1 %v4211_v36  ;;  %v139_v31 = vld [vmem:[#allocation5 + $0x298] sm:$0xff] }
  0x47   :  { %4274 = vmatprep.subr.bf16.mxu0 %v4273_v30  ;;  %v6803_v42 = vpack.c.bf16 %v559_v35, %v551_v34  ;;  %v567_v46 = vld [vmem:[#allocation7 + $0x88] sm:$0xff]  ;;  %v6808_v48 = vld [vmem:[%s8347_s0] sm:$0xff]  ;;  %4214 = vmatprep.subr.bf16.mxu1 %v4213_v38  ;;  %v6810_v50 = vpack.c.bf16 %v558_v43, %v550_v41  ;;  %v147_v32 = vld [vmem:[#allocation5 + $0x2d8] sm:$0xff]  ;;  %v4231_v35 = vpack.c.bf16 %v130_v27, %v122_v26 }
  0x48   :  { %v575_v47 = vld [vmem:[#allocation7 + $0xc8] sm:$0xff]  ;;  %4276 = vmatpush1.bf16.msra.mxu0 %v4275_v37  ;;  %v566_v54 = vld [vmem:[#allocation7 + $0x80] sm:$0xff]  ;;  %v4233_v37 = vpack.c.bf16 %v147_v32, %v139_v31  ;;  %v138_v38 = vld [vmem:[#allocation5 + $0x290] sm:$0xff] }
  0x49   :  { %8594 = vst [vmem:[#allocation11_spill] sm:$0xff] %v6803_v42  ;;  %8595 = vst [vmem:[#allocation12_spill] sm:$0xff] %v6810_v50  ;;  %4310 = vmatprep.subr.bf16.mxu0 %v6803_v42  ;;  %v6813_v55 = vpack.c.bf16 %v575_v47, %v567_v46  ;;  %v574_v56 = vld [vmem:[#allocation7 + $0xc0] sm:$0xff]  ;;  %291 = vmatmul.mubr.f32.vlgmr.msra.gmra.mrb[0].mxu1 %v6808_v48  ;;  %v583_v59 = vld [vmem:[#allocation7 + $0x108] sm:$0xff] }
  0x4a   :  { %v591_v60 = vld [vmem:[#allocation7 + $0x148] sm:$0xff]  ;;  %4216 = vmatpush1.bf16.msra.mxu1 %v4215_v49  ;;  %v6818_v62 = vpack.c.bf16 %v574_v56, %v566_v54  ;;  %v582_v3 = vld [vmem:[#allocation7 + $0x100] sm:$0xff]  ;;  %296 = vmatprep.mubr.f32.mxu1 %v8355_v0  ;;  %v146_v39 = vld [vmem:[#allocation5 + $0x2d0] sm:$0xff] }
  0x4b   :  { %8596 = vst [vmem:[#allocation13_spill] sm:$0xff] %v6813_v55  ;;  %445 = vmatmul.mubr.f32.vlgmr.msra.gmra.mrb[0].mxu0 %v6808_v48  ;;  %4218 = vmatprep.subr.bf16.mxu1 %v4217_v51  ;;  %v6821_v4 = vpack.c.bf16 %v591_v60, %v583_v59  ;;  %v590_v5 = vld [vmem:[#allocation7 + $0x140] sm:$0xff]  ;;  %v599_v8 = vld [vmem:[#allocation7 + $0x188] sm:$0xff]  ;;  %v155_v44 = vld [vmem:[#allocation5 + $0x318] sm:$0xff]  ;;  %v4235_v49 = vpack.c.bf16 %v146_v39, %v138_v38 }
  0x4c   :  { %4312 = vmatpush1.bf16.msra.mxu0 %v6810_v50  ;;  %8597 = vst [vmem:[#allocation14_spill] sm:$0xff] %v6818_v62  ;;  %v607_v9 = vld [vmem:[#allocation7 + $0x1c8] sm:$0xff]  ;;  %450 = vmatprep.mubr.f32.mxu0 %v8355_v0  ;;  %v6831_v12 = vpack.c.bf16 %v590_v5, %v582_v3  ;;  %v598_v16 = vld [vmem:[#allocation7 + $0x180] sm:$0xff]  ;;  %v163_v45 = vld [vmem:[#allocation5 + $0x358] sm:$0xff] }
  0x4d   :  { %4314 = vmatprep.subr.bf16.mxu0 %v6813_v55  ;;  %8598 = vst [vmem:[#allocation15_spill] sm:$0xff] %v6821_v4  ;;  %v6828_v11 = vld [vmem:[%s8347_s0 + $0x8] sm:$0xff]  ;;  %v6834_v17 = vpack.c.bf16 %v607_v9, %v599_v8  ;;  %v606_v18 = vld [vmem:[#allocation7 + $0x1c0] sm:$0xff]  ;;  %v4237_v52 = vpack.c.bf16 %v163_v45, %v155_v44  ;;  %v154_v53 = vld [vmem:[#allocation5 + $0x310] sm:$0xff] }
  0x4e   :  { %4220 = vmatpush1.bf16.msra.mxu1 %v4219_v61  ;;  %8599 = vst [vmem:[#allocation16_spill] sm:$0xff] %v6831_v12  ;;  %v615_v21 = vld [vmem:[#allocation7 + $0x208] sm:$0xff]  ;;  %v6841_v24 = vpack.c.bf16 %v606_v18, %v598_v16  ;;  %v614_v28 = vld [vmem:[#allocation7 + $0x200] sm:$0xff]  ;;  %v162_v54 = vld [vmem:[#allocation5 + $0x350] sm:$0xff] }
  0x4f   :  { %4222 = vmatprep.subr.bf16.mxu1 %v4221_v63  ;;  %8600 = vst [vmem:[#allocation17_spill] sm:$0xff] %v6834_v17  ;;  %297 = vmatmul.mubr.f32.gmra.mrb[2].mxu1 %v6828_v11  ;;  %v623_v22 = vld [vmem:[#allocation7 + $0x248] sm:$0xff]  ;;  %v622_v30 = vld [vmem:[#allocation7 + $0x240] sm:$0xff]  ;;  %v171_v59 = vld [vmem:[#allocation5 + $0x398] sm:$0xff]  ;;  %v4239_v1 = vpack.c.bf16 %v162_v54, %v154_v53 }
  0x50   :  { %4316 = vmatpush1.bf16.msra.mxu0 %v6818_v62  ;;  %367 = vmatprep.mubr.f32.mxu1 %v8355_v0  ;;  %8601 = vst [vmem:[#allocation18_spill] sm:$0xff] %v6841_v24  ;;  %v6844_v29 = vpack.c.bf16 %v623_v22, %v615_v21  ;;  %v631_v33 = vld [vmem:[#allocation7 + $0x288] sm:$0xff]  ;;  %v6847_v36 = vpack.c.bf16 %v622_v30, %v614_v28  ;;  %v630_v40 = vld [vmem:[#allocation7 + $0x280] sm:$0xff]  ;;  %v179_v60 = vld [vmem:[#allocation5 + $0x3d8] sm:$0xff] }
  0x51   :  { %4318 = vmatprep.subr.bf16.mxu0 %v6821_v4  ;;  %451 = vmatmul.mubr.f32.gmra.mrb[2].mxu0 %v6828_v11  ;;  %v639_v34 = vld [vmem:[#allocation7 + $0x2c8] sm:$0xff]  ;;  %v638_v43 = vld [vmem:[#allocation7 + $0x2c0] sm:$0xff]  ;;  %v4241_v3 = vpack.c.bf16 %v179_v60, %v171_v59  ;;  %v170_v5 = vld [vmem:[#allocation5 + $0x390] sm:$0xff] }
  0x52   :  { %4224 = vmatpush1.bf16.msra.mxu1 %v4223_v10  ;;  %878 = vmatprep.mubr.f32.mxu0 %v8355_v0  ;;  %8602 = vst [vmem:[#allocation19_spill] sm:$0xff] %v6844_v29  ;;  %8603 = vst [vmem:[#allocation20_spill] sm:$0xff] %v6847_v36  ;;  %v6850_v41 = vpack.c.bf16 %v639_v34, %v631_v33  ;;  %v647_v46 = vld [vmem:[#allocation7 + $0x308] sm:$0xff]  ;;  %v6853_v51 = vpack.c.bf16 %v638_v43, %v630_v40  ;;  %v646_v56 = vld [vmem:[#allocation7 + $0x300] sm:$0xff] }
  0x53   :  { %4226 = vmatprep.subr.bf16.mxu1 %v4225_v13  ;;  %v655_v47 = vld [vmem:[#allocation7 + $0x348] sm:$0xff]  ;;  %v654_v58 = vld [vmem:[#allocation7 + $0x340] sm:$0xff]  ;;  %v178_v6 = vld [vmem:[#allocation5 + $0x3d0] sm:$0xff] }
  0x54   :  { %4320 = vmatpush1.bf16.msra.mxu0 %v6831_v12  ;;  %8604 = vst [vmem:[#allocation21_spill] sm:$0xff] %v6850_v41  ;;  %8605 = vst [vmem:[#allocation22_spill] sm:$0xff] %v6853_v51  ;;  %v6856_v57 = vpack.c.bf16 %v655_v47, %v647_v46  ;;  %v663_v61 = vld [vmem:[#allocation7 + $0x388] sm:$0xff]  ;;  %v6859_v2 = vpack.c.bf16 %v654_v58, %v646_v56  ;;  %v662_v7 = vld [vmem:[#allocation7 + $0x380] sm:$0xff]  ;;  %v4243_v16 = vpack.c.bf16 %v178_v6, %v170_v5 }
  0x55   :  { %4322 = vmatprep.subr.bf16.mxu0 %v6834_v17  ;;  %v671_v63 = vld [vmem:[#allocation7 + $0x3c8] sm:$0xff]  ;;  %v670_v9 = vld [vmem:[#allocation7 + $0x3c0] sm:$0xff]  ;;  %v63_v10 = vld [vmem:[#allocation5 + $0x38] sm:$0xff] }
  0x56   :  { %4228 = vmatpush1.bf16.msra.mxu1 %v4227_v23  ;;  %8606 = vst [vmem:[#allocation23_spill] sm:$0xff] %v6856_v57  ;;  %8607 = vst [vmem:[#allocation24_spill] sm:$0xff] %v6859_v2  ;;  %v6862_v8 = vpack.c.bf16 %v671_v63, %v663_v61  ;;  %v71_v13 = vld [vmem:[#allocation5 + $0x78] sm:$0xff]  ;;  %v679_v14 = vld [vmem:[#allocation7 + $0x408] sm:$0xff]  ;;  %v6865_v18 = vpack.c.bf16 %v670_v9, %v662_v7 }
  0x57   :  { %4230 = vmatprep.subr.bf16.mxu1 %v4229_v25  ;;  %v687_v15 = vld [vmem:[#allocation7 + $0x448] sm:$0xff]  ;;  %v4277_v19 = vpack.c.bf16 %v71_v13, %v63_v10  ;;  %v62_v20 = vld [vmem:[#allocation5 + $0x30] sm:$0xff]  ;;  %v678_v22 = vld [vmem:[#allocation7 + $0x400] sm:$0xff] }
  0x58   :  { %4324 = vmatpush1.bf16.msra.mxu0 %v6841_v24  ;;  %8608 = vst [vmem:[#allocation25_spill] sm:$0xff] %v6862_v8  ;;  %8609 = vst [vmem:[#allocation26_spill] sm:$0xff] %v6865_v18  ;;  %v70_v21 = vld [vmem:[#allocation5 + $0x70] sm:$0xff]  ;;  %v6868_v23 = vpack.c.bf16 %v687_v15, %v679_v14  ;;  %v686_v25 = vld [vmem:[#allocation7 + $0x440] sm:$0xff] }
  0x59   :  { %4326 = vmatprep.subr.bf16.mxu0 %v6844_v29  ;;  %v79_v26 = vld [vmem:[#allocation5 + $0xb8] sm:$0xff]  ;;  %v695_v28 = vld [vmem:[#allocation7 + $0x488] sm:$0xff]  ;;  %v4279_v31 = vpack.c.bf16 %v70_v21, %v62_v20  ;;  %v6871_v32 = vpack.c.bf16 %v686_v25, %v678_v22  ;;  %v78_v34 = vld [vmem:[#allocation5 + $0xb0] sm:$0xff] }
  0x5a   :  { %4232 = vmatpush1.bf16.msra.mxu1 %v4231_v35  ;;  %8610 = vst [vmem:[#allocation27_spill] sm:$0xff] %v6868_v23  ;;  %v87_v27 = vld [vmem:[#allocation5 + $0xf8] sm:$0xff]  ;;  %v703_v30 = vld [vmem:[#allocation7 + $0x4c8] sm:$0xff]  ;;  %v86_v35 = vld [vmem:[#allocation5 + $0xf0] sm:$0xff] }
  0x5b   :  { %4234 = vmatprep.subr.bf16.mxu1 %v4233_v37  ;;  %8611 = vst [vmem:[#allocation28_spill] sm:$0xff] %v6871_v32  ;;  %v4281_v33 = vpack.c.bf16 %v87_v27, %v79_v26  ;;  %v694_v37 = vld [vmem:[#allocation7 + $0x480] sm:$0xff]  ;;  %v6874_v38 = vpack.c.bf16 %v703_v30, %v695_v28  ;;  %v95_v40 = vld [vmem:[#allocation5 + $0x138] sm:$0xff]  ;;  %v711_v44 = vld [vmem:[#allocation7 + $0x508] sm:$0xff]  ;;  %v4283_v46 = vpack.c.bf16 %v86_v35, %v78_v34 }
  0x5c   :  { %4328 = vmatpush1.bf16.msra.mxu0 %v6847_v36  ;;  %v702_v39 = vld [vmem:[#allocation7 + $0x4c0] sm:$0xff]  ;;  %v103_v43 = vld [vmem:[#allocation5 + $0x178] sm:$0xff]  ;;  %v719_v45 = vld [vmem:[#allocation7 + $0x548] sm:$0xff] }
  0x5d   :  { %4330 = vmatprep.subr.bf16.mxu0 %v6850_v41  ;;  %8612 = vst [vmem:[#allocation29_spill] sm:$0xff] %v6874_v38  ;;  %v6879_v47 = vpack.c.bf16 %v702_v39, %v694_v37  ;;  %v102_v53 = vld [vmem:[#allocation5 + $0x170] sm:$0xff]  ;;  %v710_v54 = vld [vmem:[#allocation7 + $0x500] sm:$0xff]  ;;  %v6882_v56 = vpack.c.bf16 %v719_v45, %v711_v44  ;;  %v111_v59 = vld [vmem:[#allocation5 + $0x1b8] sm:$0xff] }
  0x5e   :  { %4236 = vmatpush1.bf16.msra.mxu1 %v4235_v49  ;;  %v4285_v49 = vpack.c.bf16 %v103_v43, %v95_v40  ;;  %v718_v58 = vld [vmem:[#allocation7 + $0x540] sm:$0xff]  ;;  %v119_v60 = vld [vmem:[#allocation5 + $0x1f8] sm:$0xff]  ;;  %v727_v61 = vld [vmem:[#allocation7 + $0x588] sm:$0xff] }
  0x5f   :  { %4238 = vmatprep.subr.bf16.mxu1 %v4237_v52  ;;  %8613 = vst [vmem:[#allocation30_spill] sm:$0xff] %v6879_v47  ;;  %v94_v52 = vld [vmem:[#allocation5 + $0x130] sm:$0xff]  ;;  %8614 = vst [vmem:[#allocation31_spill] sm:$0xff] %v6882_v56  ;;  %v735_v63 = vld [vmem:[#allocation7 + $0x5c8] sm:$0xff]  ;;  %v4289_v5 = vpack.c.bf16 %v119_v60, %v111_v59 }
  0x60   :  { %4332 = vmatpush1.bf16.msra.mxu0 %v6853_v51  ;;  %v110_v6 = vld [vmem:[#allocation5 + $0x1b0] sm:$0xff]  ;;  %v726_v9 = vld [vmem:[#allocation7 + $0x580] sm:$0xff]  ;;  %v6890_v10 = vpack.c.bf16 %v735_v63, %v727_v61  ;;  %v127_v14 = vld [vmem:[#allocation5 + $0x238] sm:$0xff] }
  0x61   :  { %4334 = vmatprep.subr.bf16.mxu0 %v6856_v57  ;;  %v118_v7 = vld [vmem:[#allocation5 + $0x1f0] sm:$0xff]  ;;  %v734_v13 = vld [vmem:[#allocation7 + $0x5c0] sm:$0xff]  ;;  %v135_v15 = vld [vmem:[#allocation5 + $0x278] sm:$0xff] }
  0x62   :  { %4240 = vmatpush1.bf16.msra.mxu1 %v4239_v1  ;;  %v4287_v1 = vpack.c.bf16 %v102_v53, %v94_v52  ;;  %8616 = vst [vmem:[#allocation33_spill] sm:$0xff] %v6890_v10  ;;  %v4291_v20 = vpack.c.bf16 %v118_v7, %v110_v6  ;;  %v6893_v21 = vpack.c.bf16 %v734_v13, %v726_v9  ;;  %v126_v25 = vld [vmem:[#allocation5 + $0x230] sm:$0xff]  ;;  %v742_v27 = vld [vmem:[#allocation7 + $0x600] sm:$0xff]  ;;  %v759_v34 = vld [vmem:[#allocation7 + $0x688] sm:$0xff] }
  0x63   :  { %4242 = vmatprep.subr.bf16.mxu1 %v4241_v3  ;;  %v6887_v3 = vpack.c.bf16 %v718_v58, %v710_v54  ;;  %v4293_v22 = vpack.c.bf16 %v135_v15, %v127_v14  ;;  %v134_v26 = vld [vmem:[#allocation5 + $0x270] sm:$0xff]  ;;  %v750_v30 = vld [vmem:[#allocation7 + $0x640] sm:$0xff]  ;;  %v767_v35 = vld [vmem:[#allocation7 + $0x6c8] sm:$0xff] }
  0x64   :  { %4336 = vmatpush1.bf16.msra.mxu0 %v6859_v2  ;;  %8617 = vst [vmem:[#allocation34_spill] sm:$0xff] %v6893_v21  ;;  %v4295_v37 = vpack.c.bf16 %v134_v26, %v126_v25  ;;  %v6899_v39 = vpack.c.bf16 %v750_v30, %v742_v27  ;;  %v142_v43 = vld [vmem:[#allocation5 + $0x2b0] sm:$0xff]  ;;  %v758_v45 = vld [vmem:[#allocation7 + $0x680] sm:$0xff]  ;;  %v159_v52 = vld [vmem:[#allocation5 + $0x338] sm:$0xff] }
  0x65   :  { %4338 = vmatprep.subr.bf16.mxu0 %v6862_v8  ;;  %8615 = vst [vmem:[#allocation32_spill] sm:$0xff] %v6887_v3  ;;  %v150_v44 = vld [vmem:[#allocation5 + $0x2f0] sm:$0xff]  ;;  %v167_v53 = vld [vmem:[#allocation5 + $0x378] sm:$0xff]  ;;  %v775_v54 = vld [vmem:[#allocation7 + $0x708] sm:$0xff] }
  0x66   :  { %4244 = vmatpush1.bf16.msra.mxu1 %v4243_v16  ;;  %v743_v16 = vld [vmem:[#allocation7 + $0x608] sm:$0xff]  ;;  %8619 = vst [vmem:[#allocation36_spill] sm:$0xff] %v6899_v39  ;;  %v4299_v59 = vpack.c.bf16 %v150_v44, %v142_v43  ;;  %v4301_v61 = vpack.c.bf16 %v167_v53, %v159_v52  ;;  %v158_v63 = vld [vmem:[#allocation5 + $0x330] sm:$0xff]  ;;  %v782_v7 = vld [vmem:[#allocation7 + $0x740] sm:$0xff] }
  0x67   :  { %4278 = vmatprep.subr.bf16.mxu1 %v4277_v19  ;;  %v751_v19 = vld [vmem:[#allocation7 + $0x648] sm:$0xff]  ;;  %v175_v9 = vld [vmem:[#allocation5 + $0x3b8] sm:$0xff]  ;;  %v182_v25 = vld [vmem:[#allocation5 + $0x3f0] sm:$0xff] }
  0x68   :  { %4340 = vmatpush1.bf16.msra.mxu0 %v6865_v18  ;;  %v6896_v28 = vpack.c.bf16 %v751_v19, %v743_v16  ;;  %v783_v58 = vld [vmem:[#allocation7 + $0x748] sm:$0xff]  ;;  %v183_v13 = vld [vmem:[#allocation5 + $0x3f8] sm:$0xff]  ;;  %v790_v26 = vld [vmem:[#allocation7 + $0x780] sm:$0xff] }
  0x69   :  { %4342 = vmatprep.subr.bf16.mxu0 %v6868_v23  ;;  %368 = vmatmul.mubr.f32.vlgmr.msra.gmra.mrb[4].mxu1 %v6808_v48  ;;  %v6908_v6 = vpack.c.bf16 %v783_v58, %v775_v54  ;;  %v791_v14 = vld [vmem:[#allocation7 + $0x788] sm:$0xff]  ;;  %v798_v30 = vld [vmem:[#allocation7 + $0x7c0] sm:$0xff]  ;;  %v552_v44 = vld [vmem:[#allocation7 + $0x10] sm:$0xff] }
  0x6a   :  { %4280 = vmatpush1.bf16.msra.mxu1 %v4279_v31  ;;  %373 = vmatprep.mubr.f32.mxu1 %v8355_v0  ;;  %8618 = vst [vmem:[#allocation35_spill] sm:$0xff] %v6896_v28  ;;  %v143_v31 = vld [vmem:[#allocation5 + $0x2b8] sm:$0xff]  ;;  %v799_v15 = vld [vmem:[#allocation7 + $0x7c8] sm:$0xff]  ;;  %v562_v53 = vld [vmem:[#allocation7 + $0x60] sm:$0xff] }
  0x6b   :  { %4282 = vmatprep.subr.bf16.mxu1 %v4281_v33  ;;  %v151_v33 = vld [vmem:[#allocation5 + $0x2f8] sm:$0xff]  ;;  %8622 = vst [vmem:[#allocation39_spill] sm:$0xff] %v6908_v6  ;;  %v6914_v27 = vpack.c.bf16 %v799_v15, %v791_v14  ;;  %v578_v15 = vld [vmem:[#allocation7 + $0xe0] sm:$0xff] }
  0x6c   :  { %4344 = vmatpush1.bf16.msra.mxu0 %v6871_v32  ;;  %v4297_v40 = vpack.c.bf16 %v151_v33, %v143_v31  ;;  %v553_v31 = vld [vmem:[#allocation7 + $0x18] sm:$0xff] }
  0x6d   :  { %4346 = vmatprep.subr.bf16.mxu0 %v6874_v38  ;;  %374 = vmatmul.mubr.f32.gmra.mrb[6].mxu1 %v6828_v11  ;;  %8624 = vst [vmem:[#allocation41_spill] sm:$0xff] %v6914_v27  ;;  %v561_v33 = vld [vmem:[#allocation7 + $0x58] sm:$0xff] }
  0x6e   :  { %4284 = vmatpush1.bf16.msra.mxu1 %v4283_v46  ;;  %521 = vmatprep.mubr.f32.mxu1 %v8355_v0  ;;  %v6902_v46 = vpack.c.bf16 %v767_v35, %v759_v34  ;;  %v555_v34 = vld [vmem:[#allocation7 + $0x28] sm:$0xff]  ;;  %v6919_v43 = vpack.c.bf16 %v561_v33, %v553_v31  ;;  %v569_v54 = vld [vmem:[#allocation7 + $0x98] sm:$0xff]  ;;  %v584_v33 = vld [vmem:[#allocation7 + $0x110] sm:$0xff] }
  0x6f   :  { %4286 = vmatprep.subr.bf16.mxu1 %v4285_v49  ;;  %v766_v49 = vld [vmem:[#allocation7 + $0x6c0] sm:$0xff]  ;;  %v563_v35 = vld [vmem:[#allocation7 + $0x68] sm:$0xff]  ;;  %v577_v58 = vld [vmem:[#allocation7 + $0xd8] sm:$0xff] }
  0x70   :  { %4348 = vmatpush1.bf16.msra.mxu0 %v6879_v47  ;;  %8620 = vst [vmem:[#allocation37_spill] sm:$0xff] %v6902_v46  ;;  %v6905_v60 = vpack.c.bf16 %v766_v49, %v758_v45  ;;  %8626 = vst [vmem:[#allocation43_spill] sm:$0xff] %v6919_v43  ;;  %v560_v45 = vld [vmem:[#allocation7 + $0x50] sm:$0xff]  ;;  %v554_v49 = vld [vmem:[#allocation7 + $0x20] sm:$0xff]  ;;  %v6922_v52 = vpack.c.bf16 %v563_v35, %v555_v34 }
  0x71   :  { %4350 = vmatprep.subr.bf16.mxu0 %v6882_v56  ;;  %v592_v34 = vld [vmem:[#allocation7 + $0x150] sm:$0xff]  ;;  %v586_v35 = vld [vmem:[#allocation7 + $0x120] sm:$0xff] }
  0x72   :  { %4288 = vmatpush1.bf16.msra.mxu1 %v4287_v1  ;;  %8621 = vst [vmem:[#allocation38_spill] sm:$0xff] %v6905_v60  ;;  %v166_v1 = vld [vmem:[#allocation5 + $0x370] sm:$0xff]  ;;  %8627 = vst [vmem:[#allocation44_spill] sm:$0xff] %v6922_v52 }
  0x73   :  { %4290 = vmatprep.subr.bf16.mxu1 %v4289_v5  ;;  %v774_v5 = vld [vmem:[#allocation7 + $0x700] sm:$0xff]  ;;  %v4303_v16 = vpack.c.bf16 %v166_v1, %v158_v63  ;;  %v6924_v63 = vpack.c.bf16 %v560_v45, %v552_v44  ;;  %v6928_v1 = vpack.c.bf16 %v562_v53, %v554_v49  ;;  %v601_v44 = vld [vmem:[#allocation7 + $0x198] sm:$0xff]  ;;  %v603_v49 = vld [vmem:[#allocation7 + $0x1a8] sm:$0xff] }
  0x74   :  { %4352 = vmatpush1.bf16.msra.mxu0 %v6887_v3  ;;  %v6911_v19 = vpack.c.bf16 %v782_v7, %v774_v5  ;;  %v6930_v5 = vpack.c.bf16 %v577_v58, %v569_v54  ;;  %v568_v7 = vld [vmem:[#allocation7 + $0x90] sm:$0xff]  ;;  %v609_v45 = vld [vmem:[#allocation7 + $0x1d8] sm:$0xff]  ;;  %v611_v53 = vld [vmem:[#allocation7 + $0x1e8] sm:$0xff]  ;;  %v6953_v54 = vpack.c.bf16 %v592_v34, %v584_v33 }
  0x75   :  { %4354 = vmatprep.subr.bf16.mxu0 %v6890_v10  ;;  %8628 = vst [vmem:[#allocation45_spill] sm:$0xff] %v6924_v63  ;;  %8629 = vst [vmem:[#allocation46_spill] sm:$0xff] %v6928_v1 }
  0x76   :  { %4292 = vmatpush1.bf16.msra.mxu1 %v4291_v20  ;;  %8623 = vst [vmem:[#allocation40_spill] sm:$0xff] %v6911_v19  ;;  %v4305_v20 = vpack.c.bf16 %v183_v13, %v175_v9  ;;  %8630 = vst [vmem:[#allocation47_spill] sm:$0xff] %v6930_v5  ;;  %v576_v9 = vld [vmem:[#allocation7 + $0xd0] sm:$0xff]  ;;  %v570_v13 = vld [vmem:[#allocation7 + $0xa0] sm:$0xff] }
  0x77   :  { %4294 = vmatprep.subr.bf16.mxu1 %v4293_v22  ;;  %v174_v22 = vld [vmem:[#allocation5 + $0x3b0] sm:$0xff]  ;;  %8636 = vst [vmem:[#allocation53_spill] sm:$0xff] %v6953_v54 }
  0x78   :  { %4356 = vmatpush1.bf16.msra.mxu0 %v6893_v21 }
  0x79   :  { %4358 = vmatprep.subr.bf16.mxu0 %v6896_v28 }
  0x7a   :  { %4296 = vmatpush1.bf16.msra.mxu1 %v4295_v37  ;;  %v4307_v37 = vpack.c.bf16 %v182_v25, %v174_v22  ;;  %v587_v22 = vld [vmem:[#allocation7 + $0x128] sm:$0xff] }
  0x7b   :  { %4298 = vmatprep.subr.bf16.mxu1 %v4297_v40  ;;  %v6917_v40 = vpack.c.bf16 %v798_v30, %v790_v26  ;;  %v595_v25 = vld [vmem:[#allocation7 + $0x168] sm:$0xff]  ;;  %v6938_v26 = vpack.c.bf16 %v576_v9, %v568_v7  ;;  %v6942_v30 = vpack.c.bf16 %v578_v15, %v570_v13  ;;  %v608_v7 = vld [vmem:[#allocation7 + $0x1d0] sm:$0xff]  ;;  %v602_v9 = vld [vmem:[#allocation7 + $0x1a0] sm:$0xff] }
  0x7c   :  { %4360 = vmatpush1.bf16.msra.mxu0 %v6899_v39  ;;  %v610_v13 = vld [vmem:[#allocation7 + $0x1e0] sm:$0xff]  ;;  %v617_v15 = vld [vmem:[#allocation7 + $0x218] sm:$0xff] }
  0x7d   :  { %4362 = vmatprep.subr.bf16.mxu0 %v6902_v46  ;;  %8625 = vst [vmem:[#allocation42_spill] sm:$0xff] %v6917_v40  ;;  %8632 = vst [vmem:[#allocation49_spill] sm:$0xff] %v6938_v26  ;;  %v6970_v33 = vpack.c.bf16 %v610_v13, %v602_v9 }
  0x7e   :  { %4300 = vmatpush1.bf16.msra.mxu1 %v4299_v59  ;;  %v571_v59 = vld [vmem:[#allocation7 + $0xa8] sm:$0xff]  ;;  %8633 = vst [vmem:[#allocation50_spill] sm:$0xff] %v6942_v30 }
  0x7f   :  { %4302 = vmatprep.subr.bf16.mxu1 %v4301_v61  ;;  %v579_v61 = vld [vmem:[#allocation7 + $0xe8] sm:$0xff]  ;;  %8641 = vst [vmem:[#allocation58_spill] sm:$0xff] %v6970_v33 }
  0x80   :  { %4364 = vmatpush1.bf16.msra.mxu0 %v6905_v60  ;;  %v6933_v14 = vpack.c.bf16 %v579_v61, %v571_v59  ;;  %v6960_v59 = vpack.c.bf16 %v609_v45, %v601_v44  ;;  %v600_v61 = vld [vmem:[#allocation7 + $0x190] sm:$0xff]  ;;  %v618_v44 = vld [vmem:[#allocation7 + $0x220] sm:$0xff] }
  0x81   :  { %4366 = vmatprep.subr.bf16.mxu0 %v6908_v6 }
  0x82   :  { %4304 = vmatpush1.bf16.msra.mxu1 %v4303_v16  ;;  %8631 = vst [vmem:[#allocation48_spill] sm:$0xff] %v6933_v14  ;;  %v585_v16 = vld [vmem:[#allocation7 + $0x118] sm:$0xff]  ;;  %8638 = vst [vmem:[#allocation55_spill] sm:$0xff] %v6960_v59 }
  0x83   :  { %4306 = vmatprep.subr.bf16.mxu1 %v4305_v20  ;;  %v593_v20 = vld [vmem:[#allocation7 + $0x158] sm:$0xff] }
  0x84   :  { %4368 = vmatpush1.bf16.msra.mxu0 %v6911_v19  ;;  %v6944_v31 = vpack.c.bf16 %v593_v20, %v585_v16  ;;  %v625_v16 = vld [vmem:[#allocation7 + $0x258] sm:$0xff]  ;;  %v619_v20 = vld [vmem:[#allocation7 + $0x228] sm:$0xff] }
  0x85   :  { %4370 = vmatprep.subr.bf16.mxu0 %v6914_v27  ;;  %v6972_v34 = vpack.c.bf16 %v625_v16, %v617_v15  ;;  %v632_v15 = vld [vmem:[#allocation7 + $0x290] sm:$0xff] }
  0x86   :  { %4308 = vmatpush1.bf16.msra.mxu1 %v4307_v37  ;;  %8634 = vst [vmem:[#allocation51_spill] sm:$0xff] %v6944_v31  ;;  %v594_v37 = vld [vmem:[#allocation7 + $0x160] sm:$0xff]  ;;  %v640_v16 = vld [vmem:[#allocation7 + $0x2d0] sm:$0xff] }
  0x87   :  { %4374 = vmatprep.subr.bf16.mxu1 %v6919_v43  ;;  %v6958_v58 = vpack.c.bf16 %v594_v37, %v586_v35  ;;  %8642 = vst [vmem:[#allocation59_spill] sm:$0xff] %v6972_v34  ;;  %v616_v35 = vld [vmem:[#allocation7 + $0x210] sm:$0xff] }
  0x88   :  { %4372 = vmatpush1.bf16.msra.mxu0 %v6917_v40  ;;  %v624_v37 = vld [vmem:[#allocation7 + $0x250] sm:$0xff] }
  0x89   :  { %4438 = vmatprep.subr.bf16.mxu0 %v6922_v52  ;;  %522 = vmatmul.mubr.f32.vlgmr.msra.gmra.mrb[8].mxu1 %v6808_v48  ;;  %v6947_v48 = vpack.c.bf16 %v595_v25, %v587_v22  ;;  %8637 = vst [vmem:[#allocation54_spill] sm:$0xff] %v6958_v58  ;;  %v627_v22 = vld [vmem:[#allocation7 + $0x268] sm:$0xff]  ;;  %v6966_v25 = vpack.c.bf16 %v608_v7, %v600_v61 }
  0x8a   :  { %4376 = vmatpush1.bf16.msra.mxu1 %v6924_v63  ;;  %527 = vmatprep.mubr.f32.mxu1 %v8355_v0  ;;  %v6975_v45 = vpack.c.bf16 %v627_v22, %v619_v20  ;;  %v635_v61 = vld [vmem:[#allocation7 + $0x2a8] sm:$0xff]  ;;  %v634_v20 = vld [vmem:[#allocation7 + $0x2a0] sm:$0xff] }
  0x8b   :  { %879 = vmatmul.mubr.f32.vlgmr.msra.gmra.mrb[4].mxu0 %v8355_v0  ;;  %4378 = vmatprep.subr.bf16.mxu1 %v6930_v5  ;;  %8635 = vst [vmem:[#allocation52_spill] sm:$0xff] %v6947_v48  ;;  %8640 = vst [vmem:[#allocation57_spill] sm:$0xff] %v6966_v25  ;;  %v643_v7 = vld [vmem:[#allocation7 + $0x2e8] sm:$0xff] }
  0x8c   :  { %4440 = vmatpush1.bf16.msra.mxu0 %v6928_v1  ;;  %1020 = vmatprep.mubr.f32.mxu0 %v8355_v0  ;;  %8643 = vst [vmem:[#allocation60_spill] sm:$0xff] %v6975_v45  ;;  %v6987_v22 = vpack.c.bf16 %v643_v7, %v635_v61  ;;  %v650_v61 = vld [vmem:[#allocation7 + $0x320] sm:$0xff]  ;;  %v673_v1 = vld [vmem:[#allocation7 + $0x3d8] sm:$0xff] }
  0x8d   :  { %4442 = vmatprep.subr.bf16.mxu0 %v6933_v14  ;;  %528 = vmatmul.mubr.f32.gmra.mrb[10].mxu1 %v6828_v11  ;;  %v6963_v11 = vpack.c.bf16 %v611_v53, %v603_v49  ;;  %v626_v49 = vld [vmem:[#allocation7 + $0x260] sm:$0xff]  ;;  %v633_v53 = vld [vmem:[#allocation7 + $0x298] sm:$0xff] }
  0x8e   :  { %4380 = vmatpush1.bf16.msra.mxu1 %v6938_v26  ;;  %949 = vmatprep.mubr.f32.mxu1 %v8355_v0  ;;  %v641_v0 = vld [vmem:[#allocation7 + $0x2d8] sm:$0xff]  ;;  %v6982_v9 = vpack.c.bf16 %v626_v49, %v618_v44  ;;  %8647 = vst [vmem:[#allocation64_spill] sm:$0xff] %v6987_v22  ;;  %v648_v49 = vld [vmem:[#allocation7 + $0x310] sm:$0xff] }
  0x8f   :  { %4382 = vmatprep.subr.bf16.mxu1 %v6944_v31  ;;  %8639 = vst [vmem:[#allocation56_spill] sm:$0xff] %v6963_v11  ;;  %v6984_v13 = vpack.c.bf16 %v641_v0, %v633_v53  ;;  %v656_v53 = vld [vmem:[#allocation7 + $0x350] sm:$0xff]  ;;  %v665_v14 = vld [vmem:[#allocation7 + $0x398] sm:$0xff] }
  0x90   :  { %4444 = vmatpush1.bf16.msra.mxu0 %v6942_v30  ;;  %8645 = vst [vmem:[#allocation62_spill] sm:$0xff] %v6982_v9  ;;  %v657_v30 = vld [vmem:[#allocation7 + $0x358] sm:$0xff] }
  0x91   :  { %4446 = vmatprep.subr.bf16.mxu0 %v6947_v48  ;;  %8646 = vst [vmem:[#allocation63_spill] sm:$0xff] %v6984_v13  ;;  %v649_v48 = vld [vmem:[#allocation7 + $0x318] sm:$0xff] }
  0x92   :  { %4384 = vmatpush1.bf16.msra.mxu1 %v6953_v54  ;;  %v6996_v44 = vpack.c.bf16 %v657_v30, %v649_v48  ;;  %v7008_v48 = vpack.c.bf16 %v673_v1, %v665_v14 }
  0x93   :  { %4386 = vmatprep.subr.bf16.mxu1 %v6960_v59 }
  0x94   :  { %4448 = vmatpush1.bf16.msra.mxu0 %v6958_v58  ;;  %v6978_v58 = vpack.c.bf16 %v624_v37, %v616_v35  ;;  %v651_v35 = vld [vmem:[#allocation7 + $0x328] sm:$0xff]  ;;  %8650 = vst [vmem:[#allocation67_spill] sm:$0xff] %v6996_v44  ;;  %8654 = vst [vmem:[#allocation71_spill] sm:$0xff] %v7008_v48 }
  0x95   :  { %4450 = vmatprep.subr.bf16.mxu0 %v6963_v11  ;;  %v642_v11 = vld [vmem:[#allocation7 + $0x2e0] sm:$0xff]  ;;  %v659_v37 = vld [vmem:[#allocation7 + $0x368] sm:$0xff] }
  0x96   :  { %4388 = vmatpush1.bf16.msra.mxu1 %v6966_v25  ;;  %8644 = vst [vmem:[#allocation61_spill] sm:$0xff] %v6978_v58  ;;  %v6994_v0 = vpack.c.bf16 %v642_v11, %v634_v20  ;;  %v6999_v7 = vpack.c.bf16 %v659_v37, %v651_v35  ;;  %v664_v11 = vld [vmem:[#allocation7 + $0x390] sm:$0xff]  ;;  %v666_v35 = vld [vmem:[#allocation7 + $0x3a0] sm:$0xff] }
  0x97   :  { %4390 = vmatprep.subr.bf16.mxu1 %v6972_v34  ;;  %v672_v20 = vld [vmem:[#allocation7 + $0x3d0] sm:$0xff] }
  0x98   :  { %4452 = vmatpush1.bf16.msra.mxu0 %v6970_v33  ;;  %v6990_v33 = vpack.c.bf16 %v640_v16, %v632_v15  ;;  %8649 = vst [vmem:[#allocation66_spill] sm:$0xff] %v6994_v0  ;;  %8651 = vst [vmem:[#allocation68_spill] sm:$0xff] %v6999_v7  ;;  %v667_v15 = vld [vmem:[#allocation7 + $0x3a8] sm:$0xff] }
  0x99   :  { %4454 = vmatprep.subr.bf16.mxu0 %v6975_v45  ;;  %v658_v45 = vld [vmem:[#allocation7 + $0x360] sm:$0xff]  ;;  %v675_v16 = vld [vmem:[#allocation7 + $0x3e8] sm:$0xff] }
  0x9a   :  { %4392 = vmatpush1.bf16.msra.mxu1 %v6978_v58  ;;  %8648 = vst [vmem:[#allocation65_spill] sm:$0xff] %v6990_v33  ;;  %v7006_v30 = vpack.c.bf16 %v658_v45, %v650_v61  ;;  %v7011_v37 = vpack.c.bf16 %v675_v16, %v667_v15  ;;  %v680_v45 = vld [vmem:[#allocation7 + $0x410] sm:$0xff]  ;;  %v682_v15 = vld [vmem:[#allocation7 + $0x420] sm:$0xff] }
  0x9b   :  { %4394 = vmatprep.subr.bf16.mxu1 %v6984_v13  ;;  %v681_v13 = vld [vmem:[#allocation7 + $0x418] sm:$0xff]  ;;  %v688_v61 = vld [vmem:[#allocation7 + $0x450] sm:$0xff] }
  0x9c   :  { %4456 = vmatpush1.bf16.msra.mxu0 %v6982_v9  ;;  %v7002_v9 = vpack.c.bf16 %v656_v53, %v648_v49  ;;  %8653 = vst [vmem:[#allocation70_spill] sm:$0xff] %v7006_v30  ;;  %8655 = vst [vmem:[#allocation72_spill] sm:$0xff] %v7011_v37  ;;  %v683_v49 = vld [vmem:[#allocation7 + $0x428] sm:$0xff] }
  0x9d   :  { %4458 = vmatprep.subr.bf16.mxu0 %v6987_v22  ;;  %v674_v22 = vld [vmem:[#allocation7 + $0x3e0] sm:$0xff]  ;;  %v691_v53 = vld [vmem:[#allocation7 + $0x468] sm:$0xff] }
  0x9e   :  { %4396 = vmatpush1.bf16.msra.mxu1 %v6990_v33  ;;  %8652 = vst [vmem:[#allocation69_spill] sm:$0xff] %v7002_v9  ;;  %v689_v33 = vld [vmem:[#allocation7 + $0x458] sm:$0xff]  ;;  %v7018_v1 = vpack.c.bf16 %v674_v22, %v666_v35  ;;  %v7023_v16 = vpack.c.bf16 %v691_v53, %v683_v49  ;;  %v696_v22 = vld [vmem:[#allocation7 + $0x490] sm:$0xff]  ;;  %v698_v49 = vld [vmem:[#allocation7 + $0x4a0] sm:$0xff] }
  0x9f   :  { %4398 = vmatprep.subr.bf16.mxu1 %v6996_v44  ;;  %v7020_v14 = vpack.c.bf16 %v689_v33, %v681_v13  ;;  %v697_v44 = vld [vmem:[#allocation7 + $0x498] sm:$0xff]  ;;  %v704_v35 = vld [vmem:[#allocation7 + $0x4d0] sm:$0xff] }
  0xa0   :  { %4460 = vmatpush1.bf16.msra.mxu0 %v6994_v0  ;;  %v7014_v0 = vpack.c.bf16 %v672_v20, %v664_v11  ;;  %8657 = vst [vmem:[#allocation74_spill] sm:$0xff] %v7018_v1  ;;  %8659 = vst [vmem:[#allocation76_spill] sm:$0xff] %v7023_v16  ;;  %v699_v11 = vld [vmem:[#allocation7 + $0x4a8] sm:$0xff] }
  0xa1   :  { %4462 = vmatprep.subr.bf16.mxu0 %v6999_v7  ;;  %8658 = vst [vmem:[#allocation75_spill] sm:$0xff] %v7020_v14  ;;  %v690_v7 = vld [vmem:[#allocation7 + $0x460] sm:$0xff]  ;;  %v707_v20 = vld [vmem:[#allocation7 + $0x4e8] sm:$0xff] }
  0xa2   :  { %4400 = vmatpush1.bf16.msra.mxu1 %v7002_v9  ;;  %8656 = vst [vmem:[#allocation73_spill] sm:$0xff] %v7014_v0  ;;  %v705_v9 = vld [vmem:[#allocation7 + $0x4d8] sm:$0xff]  ;;  %v7030_v33 = vpack.c.bf16 %v690_v7, %v682_v15  ;;  %v7035_v53 = vpack.c.bf16 %v707_v20, %v699_v11  ;;  %v712_v7 = vld [vmem:[#allocation7 + $0x510] sm:$0xff]  ;;  %v714_v11 = vld [vmem:[#allocation7 + $0x520] sm:$0xff] }
  0xa3   :  { %4402 = vmatprep.subr.bf16.mxu1 %v7008_v48  ;;  %v7032_v13 = vpack.c.bf16 %v705_v9, %v697_v44  ;;  %v713_v48 = vld [vmem:[#allocation7 + $0x518] sm:$0xff]  ;;  %v720_v15 = vld [vmem:[#allocation7 + $0x550] sm:$0xff] }
  0xa4   :  { %4464 = vmatpush1.bf16.msra.mxu0 %v7006_v30  ;;  %v7026_v30 = vpack.c.bf16 %v688_v61, %v680_v45  ;;  %8661 = vst [vmem:[#allocation78_spill] sm:$0xff] %v7030_v33  ;;  %8663 = vst [vmem:[#allocation80_spill] sm:$0xff] %v7035_v53  ;;  %v715_v45 = vld [vmem:[#allocation7 + $0x528] sm:$0xff] }
  0xa5   :  { %4466 = vmatprep.subr.bf16.mxu0 %v7011_v37  ;;  %8662 = vst [vmem:[#allocation79_spill] sm:$0xff] %v7032_v13  ;;  %v706_v37 = vld [vmem:[#allocation7 + $0x4e0] sm:$0xff]  ;;  %v723_v61 = vld [vmem:[#allocation7 + $0x568] sm:$0xff] }
  0xa6   :  { %4404 = vmatpush1.bf16.msra.mxu1 %v7014_v0  ;;  %8660 = vst [vmem:[#allocation77_spill] sm:$0xff] %v7026_v30  ;;  %v721_v0 = vld [vmem:[#allocation7 + $0x558] sm:$0xff]  ;;  %v7042_v9 = vpack.c.bf16 %v706_v37, %v698_v49  ;;  %v7047_v20 = vpack.c.bf16 %v723_v61, %v715_v45  ;;  %v728_v37 = vld [vmem:[#allocation7 + $0x590] sm:$0xff]  ;;  %v730_v45 = vld [vmem:[#allocation7 + $0x5a0] sm:$0xff] }
  0xa7   :  { %4406 = vmatprep.subr.bf16.mxu1 %v7020_v14  ;;  %v7044_v44 = vpack.c.bf16 %v721_v0, %v713_v48  ;;  %v729_v14 = vld [vmem:[#allocation7 + $0x598] sm:$0xff]  ;;  %v736_v49 = vld [vmem:[#allocation7 + $0x5d0] sm:$0xff] }
  0xa8   :  { %4468 = vmatpush1.bf16.msra.mxu0 %v7018_v1  ;;  %v7038_v1 = vpack.c.bf16 %v704_v35, %v696_v22  ;;  %8665 = vst [vmem:[#allocation82_spill] sm:$0xff] %v7042_v9  ;;  %8667 = vst [vmem:[#allocation84_spill] sm:$0xff] %v7047_v20  ;;  %v731_v22 = vld [vmem:[#allocation7 + $0x5a8] sm:$0xff] }
  0xa9   :  { %4470 = vmatprep.subr.bf16.mxu0 %v7023_v16  ;;  %8666 = vst [vmem:[#allocation83_spill] sm:$0xff] %v7044_v44  ;;  %v722_v16 = vld [vmem:[#allocation7 + $0x560] sm:$0xff]  ;;  %v739_v35 = vld [vmem:[#allocation7 + $0x5e8] sm:$0xff] }
  0xaa   :  { %4408 = vmatpush1.bf16.msra.mxu1 %v7026_v30  ;;  %8664 = vst [vmem:[#allocation81_spill] sm:$0xff] %v7038_v1  ;;  %v737_v30 = vld [vmem:[#allocation7 + $0x5d8] sm:$0xff]  ;;  %v7054_v0 = vpack.c.bf16 %v722_v16, %v714_v11  ;;  %v7059_v61 = vpack.c.bf16 %v739_v35, %v731_v22  ;;  %v744_v16 = vld [vmem:[#allocation7 + $0x610] sm:$0xff]  ;;  %v746_v22 = vld [vmem:[#allocation7 + $0x620] sm:$0xff] }
  0xab   :  { %4410 = vmatprep.subr.bf16.mxu1 %v7032_v13  ;;  %v7056_v48 = vpack.c.bf16 %v737_v30, %v729_v14  ;;  %v745_v13 = vld [vmem:[#allocation7 + $0x618] sm:$0xff]  ;;  %v752_v11 = vld [vmem:[#allocation7 + $0x650] sm:$0xff] }
  0xac   :  { %4472 = vmatpush1.bf16.msra.mxu0 %v7030_v33  ;;  %v7050_v33 = vpack.c.bf16 %v720_v15, %v712_v7  ;;  %8669 = vst [vmem:[#allocation86_spill] sm:$0xff] %v7054_v0  ;;  %8671 = vst [vmem:[#allocation88_spill] sm:$0xff] %v7059_v61  ;;  %v747_v7 = vld [vmem:[#allocation7 + $0x628] sm:$0xff] }
  0xad   :  { %4474 = vmatprep.subr.bf16.mxu0 %v7035_v53  ;;  %8670 = vst [vmem:[#allocation87_spill] sm:$0xff] %v7056_v48  ;;  %v738_v53 = vld [vmem:[#allocation7 + $0x5e0] sm:$0xff]  ;;  %v755_v15 = vld [vmem:[#allocation7 + $0x668] sm:$0xff] }
  0xae   :  { %4412 = vmatpush1.bf16.msra.mxu1 %v7038_v1  ;;  %8668 = vst [vmem:[#allocation85_spill] sm:$0xff] %v7050_v33  ;;  %v753_v1 = vld [vmem:[#allocation7 + $0x658] sm:$0xff]  ;;  %v7066_v30 = vpack.c.bf16 %v738_v53, %v730_v45  ;;  %v7071_v35 = vpack.c.bf16 %v755_v15, %v747_v7  ;;  %v760_v53 = vld [vmem:[#allocation7 + $0x690] sm:$0xff]  ;;  %v762_v7 = vld [vmem:[#allocation7 + $0x6a0] sm:$0xff] }
  0xaf   :  { %4414 = vmatprep.subr.bf16.mxu1 %v7044_v44  ;;  %v7068_v14 = vpack.c.bf16 %v753_v1, %v745_v13  ;;  %v761_v44 = vld [vmem:[#allocation7 + $0x698] sm:$0xff]  ;;  %v768_v45 = vld [vmem:[#allocation7 + $0x6d0] sm:$0xff] }
  0xb0   :  { %4476 = vmatpush1.bf16.msra.mxu0 %v7042_v9  ;;  %v7062_v9 = vpack.c.bf16 %v736_v49, %v728_v37  ;;  %8673 = vst [vmem:[#allocation90_spill] sm:$0xff] %v7066_v30  ;;  %8675 = vst [vmem:[#allocation92_spill] sm:$0xff] %v7071_v35  ;;  %v763_v37 = vld [vmem:[#allocation7 + $0x6a8] sm:$0xff] }
  0xb1   :  { %4478 = vmatprep.subr.bf16.mxu0 %v7047_v20  ;;  %8674 = vst [vmem:[#allocation91_spill] sm:$0xff] %v7068_v14  ;;  %v754_v20 = vld [vmem:[#allocation7 + $0x660] sm:$0xff]  ;;  %v771_v49 = vld [vmem:[#allocation7 + $0x6e8] sm:$0xff] }
  0xb2   :  { %4416 = vmatpush1.bf16.msra.mxu1 %v7050_v33  ;;  %8672 = vst [vmem:[#allocation89_spill] sm:$0xff] %v7062_v9  ;;  %v769_v33 = vld [vmem:[#allocation7 + $0x6d8] sm:$0xff]  ;;  %v7078_v1 = vpack.c.bf16 %v754_v20, %v746_v22  ;;  %v7083_v15 = vpack.c.bf16 %v771_v49, %v763_v37  ;;  %v776_v20 = vld [vmem:[#allocation7 + $0x710] sm:$0xff]  ;;  %v778_v37 = vld [vmem:[#allocation7 + $0x720] sm:$0xff] }
  0xb3   :  { %4418 = vmatprep.subr.bf16.mxu1 %v7056_v48  ;;  %v7080_v13 = vpack.c.bf16 %v769_v33, %v761_v44  ;;  %v777_v48 = vld [vmem:[#allocation7 + $0x718] sm:$0xff]  ;;  %v784_v22 = vld [vmem:[#allocation7 + $0x750] sm:$0xff] }
  0xb4   :  { %4480 = vmatpush1.bf16.msra.mxu0 %v7054_v0  ;;  %v7074_v0 = vpack.c.bf16 %v752_v11, %v744_v16  ;;  %8677 = vst [vmem:[#allocation94_spill] sm:$0xff] %v7078_v1  ;;  %8679 = vst [vmem:[#allocation96_spill] sm:$0xff] %v7083_v15  ;;  %v779_v16 = vld [vmem:[#allocation7 + $0x728] sm:$0xff] }
  0xb5   :  { %4482 = vmatprep.subr.bf16.mxu0 %v7059_v61  ;;  %8678 = vst [vmem:[#allocation95_spill] sm:$0xff] %v7080_v13  ;;  %v770_v61 = vld [vmem:[#allocation7 + $0x6e0] sm:$0xff]  ;;  %v787_v11 = vld [vmem:[#allocation7 + $0x768] sm:$0xff] }
  0xb6   :  { %4420 = vmatpush1.bf16.msra.mxu1 %v7062_v9  ;;  %8676 = vst [vmem:[#allocation93_spill] sm:$0xff] %v7074_v0  ;;  %v785_v9 = vld [vmem:[#allocation7 + $0x758] sm:$0xff]  ;;  %v7090_v33 = vpack.c.bf16 %v770_v61, %v762_v7  ;;  %v7095_v49 = vpack.c.bf16 %v787_v11, %v779_v16  ;;  %v792_v61 = vld [vmem:[#allocation7 + $0x790] sm:$0xff]  ;;  %v794_v16 = vld [vmem:[#allocation7 + $0x7a0] sm:$0xff] }
  0xb7   :  { %4422 = vmatprep.subr.bf16.mxu1 %v7068_v14  ;;  %v7092_v44 = vpack.c.bf16 %v785_v9, %v777_v48  ;;  %v793_v14 = vld [vmem:[#allocation7 + $0x798] sm:$0xff]  ;;  %v800_v7 = vld [vmem:[#allocation7 + $0x7d0] sm:$0xff] }
  0xb8   :  { %4484 = vmatpush1.bf16.msra.mxu0 %v7066_v30  ;;  %v7086_v30 = vpack.c.bf16 %v768_v45, %v760_v53  ;;  %8681 = vst [vmem:[#allocation98_spill] sm:$0xff] %v7090_v33  ;;  %8683 = vst [vmem:[#allocation100_spill] sm:$0xff] %v7095_v49  ;;  %v795_v53 = vld [vmem:[#allocation7 + $0x7a8] sm:$0xff] }
  0xb9   :  { %4486 = vmatprep.subr.bf16.mxu0 %v7071_v35  ;;  %8682 = vst [vmem:[#allocation99_spill] sm:$0xff] %v7092_v44  ;;  %v786_v35 = vld [vmem:[#allocation7 + $0x760] sm:$0xff]  ;;  %v803_v45 = vld [vmem:[#allocation7 + $0x7e8] sm:$0xff] }
  0xba   :  { %4424 = vmatpush1.bf16.msra.mxu1 %v7074_v0  ;;  %8680 = vst [vmem:[#allocation97_spill] sm:$0xff] %v7086_v30  ;;  %v801_v0 = vld [vmem:[#allocation7 + $0x7d8] sm:$0xff]  ;;  %v7102_v9 = vpack.c.bf16 %v786_v35, %v778_v37  ;;  %v7107_v11 = vpack.c.bf16 %v803_v45, %v795_v53  ;;  %v556_v35 = vld [vmem:[#allocation7 + $0x30] sm:$0xff] }
  0xbb   :  { %4426 = vmatprep.subr.bf16.mxu1 %v7080_v13  ;;  %v7104_v48 = vpack.c.bf16 %v801_v0, %v793_v14  ;;  %v557_v13 = vld [vmem:[#allocation7 + $0x38] sm:$0xff] }
  0xbc   :  { %4488 = vmatpush1.bf16.msra.mxu0 %v7078_v1  ;;  %v7098_v1 = vpack.c.bf16 %v784_v22, %v776_v20  ;;  %8685 = vst [vmem:[#allocation102_spill] sm:$0xff] %v7102_v9  ;;  %8687 = vst [vmem:[#allocation104_spill] sm:$0xff] %v7107_v11  ;;  %v7110_v20 = vpack.c.bf16 %v800_v7, %v792_v61  ;;  %v564_v22 = vld [vmem:[#allocation7 + $0x70] sm:$0xff]  ;;  %v573_v37 = vld [vmem:[#allocation7 + $0xb8] sm:$0xff] }
  0xbd   :  { %4490 = vmatprep.subr.bf16.mxu0 %v7083_v15  ;;  %8686 = vst [vmem:[#allocation103_spill] sm:$0xff] %v7104_v48  ;;  %v802_v15 = vld [vmem:[#allocation7 + $0x7e0] sm:$0xff]  ;;  %v581_v53 = vld [vmem:[#allocation7 + $0xf8] sm:$0xff]  ;;  %v7120_v45 = vpack.c.bf16 %v564_v22, %v556_v35  ;;  %v580_v7 = vld [vmem:[#allocation7 + $0xf0] sm:$0xff] }
  0xbe   :  { %4428 = vmatpush1.bf16.msra.mxu1 %v7086_v30  ;;  %8684 = vst [vmem:[#allocation101_spill] sm:$0xff] %v7098_v1  ;;  %v565_v30 = vld [vmem:[#allocation7 + $0x78] sm:$0xff]  ;;  %8688 = vst [vmem:[#allocation105_spill] sm:$0xff] %v7110_v20  ;;  %v7114_v0 = vpack.c.bf16 %v802_v15, %v794_v16  ;;  %v7124_v61 = vpack.c.bf16 %v581_v53, %v573_v37  ;;  %v572_v15 = vld [vmem:[#allocation7 + $0xb0] sm:$0xff]  ;;  %v8691_v16 = vmov 0.0  }
  0xbf   :  { %4430 = vmatprep.subr.bf16.mxu1 %v7092_v44  ;;  %v7116_v14 = vpack.c.bf16 %v565_v30, %v557_v13  ;;  %v589_v30 = vld [vmem:[#allocation7 + $0x138] sm:$0xff]  ;;  %v7130_v35 = vpack.c.bf16 %v580_v7, %v572_v15  ;;  %v588_v37 = vld [vmem:[#allocation7 + $0x130] sm:$0xff] }
  0xc0   :  { %4492 = vmatpush1.bf16.msra.mxu0 %v7090_v33  ;;  %8689 = vst [vmem:[#allocation106_spill] sm:$0xff] %v7114_v0  ;;  %v597_v13 = vld [vmem:[#allocation7 + $0x178] sm:$0xff]  ;;  %v596_v53 = vld [vmem:[#allocation7 + $0x170] sm:$0xff] }
  0xc1   :  { %4494 = vmatprep.subr.bf16.mxu0 %v7095_v49  ;;  %8690 = vst [vmem:[#allocation107_spill] sm:$0xff] %v7116_v14  ;;  %v7133_v22 = vpack.c.bf16 %v597_v13, %v589_v30  ;;  %v604_v7 = vld [vmem:[#allocation7 + $0x1b0] sm:$0xff]  ;;  %v621_v13 = vld [vmem:[#allocation7 + $0x238] sm:$0xff] }
  0xc2   :  { %4432 = vmatpush1.bf16.msra.mxu1 %v7098_v1  ;;  %v612_v30 = vld [vmem:[#allocation7 + $0x1f0] sm:$0xff] }
  0xc3   :  { %4434 = vmatprep.subr.bf16.mxu1 %v7104_v48 }
  0xc4   :  { %4496 = vmatpush1.bf16.msra.mxu0 %v7102_v9  ;;  %v629_v9 = vld [vmem:[#allocation7 + $0x278] sm:$0xff] }
  0xc5   :  { %4498 = vmatprep.subr.bf16.mxu0 %v7107_v11  ;;  %v613_v11 = vld [vmem:[#allocation7 + $0x1f8] sm:$0xff] }
  0xc6   :  { %4436 = vmatpush1.bf16.msra.mxu1 %v7110_v20 }
  0xc7   :  { %4502 = vmatprep.subr.bf16.mxu1 %v7116_v14 }
  0xc8   :  { %4500 = vmatpush1.bf16.msra.mxu0 %v7114_v0  ;;  %v605_v0 = vld [vmem:[#allocation7 + $0x1b8] sm:$0xff] }
  0xc9   :  { %4566 = vmatprep.subr.bf16.mxu0 %v6803_v42  ;;  %950 = vmatmul.mubr.f32.vlgmr.msra.gmra.mrb[12].mxu1 %v8691_v16  ;;  %v7139_v42 = vpack.c.bf16 %v596_v53, %v588_v37  ;;  %v7142_v15 = vpack.c.bf16 %v613_v11, %v605_v0  ;;  %v7150_v37 = vpack.c.bf16 %v629_v9, %v621_v13  ;;  %v620_v53 = vld [vmem:[#allocation7 + $0x230] sm:$0xff]  ;;  %v637_v11 = vld [vmem:[#allocation7 + $0x2b8] sm:$0xff] }
  0xca   :  { %4504 = vmatpush1.bf16.msra.mxu1 %v7120_v45  ;;  %1091 = vmatprep.mubr.f32.mxu1 %v8691_v16  ;;  %v645_v0 = vld [vmem:[#allocation7 + $0x2f8] sm:$0xff] }
  0xcb   :  { %1021 = vmatmul.mubr.f32.vlgmr.msra.gmra.mrb[6].mxu0 %v8691_v16  ;;  %4506 = vmatprep.subr.bf16.mxu1 %v7124_v61  ;;  %v653_v9 = vld [vmem:[#allocation7 + $0x338] sm:$0xff] }
  0xcc   :  { %4568 = vmatpush1.bf16.msra.mxu0 %v6810_v50  ;;  %v7147_v50 = vpack.c.bf16 %v612_v30, %v604_v7  ;;  %v7158_v7 = vpack.c.bf16 %v645_v0, %v637_v11  ;;  %v636_v30 = vld [vmem:[#allocation7 + $0x2b0] sm:$0xff]  ;;  %v661_v13 = vld [vmem:[#allocation7 + $0x378] sm:$0xff] }
  0xcd   :  { %4570 = vmatprep.subr.bf16.mxu0 %v6813_v55  ;;  %v628_v55 = vld [vmem:[#allocation7 + $0x270] sm:$0xff]  ;;  %v669_v11 = vld [vmem:[#allocation7 + $0x3b8] sm:$0xff] }
  0xce   :  { %4508 = vmatpush1.bf16.msra.mxu1 %v7130_v35  ;;  %v677_v0 = vld [vmem:[#allocation7 + $0x3f8] sm:$0xff] }
  0xcf   :  { %4510 = vmatprep.subr.bf16.mxu1 %v7133_v22 }
  0xd0   :  { %4572 = vmatpush1.bf16.msra.mxu0 %v6818_v62  ;;  %v7155_v62 = vpack.c.bf16 %v628_v55, %v620_v53  ;;  %v7166_v55 = vpack.c.bf16 %v661_v13, %v653_v9  ;;  %v652_v53 = vld [vmem:[#allocation7 + $0x330] sm:$0xff]  ;;  %v685_v9 = vld [vmem:[#allocation7 + $0x438] sm:$0xff] }
  0xd1   :  { %4574 = vmatprep.subr.bf16.mxu0 %v6821_v4  ;;  %v644_v4 = vld [vmem:[#allocation7 + $0x2f0] sm:$0xff]  ;;  %v693_v13 = vld [vmem:[#allocation7 + $0x478] sm:$0xff] }
  0xd2   :  { %4512 = vmatpush1.bf16.msra.mxu1 %v7139_v42 }
  0xd3   :  { %4514 = vmatprep.subr.bf16.mxu1 %v7142_v15 }
  0xd4   :  { %4576 = vmatpush1.bf16.msra.mxu0 %v6831_v12  ;;  %v7163_v12 = vpack.c.bf16 %v644_v4, %v636_v30  ;;  %v7174_v4 = vpack.c.bf16 %v677_v0, %v669_v11  ;;  %v668_v30 = vld [vmem:[#allocation7 + $0x3b0] sm:$0xff]  ;;  %v701_v11 = vld [vmem:[#allocation7 + $0x4b8] sm:$0xff] }
  0xd5   :  { %4578 = vmatprep.subr.bf16.mxu0 %v6834_v17  ;;  %v660_v17 = vld [vmem:[#allocation7 + $0x370] sm:$0xff]  ;;  %v709_v0 = vld [vmem:[#allocation7 + $0x4f8] sm:$0xff] }
  0xd6   :  { %4516 = vmatpush1.bf16.msra.mxu1 %v7147_v50 }
  0xd7   :  { %4518 = vmatprep.subr.bf16.mxu1 %v7150_v37 }
  0xd8   :  { %4580 = vmatpush1.bf16.msra.mxu0 %v6841_v24  ;;  %v7171_v24 = vpack.c.bf16 %v660_v17, %v652_v53  ;;  %v7182_v17 = vpack.c.bf16 %v693_v13, %v685_v9  ;;  %v684_v53 = vld [vmem:[#allocation7 + $0x430] sm:$0xff]  ;;  %v717_v9 = vld [vmem:[#allocation7 + $0x538] sm:$0xff] }
  0xd9   :  { %4582 = vmatprep.subr.bf16.mxu0 %v6844_v29  ;;  %v676_v29 = vld [vmem:[#allocation7 + $0x3f0] sm:$0xff]  ;;  %v725_v13 = vld [vmem:[#allocation7 + $0x578] sm:$0xff] }
  0xda   :  { %4520 = vmatpush1.bf16.msra.mxu1 %v7155_v62  ;;  %8693 = vst [vmem:[#allocation109_spill] sm:$0xff] %v7182_v17 }
  0xdb   :  { %4522 = vmatprep.subr.bf16.mxu1 %v7158_v7 }
  0xdc   :  { %4584 = vmatpush1.bf16.msra.mxu0 %v6847_v36  ;;  %v7179_v36 = vpack.c.bf16 %v676_v29, %v668_v30  ;;  %v7190_v29 = vpack.c.bf16 %v709_v0, %v701_v11  ;;  %v700_v30 = vld [vmem:[#allocation7 + $0x4b0] sm:$0xff]  ;;  %v733_v11 = vld [vmem:[#allocation7 + $0x5b8] sm:$0xff] }
  0xdd   :  { %4586 = vmatprep.subr.bf16.mxu0 %v6850_v41  ;;  %v692_v41 = vld [vmem:[#allocation7 + $0x470] sm:$0xff]  ;;  %v741_v0 = vld [vmem:[#allocation7 + $0x5f8] sm:$0xff] }
  0xde   :  { %4524 = vmatpush1.bf16.msra.mxu1 %v7163_v12  ;;  %8692 = vst [vmem:[#allocation108_spill] sm:$0xff] %v7179_v36  ;;  %8695 = vst [vmem:[#allocation111_spill] sm:$0xff] %v7190_v29 }
  0xdf   :  { %4526 = vmatprep.subr.bf16.mxu1 %v7166_v55 }
  0xe0   :  { %4588 = vmatpush1.bf16.msra.mxu0 %v6853_v51  ;;  %v7187_v51 = vpack.c.bf16 %v692_v41, %v684_v53  ;;  %v7198_v41 = vpack.c.bf16 %v725_v13, %v717_v9  ;;  %v716_v53 = vld [vmem:[#allocation7 + $0x530] sm:$0xff]  ;;  %v749_v9 = vld [vmem:[#allocation7 + $0x638] sm:$0xff] }
  0xe1   :  { %4590 = vmatprep.subr.bf16.mxu0 %v6856_v57  ;;  %v708_v57 = vld [vmem:[#allocation7 + $0x4f0] sm:$0xff]  ;;  %v757_v13 = vld [vmem:[#allocation7 + $0x678] sm:$0xff] }
  0xe2   :  { %4528 = vmatpush1.bf16.msra.mxu1 %v7171_v24  ;;  %8694 = vst [vmem:[#allocation110_spill] sm:$0xff] %v7187_v51  ;;  %8697 = vst [vmem:[#allocation113_spill] sm:$0xff] %v7198_v41 }
  0xe3   :  { %4530 = vmatprep.subr.bf16.mxu1 %v7174_v4 }
  0xe4   :  { %4592 = vmatpush1.bf16.msra.mxu0 %v6859_v2  ;;  %v7195_v2 = vpack.c.bf16 %v708_v57, %v700_v30  ;;  %v7206_v57 = vpack.c.bf16 %v741_v0, %v733_v11  ;;  %v732_v30 = vld [vmem:[#allocation7 + $0x5b0] sm:$0xff]  ;;  %v765_v11 = vld [vmem:[#allocation7 + $0x6b8] sm:$0xff] }
  0xe5   :  { %4594 = vmatprep.subr.bf16.mxu0 %v6862_v8  ;;  %v724_v8 = vld [vmem:[#allocation7 + $0x570] sm:$0xff]  ;;  %v773_v0 = vld [vmem:[#allocation7 + $0x6f8] sm:$0xff] }
  0xe6   :  { %4532 = vmatpush1.bf16.msra.mxu1 %v7179_v36  ;;  %8696 = vst [vmem:[#allocation112_spill] sm:$0xff] %v7195_v2  ;;  %8699 = vst [vmem:[#allocation115_spill] sm:$0xff] %v7206_v57 }
  0xe7   :  { %4534 = vmatprep.subr.bf16.mxu1 %v7182_v17 }
  0xe8   :  { %4596 = vmatpush1.bf16.msra.mxu0 %v6865_v18  ;;  %v7203_v18 = vpack.c.bf16 %v724_v8, %v716_v53  ;;  %v7214_v8 = vpack.c.bf16 %v757_v13, %v749_v9  ;;  %v748_v53 = vld [vmem:[#allocation7 + $0x630] sm:$0xff]  ;;  %v781_v9 = vld [vmem:[#allocation7 + $0x738] sm:$0xff] }
  0xe9   :  { %4598 = vmatprep.subr.bf16.mxu0 %v6868_v23  ;;  %v740_v23 = vld [vmem:[#allocation7 + $0x5f0] sm:$0xff]  ;;  %v789_v13 = vld [vmem:[#allocation7 + $0x778] sm:$0xff] }
  0xea   :  { %4536 = vmatpush1.bf16.msra.mxu1 %v7187_v51  ;;  %8698 = vst [vmem:[#allocation114_spill] sm:$0xff] %v7203_v18  ;;  %8701 = vst [vmem:[#allocation117_spill] sm:$0xff] %v7214_v8 }
  0xeb   :  { %4538 = vmatprep.subr.bf16.mxu1 %v7190_v29 }
  0xec   :  { %4600 = vmatpush1.bf16.msra.mxu0 %v6871_v32  ;;  %v7211_v32 = vpack.c.bf16 %v740_v23, %v732_v30  ;;  %v7222_v23 = vpack.c.bf16 %v773_v0, %v765_v11  ;;  %v764_v30 = vld [vmem:[#allocation7 + $0x6b0] sm:$0xff]  ;;  %v797_v11 = vld [vmem:[#allocation7 + $0x7b8] sm:$0xff] }
  0xed   :  { %4602 = vmatprep.subr.bf16.mxu0 %v6874_v38  ;;  %v756_v38 = vld [vmem:[#allocation7 + $0x670] sm:$0xff]  ;;  %v805_v0 = vld [vmem:[#allocation7 + $0x7f8] sm:$0xff] }
  0xee   :  { %4540 = vmatpush1.bf16.msra.mxu1 %v7195_v2  ;;  %8700 = vst [vmem:[#allocation116_spill] sm:$0xff] %v7211_v32  ;;  %8703 = vst [vmem:[#allocation119_spill] sm:$0xff] %v7222_v23 }
  0xef   :  { %4542 = vmatprep.subr.bf16.mxu1 %v7198_v41 }
  0xf0   :  { %4604 = vmatpush1.bf16.msra.mxu0 %v6879_v47  ;;  %v7219_v47 = vpack.c.bf16 %v756_v38, %v748_v53  ;;  %v7230_v38 = vpack.c.bf16 %v789_v13, %v781_v9  ;;  %v780_v53 = vld [vmem:[#allocation7 + $0x730] sm:$0xff] }
  0xf1   :  { %4606 = vmatprep.subr.bf16.mxu0 %v6882_v56  ;;  %v772_v56 = vld [vmem:[#allocation7 + $0x6f0] sm:$0xff] }
  0xf2   :  { %4544 = vmatpush1.bf16.msra.mxu1 %v7203_v18  ;;  %8702 = vst [vmem:[#allocation118_spill] sm:$0xff] %v7219_v47  ;;  %8705 = vst [vmem:[#allocation121_spill] sm:$0xff] %v7230_v38 }
  0xf3   :  { %4546 = vmatprep.subr.bf16.mxu1 %v7206_v57 }
  0xf4   :  { %4608 = vmatpush1.bf16.msra.mxu0 %v6887_v3  ;;  %v7227_v3 = vpack.c.bf16 %v772_v56, %v764_v30  ;;  %v7238_v56 = vpack.c.bf16 %v805_v0, %v797_v11  ;;  %v796_v30 = vld [vmem:[#allocation7 + $0x7b0] sm:$0xff] }
  0xf5   :  { %4610 = vmatprep.subr.bf16.mxu0 %v6890_v10  ;;  %v788_v10 = vld [vmem:[#allocation7 + $0x770] sm:$0xff] }
  0xf6   :  { %4548 = vmatpush1.bf16.msra.mxu1 %v7211_v32  ;;  %8704 = vst [vmem:[#allocation120_spill] sm:$0xff] %v7227_v3  ;;  %8707 = vst [vmem:[#allocation123_spill] sm:$0xff] %v7238_v56 }
  0xf7   :  { %4550 = vmatprep.subr.bf16.mxu1 %v7214_v8 }
  0xf8   :  { %4612 = vmatpush1.bf16.msra.mxu0 %v6893_v21  ;;  %v7235_v21 = vpack.c.bf16 %v788_v10, %v780_v53  ;;  %v186_v10 = vlaneseq }
  0xf9   :  { %4614 = vmatprep.subr.bf16.mxu0 %v6896_v28  ;;  %v804_v28 = vld [vmem:[#allocation7 + $0x7f0] sm:$0xff] }
  0xfa   :  { %4552 = vmatpush1.bf16.msra.mxu1 %v7219_v47  ;;  %8706 = vst [vmem:[#allocation122_spill] sm:$0xff] %v7235_v21  ;;  %v7243_v9 = vpack.c.bf16 %v804_v28, %v796_v30  ;;  %v7257_v28 = vshrl.u32 %v186_v10, 7 }
  0xfb   :  { %4554 = vmatprep.subr.bf16.mxu1 %v7222_v23 }
  0xfc   :  { %4616 = vmatpush1.bf16.msra.mxu0 %v6899_v39  ;;  %8708 = vst [vmem:[#allocation124_spill] sm:$0xff] %v7243_v9  ;;  %v188_v13 = vsub.s32 0, %v7257_v28  ;;  %v192_v53 = vsub.s32 1, %v7257_v28  ;;  %v204_v11 = vsub.s32 4, %v7257_v28  ;;  %v208_v0 = vsub.s32 5, %v7257_v28 }
  0xfd   :  { %4618 = vmatprep.subr.bf16.mxu0 %v6902_v46 }
  0xfe   :  { %4556 = vmatpush1.bf16.msra.mxu1 %v7227_v3 }
  0xff   :  { %4558 = vmatprep.subr.bf16.mxu1 %v7230_v38 }
 0x100   :  { %4620 = vmatpush1.bf16.msra.mxu0 %v6905_v60 }
 0x101   :  { %4622 = vmatprep.subr.bf16.mxu0 %v6908_v6 }
 0x102   :  { %4560 = vmatpush1.bf16.msra.mxu1 %v7235_v21 }
 0x103   :  { %4562 = vmatprep.subr.bf16.mxu1 %v7238_v56 }
 0x104   :  { %4624 = vmatpush1.bf16.msra.mxu0 %v6911_v19 }
 0x105   :  { %4626 = vmatprep.subr.bf16.mxu0 %v6914_v27  ;;  %v8709_v27 = vld [vmem:[#allocation63_spill] sm:$0xff] }
 0x106   :  { %4564 = vmatpush1.bf16.msra.mxu1 %v7243_v9 }
 0x107   :  { %4630 = vmatprep.subr.bf16.mxu1 %v6919_v43 }
 0x108   :  { %4628 = vmatpush1.bf16.msra.mxu0 %v6917_v40 }
 0x109   :  { %1092 = vmatmul.mubr.f32.vlgmr.msra.gmra.mrb[14].mxu1 %v8691_v16  ;;  %4694 = vmatprep.subr.bf16.mxu0 %v6922_v52  ;;  %v7265_v16 = vld [vmem:[%s8350_s3] sm:$0xff] }
 0x10a   :  { %4632 = vmatpush1.bf16.msra.mxu1 %v6924_v63  ;;  %v189_v30 = vrot.slane %v7265_v16, %v188_v13  ;;  %v193_v10 = vrot.slane %v7265_v16, %v192_v53  ;;  %v205_v52 = vrot.slane %v7265_v16, %v204_v11  ;;  %v209_v40 = vrot.slane %v7265_v16, %v208_v0  ;;  %v8711_v53 = vld [vmem:[#allocation67_spill] sm:$0xff]  ;;  %v8712_v11 = vld [vmem:[#allocation69_spill] sm:$0xff] }
 0x10b   :  { %4634 = vmatprep.subr.bf16.mxu1 %v6930_v5 }
 0x10e   :  { %4636 = vmatpush1.bf16.msra.mxu1 %v6938_v26 }
 0x10f   :  { %4638 = vmatprep.subr.bf16.mxu1 %v6944_v31 }
 0x112   :  { %4640 = vmatpush1.bf16.msra.mxu1 %v6953_v54 }
 0x113   :  { %4642 = vmatprep.subr.bf16.mxu1 %v6960_v59 }
 0x116   :  { %4644 = vmatpush1.bf16.msra.mxu1 %v6966_v25 }
 0x117   :  { %4646 = vmatprep.subr.bf16.mxu1 %v6972_v34  ;;  %v8710_v34 = vld [vmem:[#allocation65_spill] sm:$0xff] }
 0x11a   :  { %4648 = vmatpush1.bf16.msra.mxu1 %v6978_v58 }
 0x11b   :  { %4650 = vmatprep.subr.bf16.mxu1 %v8709_v27  ;;  %v8713_v27 = vld [vmem:[#allocation71_spill] sm:$0xff] }
 0x11c   :  { %v292_v19 = vpop.f32.mrb[0].mxu1 }
 0x11d   :  { %v293_v6 = vadd.f32 %v292_v19, %v189_v30  ;;  %v294_v60 = vpop.f32.mrb[1].mxu1 }
 0x11e   :  { %v446_v46 = vpop.f32.mrb[0].mxu0  ;;  %v295_v39 = vadd.f32 %v294_v60, %v193_v10  ;;  %4652 = vmatpush1.bf16.msra.mxu1 %v8710_v34 }
 0x11f   :  { %v447_v25 = vadd.f32 %v446_v46, %v205_v52  ;;  %v448_v59 = vpop.f32.mrb[1].mxu0  ;;  %534 = vst [vmem:[#allocation2] sm:$0xff] %v293_v6  ;;  %4654 = vmatprep.subr.bf16.mxu1 %v8711_v53  ;;  %v8714_v6 = vld [vmem:[#allocation73_spill] sm:$0xff] }
 0x120   :  { %v449_v13 = vadd.f32 %v448_v59, %v209_v40  ;;  %535 = vst [vmem:[#allocation2 + $0x8] sm:$0xff] %v295_v39  ;;  %v8715_v39 = vld [vmem:[#allocation75_spill] sm:$0xff]  ;;  %v8716_v59 = vld [vmem:[#allocation77_spill] sm:$0xff] }
 0x121   :  { %538 = vst [vmem:[#allocation2 + $0x20] sm:$0xff] %v447_v25  ;;  %v8717_v25 = vld [vmem:[#allocation79_spill] sm:$0xff] }
 0x122   :  { %539 = vst [vmem:[#allocation2 + $0x28] sm:$0xff] %v449_v13  ;;  %4656 = vmatpush1.bf16.msra.mxu1 %v8712_v11  ;;  %v298_v0 = vpop.f32.mrb[2].mxu1  ;;  %v8718_v13 = vld [vmem:[#allocation81_spill] sm:$0xff] }
 0x123   :  { %4658 = vmatprep.subr.bf16.mxu1 %v8713_v27  ;;  %v299_v19 = vadd.f32 %v298_v0, %v189_v30  ;;  %v300_v58 = vpop.f32.mrb[3].mxu1  ;;  %v8719_v30 = vld [vmem:[#allocation83_spill] sm:$0xff] }
 0x124   :  { %v452_v54 = vpop.f32.mrb[2].mxu0  ;;  %v301_v60 = vadd.f32 %v300_v58, %v193_v10  ;;  %v8720_v58 = vld [vmem:[#allocation85_spill] sm:$0xff]  ;;  %v8723_v10 = vld [vmem:[#allocation91_spill] sm:$0xff] }
 0x125   :  { %v453_v46 = vadd.f32 %v452_v54, %v205_v52  ;;  %v454_v31 = vpop.f32.mrb[3].mxu0  ;;  %542 = vst [vmem:[#allocation2 + $0x40] sm:$0xff] %v299_v19  ;;  %v8721_v52 = vld [vmem:[#allocation87_spill] sm:$0xff]  ;;  %v8722_v54 = vld [vmem:[#allocation89_spill] sm:$0xff] }
 0x126   :  { %v455_v34 = vadd.f32 %v454_v31, %v209_v40  ;;  %4660 = vmatpush1.bf16.msra.mxu1 %v8714_v6  ;;  %543 = vst [vmem:[#allocation2 + $0x48] sm:$0xff] %v301_v60  ;;  %v196_v40 = vsub.s32 2, %v7257_v28  ;;  %v200_v31 = vsub.s32 3, %v7257_v28  ;;  %v8724_v19 = vld [vmem:[#allocation93_spill] sm:$0xff]  ;;  %v8725_v60 = vld [vmem:[#allocation95_spill] sm:$0xff] }
 0x127   :  { %546 = vst [vmem:[#allocation2 + $0x60] sm:$0xff] %v453_v46  ;;  %4662 = vmatprep.subr.bf16.mxu1 %v8715_v39 }
 0x128   :  { %547 = vst [vmem:[#allocation2 + $0x68] sm:$0xff] %v455_v34  ;;  %v197_v34 = vrot.slane %v7265_v16, %v196_v40  ;;  %v201_v0 = vrot.slane %v7265_v16, %v200_v31 }
 0x129   :  { %v811_v39 = vld [vmem:[#allocation2 + $0x28] sm:$0x3] }
 0x12a   :  { %4664 = vmatpush1.bf16.msra.mxu1 %v8716_v59 }
 0x12b   :  { %4666 = vmatprep.subr.bf16.mxu1 %v8717_v25 }
 0x12e   :  { %4668 = vmatpush1.bf16.msra.mxu1 %v8718_v13  ;;  %v8726_v13 = vld [vmem:[#allocation97_spill] sm:$0xff] }
 0x12f   :  { %4670 = vmatprep.subr.bf16.mxu1 %v8719_v30 }
 0x132   :  { %4672 = vmatpush1.bf16.msra.mxu1 %v8720_v58 }
 0x133   :  { %4674 = vmatprep.subr.bf16.mxu1 %v8721_v52 }
 0x136   :  { %4676 = vmatpush1.bf16.msra.mxu1 %v8722_v54 }
 0x137   :  { %4678 = vmatprep.subr.bf16.mxu1 %v8723_v10 }
 0x13a   :  { %4680 = vmatpush1.bf16.msra.mxu1 %v8724_v19 }
 0x13b   :  { %4682 = vmatprep.subr.bf16.mxu1 %v8725_v60 }
 0x13c   :  { %v369_v46 = vpop.f32.mrb[4].mxu1 }
 0x13d   :  { %v370_v58 = vadd.f32 %v369_v46, %v197_v34  ;;  %v371_v30 = vpop.f32.mrb[5].mxu1 }
 0x13e   :  { %v372_v52 = vadd.f32 %v371_v30, %v201_v0  ;;  %4684 = vmatpush1.bf16.msra.mxu1 %v8726_v13  ;;  %v212_v30 = vsub.s32 6, %v7257_v28  ;;  %v806_v13 = vld [vmem:[#allocation2] sm:$0x3] }
 0x13f   :  { %536 = vst [vmem:[#allocation2 + $0x10] sm:$0xff] %v370_v58  ;;  %4686 = vmatprep.subr.bf16.mxu1 %v7092_v44  ;;  %v216_v58 = vsub.s32 7, %v7257_v28 }
 0x140   :  { %537 = vst [vmem:[#allocation2 + $0x18] sm:$0xff] %v372_v52  ;;  %v375_v54 = vpop.f32.mrb[6].mxu1  ;;  %v213_v52 = vrot.slane %v7265_v16, %v212_v30 }
 0x141   :  { %v376_v10 = vadd.f32 %v375_v54, %v197_v34  ;;  %v377_v25 = vpop.f32.mrb[7].mxu1  ;;  %v217_v31 = vrot.slane %v7265_v16, %v216_v58  ;;  %v807_v58 = vld [vmem:[#allocation2 + $0x8] sm:$0x3] }
 0x142   :  { %v378_v40 = vadd.f32 %v377_v25, %v201_v0  ;;  %4688 = vmatpush1.bf16.msra.mxu1 %v7098_v1 }
 0x143   :  { %544 = vst [vmem:[#allocation2 + $0x50] sm:$0xff] %v376_v10  ;;  %4690 = vmatprep.subr.bf16.mxu1 %v7104_v48 }
 0x144   :  { %545 = vst [vmem:[#allocation2 + $0x58] sm:$0xff] %v378_v40 }
 0x146   :  { %4692 = vmatpush1.bf16.msra.mxu1 %v7110_v20  ;;  %v808_v60 = vld [vmem:[#allocation2 + $0x10] sm:$0x3] }
 0x147   :  { %4758 = vmatprep.subr.bf16.mxu1 %v7116_v14  ;;  %v809_v59 = vld [vmem:[#allocation2 + $0x18] sm:$0x3] }
 0x15c   :  { %v523_v54 = vpop.f32.mrb[8].mxu1 }
 0x15d   :  { %v524_v25 = vadd.f32 %v523_v54, %v213_v52  ;;  %v525_v0 = vpop.f32.mrb[9].mxu1 }
 0x15e   :  { %v880_v34 = vpop.f32.mrb[4].mxu0  ;;  %v526_v10 = vadd.f32 %v525_v0, %v217_v31 }
 0x15f   :  { %v882_v46 = vpop.f32.mrb[5].mxu0  ;;  %540 = vst [vmem:[#allocation2 + $0x30] sm:$0xff] %v524_v25  ;;  %v1098_v16 = vadd.f32 %v880_v34, %v806_v13 }
 0x160   :  { %541 = vst [vmem:[#allocation2 + $0x38] sm:$0xff] %v526_v10  ;;  %v529_v40 = vpop.f32.mrb[10].mxu1  ;;  %v1099_v54 = vadd.f32 %v882_v46, %v807_v58 }
 0x161   :  { %v530_v20 = vadd.f32 %v529_v40, %v213_v52  ;;  %v531_v48 = vpop.f32.mrb[11].mxu1  ;;  %v4026_v19 = vmul.f32 -1.442695, %v1098_v16 }
 0x162   :  { %v532_v14 = vadd.f32 %v531_v48, %v217_v31  ;;  %v4027_v25 = vmul.f32 -1.442695, %v1099_v54 }
 0x163   :  { %548 = vst [vmem:[#allocation2 + $0x70] sm:$0xff] %v530_v20  ;;  %6428 = vpow2.f32 %v4026_v19 }
 0x164   :  { %549 = vst [vmem:[#allocation2 + $0x78] sm:$0xff] %v532_v14  ;;  %6430 = vpow2.f32 %v4027_v25  ;;  %v810_v14 = vld [vmem:[#allocation2 + $0x20] sm:$0x3] }
 0x166   :  { %v812_v19 = vld [vmem:[#allocation2 + $0x30] sm:$0x3] }
 0x167   :  { %v813_v25 = vld [vmem:[#allocation2 + $0x38] sm:$0x3] }
 0x16d   :  { %v6429_v20 = vpop.eup %6428 }
 0x16e   :  { %v6431_v31 = vpop.eup %6430  ;;  %v1124_v34 = vadd.f32 1.0, %v6429_v20 }
 0x16f   :  { %v1125_v58 = vadd.f32 1.0, %v6431_v31 }
 0x19c   :  { %v951_v1 = vpop.f32.mrb[12].mxu1 }
 0x19d   :  { %v953_v44 = vpop.f32.mrb[13].mxu1  ;;  %v1100_v0 = vadd.f32 %v951_v1, %v808_v60 }
 0x19e   :  { %v1022_v28 = vpop.f32.mrb[6].mxu0  ;;  %v1101_v10 = vadd.f32 %v953_v44, %v809_v59 }
 0x19f   :  { %v1024_v30 = vpop.f32.mrb[7].mxu0  ;;  %v4028_v52 = vmul.f32 -1.442695, %v1100_v0  ;;  %v1102_v40 = vadd.f32 %v1022_v28, %v810_v14 }
 0x1a0   :  { %v4029_v48 = vmul.f32 -1.442695, %v1101_v10  ;;  %v1103_v13 = vadd.f32 %v1024_v30, %v811_v39 }
 0x1a1   :  { %6432 = vpow2.f32 %v4028_v52  ;;  %v4030_v1 = vmul.f32 -1.442695, %v1102_v40 }
 0x1a2   :  { %6434 = vpow2.f32 %v4029_v48  ;;  %v4031_v60 = vmul.f32 -1.442695, %v1103_v13 }
 0x1a3   :  { %6436 = vrcp.f32 %v1124_v34 }
 0x1a4   :  { %6438 = vrcp.f32 %v1125_v58 }
 0x1a5   :  { %6440 = vpow2.f32 %v4030_v1 }
 0x1a6   :  { %6442 = vpow2.f32 %v4031_v60 }
 0x1ab   :  { %v6433_v46 = vpop.eup %6432 }
 0x1ac   :  { %v6435_v16 = vpop.eup %6434  ;;  %v1126_v44 = vadd.f32 1.0, %v6433_v46 }
 0x1ad   :  { %v1127_v59 = vadd.f32 1.0, %v6435_v16  ;;  %v6437_v30 = vpop.eup %6436 }
 0x1ae   :  { %6444 = vrcp.f32 %v1126_v44  ;;  %v6439_v10 = vpop.eup %6438 }
 0x1af   :  { %6446 = vrcp.f32 %v1127_v59  ;;  %v6441_v52 = vpop.eup %6440 }
 0x1b0   :  { %v6443_v48 = vpop.eup %6442  ;;  %v1128_v31 = vadd.f32 1.0, %v6441_v52  ;;  %v8730_v52 = vld [vmem:[#allocation52_spill] sm:$0xff] }
 0x1b1   :  { %v1129_v13 = vadd.f32 1.0, %v6443_v48  ;;  %v8731_v48 = vld [vmem:[#allocation54_spill] sm:$0xff] }
 0x1b8   :  { %v6445_v20 = vpop.eup %6444 }
 0x1b9   :  { %v6447_v14 = vpop.eup %6446  ;;  %v1144_v46 = vmul.f32 0.0, %v6445_v20  ;;  %v8732_v20 = vld [vmem:[#allocation56_spill] sm:$0xff] }
 0x1ba   :  { %v1145_v16 = vmul.f32 0.0, %v6447_v14  ;;  %v8733_v14 = vld [vmem:[#allocation58_spill] sm:$0xff] }
 0x1dc   :  { %v1093_v54 = vpop.f32.mrb[14].mxu1 }
 0x1dd   :  { %v1104_v0 = vadd.f32 %v1093_v54, %v812_v19  ;;  %v1095_v28 = vpop.f32.mrb[15].mxu1 }
 0x1de   :  { %v1105_v39 = vadd.f32 %v1095_v28, %v813_v25 }
 0x1df   :  { %6448 = vtanh.f32 %v1104_v0 }
 0x1e0   :  { %6450 = vtanh.f32 %v1105_v39  ;;  %v8727_v39 = vld [vmem:[#allocation46_spill] sm:$0xff] }
 0x1e1   :  { %6452 = vrcp.f32 %v1128_v31  ;;  %v8734_v31 = vld [vmem:[#allocation60_spill] sm:$0xff] }
 0x1e2   :  { %6454 = vrcp.f32 %v1129_v13  ;;  %v8736_v13 = vld [vmem:[#allocation64_spill] sm:$0xff] }
 0x1e9   :  { %v6449_v40 = vpop.eup %6448 }
 0x1ea   :  { %v6451_v34 = vpop.eup %6450  ;;  %v1146_v58 = vmul.f32 %v6449_v40, %v6437_v30  ;;  %v8728_v30 = vld [vmem:[#allocation48_spill] sm:$0xff]  ;;  %v8735_v40 = vld [vmem:[#allocation62_spill] sm:$0xff] }
 0x1eb   :  { %v1147_v1 = vmul.f32 %v6451_v34, %v6439_v10  ;;  %v6453_v59 = vpop.eup %6452  ;;  %v8729_v10 = vld [vmem:[#allocation50_spill] sm:$0xff] }
 0x1ec   :  { %v7308_v60 = vadd.f32 %v1146_v58, %v1144_v46  ;;  %v6455_v19 = vpop.eup %6454  ;;  %v8737_v34 = vld [vmem:[#allocation66_spill] sm:$0xff]  ;;  %v8738_v46 = vld [vmem:[#allocation68_spill] sm:$0xff] }
 0x1ed   :  { %v7310_v44 = vadd.f32 %v1147_v1, %v1145_v16  ;;  %v8739_v58 = vld [vmem:[#allocation70_spill] sm:$0xff]  ;;  %v8740_v16 = vld [vmem:[#allocation72_spill] sm:$0xff] }
 0x1ee   :  { %6456 = vtanh.f32 %v7308_v60  ;;  %v8741_v1 = vld [vmem:[#allocation74_spill] sm:$0xff] }
 0x1ef   :  { %6458 = vtanh.f32 %v7310_v44 }
 0x1f8   :  { %v6457_v54 = vpop.eup %6456 }
 0x1f9   :  { %v6459_v0 = vpop.eup %6458  ;;  %v7314_v25 = vmul.f32 %v6457_v54, %v6453_v59  ;;  %v8742_v59 = vld [vmem:[#allocation76_spill] sm:$0xff] }
 0x1fa   :  { %v1153_v28 = vmul.f32 %v6459_v0, %v6455_v19  ;;  %v8743_v19 = vld [vmem:[#allocation78_spill] sm:$0xff]  ;;  %v8744_v54 = vld [vmem:[#allocation80_spill] sm:$0xff] }
 0x1fb   :  { %1154 = vst [vmem:[#allocation3] sm:$0x3] %v7314_v25  ;;  %v8745_v0 = vld [vmem:[#allocation82_spill] sm:$0xff] }
 0x1fc   :  { %1155 = vst [vmem:[#allocation4 + $0xe] sm:$0x3] %v1153_v28  ;;  %1228 = vmatprep.mubr.f32.mxu0 %v1153_v28  ;;  %1299 = vmatprep.mubr.f32.mxu1 %v1153_v28 }
 0x1fd   :  { %1229 = vmatmul.mubr.f32.vlgmr.msra.gmra.mrb[8].mxu0 %v7314_v25  ;;  %1300 = vmatmul.mubr.f32.vlgmr.msra.gmra.mrb[16].mxu1 %v7314_v25 }
 0x1fe   :  { %4696 = vmatpush1.bf16.msra.mxu0 %v8727_v39  ;;  %4760 = vmatpush1.bf16.msra.mxu1 %v7120_v45 }
 0x1ff   :  { %1370 = vmatprep.mubr.f32.mxu0 %v1153_v28  ;;  %1441 = vmatprep.mubr.f32.mxu1 %v1153_v28  ;;  %v8746_v28 = vld [vmem:[#allocation84_spill] sm:$0xff] }
 0x200   :  { %4698 = vmatprep.subr.bf16.mxu0 %v8728_v30  ;;  %4762 = vmatprep.subr.bf16.mxu1 %v7124_v61 }
 0x202   :  { %4700 = vmatpush1.bf16.msra.mxu0 %v8729_v10  ;;  %4764 = vmatpush1.bf16.msra.mxu1 %v7130_v35 }
 0x203   :  { %4702 = vmatprep.subr.bf16.mxu0 %v8730_v52  ;;  %4766 = vmatprep.subr.bf16.mxu1 %v7133_v22 }
 0x206   :  { %4704 = vmatpush1.bf16.msra.mxu0 %v8731_v48  ;;  %4768 = vmatpush1.bf16.msra.mxu1 %v7139_v42 }
 0x207   :  { %4706 = vmatprep.subr.bf16.mxu0 %v8732_v20  ;;  %4770 = vmatprep.subr.bf16.mxu1 %v7142_v15 }
 0x20a   :  { %4708 = vmatpush1.bf16.msra.mxu0 %v8733_v14  ;;  %4772 = vmatpush1.bf16.msra.mxu1 %v7147_v50 }
 0x20b   :  { %4710 = vmatprep.subr.bf16.mxu0 %v8734_v31  ;;  %4774 = vmatprep.subr.bf16.mxu1 %v7150_v37 }
 0x20e   :  { %4712 = vmatpush1.bf16.msra.mxu0 %v8735_v40  ;;  %4776 = vmatpush1.bf16.msra.mxu1 %v7155_v62 }
 0x20f   :  { %4714 = vmatprep.subr.bf16.mxu0 %v8736_v13  ;;  %4778 = vmatprep.subr.bf16.mxu1 %v7158_v7 }
 0x212   :  { %4716 = vmatpush1.bf16.msra.mxu0 %v8737_v34  ;;  %4780 = vmatpush1.bf16.msra.mxu1 %v7163_v12 }
 0x213   :  { %4718 = vmatprep.subr.bf16.mxu0 %v8738_v46  ;;  %4782 = vmatprep.subr.bf16.mxu1 %v7166_v55 }
 0x216   :  { %4720 = vmatpush1.bf16.msra.mxu0 %v8739_v58  ;;  %4784 = vmatpush1.bf16.msra.mxu1 %v7171_v24 }
 0x217   :  { %4722 = vmatprep.subr.bf16.mxu0 %v8740_v16  ;;  %4786 = vmatprep.subr.bf16.mxu1 %v7174_v4 }
 0x21a   :  { %4724 = vmatpush1.bf16.msra.mxu0 %v8741_v1  ;;  %4788 = vmatpush1.bf16.msra.mxu1 %v7179_v36  ;;  %v8747_v36 = vld [vmem:[#allocation86_spill] sm:$0xff] }
 0x21b   :  { %4726 = vmatprep.subr.bf16.mxu0 %v8742_v59  ;;  %4790 = vmatprep.subr.bf16.mxu1 %v7182_v17  ;;  %v8748_v17 = vld [vmem:[#allocation88_spill] sm:$0xff] }
 0x21e   :  { %4728 = vmatpush1.bf16.msra.mxu0 %v8743_v19  ;;  %4792 = vmatpush1.bf16.msra.mxu1 %v7187_v51  ;;  %v8749_v51 = vld [vmem:[#allocation90_spill] sm:$0xff] }
 0x21f   :  { %4730 = vmatprep.subr.bf16.mxu0 %v8744_v54  ;;  %4794 = vmatprep.subr.bf16.mxu1 %v7190_v29  ;;  %v8750_v29 = vld [vmem:[#allocation92_spill] sm:$0xff] }
 0x222   :  { %4732 = vmatpush1.bf16.msra.mxu0 %v8745_v0  ;;  %4796 = vmatpush1.bf16.msra.mxu1 %v7195_v2  ;;  %v8751_v2 = vld [vmem:[#allocation94_spill] sm:$0xff] }
 0x223   :  { %4734 = vmatprep.subr.bf16.mxu0 %v8746_v28  ;;  %4798 = vmatprep.subr.bf16.mxu1 %v7198_v41  ;;  %v8752_v41 = vld [vmem:[#allocation96_spill] sm:$0xff] }
 0x226   :  { %4736 = vmatpush1.bf16.msra.mxu0 %v8747_v36  ;;  %4800 = vmatpush1.bf16.msra.mxu1 %v7203_v18 }
 0x227   :  { %4738 = vmatprep.subr.bf16.mxu0 %v8748_v17  ;;  %4802 = vmatprep.subr.bf16.mxu1 %v7206_v57 }
 0x22a   :  { %4740 = vmatpush1.bf16.msra.mxu0 %v8749_v51  ;;  %4804 = vmatpush1.bf16.msra.mxu1 %v7211_v32  ;;  %v8753_v32 = vld [vmem:[#allocation102_spill] sm:$0xff] }
 0x22b   :  { %4742 = vmatprep.subr.bf16.mxu0 %v8750_v29  ;;  %4806 = vmatprep.subr.bf16.mxu1 %v7214_v8  ;;  %v8754_v8 = vld [vmem:[#allocation104_spill] sm:$0xff] }
 0x22e   :  { %4744 = vmatpush1.bf16.msra.mxu0 %v8751_v2  ;;  %4808 = vmatpush1.bf16.msra.mxu1 %v7219_v47  ;;  %v8755_v47 = vld [vmem:[#allocation106_spill] sm:$0xff] }
 0x22f   :  { %4746 = vmatprep.subr.bf16.mxu0 %v8752_v41  ;;  %4810 = vmatprep.subr.bf16.mxu1 %v7222_v23  ;;  %v8756_v23 = vld [vmem:[#allocation11_spill] sm:$0xff] }
 0x232   :  { %4748 = vmatpush1.bf16.msra.mxu0 %v7090_v33  ;;  %4812 = vmatpush1.bf16.msra.mxu1 %v7227_v3 }
 0x233   :  { %4750 = vmatprep.subr.bf16.mxu0 %v7095_v49  ;;  %4814 = vmatprep.subr.bf16.mxu1 %v7230_v38  ;;  %v8757_v38 = vld [vmem:[#allocation12_spill] sm:$0xff]  ;;  %v1521_v49 = vrot.slane %v7310_v44, 6 }
 0x236   :  { %4752 = vmatpush1.bf16.msra.mxu0 %v8753_v32  ;;  %4816 = vmatpush1.bf16.msra.mxu1 %v7235_v21  ;;  %v8758_v21 = vld [vmem:[#allocation13_spill] sm:$0xff] }
 0x237   :  { %4754 = vmatprep.subr.bf16.mxu0 %v8754_v8  ;;  %4818 = vmatprep.subr.bf16.mxu1 %v7238_v56  ;;  %v8759_v56 = vld [vmem:[#allocation14_spill] sm:$0xff] }
 0x23a   :  { %4756 = vmatpush1.bf16.msra.mxu0 %v8755_v47  ;;  %4820 = vmatpush1.bf16.msra.mxu1 %v7243_v9  ;;  %v8760_v9 = vld [vmem:[#allocation15_spill] sm:$0xff]  ;;  %v8763_v47 = vld [vmem:[#allocation53_spill] sm:$0xff] }
 0x23b   :  { %4822 = vmatprep.subr.bf16.mxu0 %v8756_v23  ;;  %4886 = vmatprep.subr.bf16.mxu1 %v6919_v43  ;;  %v8761_v23 = vld [vmem:[#allocation51_spill] sm:$0xff]  ;;  %v8762_v43 = vld [vmem:[#allocation16_spill] sm:$0xff] }
 0x23d   :  { %1371 = vmatmul.mubr.f32.vlgmr.msra.gmra.mrb[10].mxu0 %v7314_v25  ;;  %1442 = vmatmul.mubr.f32.vlgmr.msra.gmra.mrb[18].mxu1 %v7314_v25  ;;  %v8764_v25 = vld [vmem:[#allocation17_spill] sm:$0xff] }
 0x23e   :  { %4824 = vmatpush1.bf16.msra.mxu0 %v8757_v38  ;;  %4888 = vmatpush1.bf16.msra.mxu1 %v6924_v63  ;;  %v8765_v38 = vld [vmem:[#allocation55_spill] sm:$0xff]  ;;  %v8766_v63 = vld [vmem:[#allocation18_spill] sm:$0xff] }
 0x23f   :  { %4826 = vmatprep.subr.bf16.mxu0 %v8758_v21  ;;  %4890 = vmatprep.subr.bf16.mxu1 %v6930_v5  ;;  %v8767_v21 = vld [vmem:[#allocation57_spill] sm:$0xff]  ;;  %v8768_v5 = vld [vmem:[#allocation19_spill] sm:$0xff] }
 0x242   :  { %4828 = vmatpush1.bf16.msra.mxu0 %v8759_v56  ;;  %4892 = vmatpush1.bf16.msra.mxu1 %v6938_v26  ;;  %v8769_v56 = vld [vmem:[#allocation59_spill] sm:$0xff]  ;;  %v8770_v26 = vld [vmem:[#allocation20_spill] sm:$0xff] }
 0x243   :  { %4830 = vmatprep.subr.bf16.mxu0 %v8760_v9  ;;  %4894 = vmatprep.subr.bf16.mxu1 %v8761_v23  ;;  %v8771_v9 = vld [vmem:[#allocation61_spill] sm:$0xff] }
 0x244   :  { %v8772_v23 = vld [vmem:[#allocation21_spill] sm:$0xff] }
 0x246   :  { %4832 = vmatpush1.bf16.msra.mxu0 %v8762_v43  ;;  %4896 = vmatpush1.bf16.msra.mxu1 %v8763_v47  ;;  %v8773_v43 = vld [vmem:[#allocation63_spill] sm:$0xff]  ;;  %v8774_v47 = vld [vmem:[#allocation22_spill] sm:$0xff] }
 0x247   :  { %4834 = vmatprep.subr.bf16.mxu0 %v8764_v25  ;;  %4898 = vmatprep.subr.bf16.mxu1 %v8765_v38  ;;  %v8775_v25 = vld [vmem:[#allocation65_spill] sm:$0xff]  ;;  %v8776_v38 = vld [vmem:[#allocation23_spill] sm:$0xff] }
 0x24a   :  { %4836 = vmatpush1.bf16.msra.mxu0 %v8766_v63  ;;  %4900 = vmatpush1.bf16.msra.mxu1 %v8767_v21  ;;  %v8777_v21 = vld [vmem:[#allocation24_spill] sm:$0xff]  ;;  %v1159_v63 = vld [vmem:[#allocation2 + $0x18] sm:$0xc] }
 0x24b   :  { %4838 = vmatprep.subr.bf16.mxu0 %v8768_v5  ;;  %4902 = vmatprep.subr.bf16.mxu1 %v8769_v56  ;;  %v8778_v56 = vld [vmem:[#allocation25_spill] sm:$0xff] }
 0x24e   :  { %4840 = vmatpush1.bf16.msra.mxu0 %v8770_v26  ;;  %4904 = vmatpush1.bf16.msra.mxu1 %v8771_v9  ;;  %v8779_v9 = vld [vmem:[#allocation26_spill] sm:$0xff] }
 0x24f   :  { %4842 = vmatprep.subr.bf16.mxu0 %v8772_v23  ;;  %4906 = vmatprep.subr.bf16.mxu1 %v8773_v43  ;;  %v8780_v43 = vld [vmem:[#allocation27_spill] sm:$0xff] }
 0x252   :  { %4844 = vmatpush1.bf16.msra.mxu0 %v8774_v47  ;;  %4908 = vmatpush1.bf16.msra.mxu1 %v8775_v25  ;;  %v8781_v47 = vld [vmem:[#allocation75_spill] sm:$0xff]  ;;  %v8782_v25 = vld [vmem:[#allocation28_spill] sm:$0xff] }
 0x253   :  { %4846 = vmatprep.subr.bf16.mxu0 %v8776_v38  ;;  %4910 = vmatprep.subr.bf16.mxu1 %v8711_v53  ;;  %v8783_v38 = vld [vmem:[#allocation77_spill] sm:$0xff] }
 0x254   :  { %v8784_v53 = vld [vmem:[#allocation29_spill] sm:$0xff] }
 0x256   :  { %4848 = vmatpush1.bf16.msra.mxu0 %v8777_v21  ;;  %4912 = vmatpush1.bf16.msra.mxu1 %v8712_v11  ;;  %v8785_v21 = vld [vmem:[#allocation79_spill] sm:$0xff]  ;;  %v8786_v11 = vld [vmem:[#allocation30_spill] sm:$0xff] }
 0x257   :  { %4850 = vmatprep.subr.bf16.mxu0 %v8778_v56  ;;  %4914 = vmatprep.subr.bf16.mxu1 %v8713_v27  ;;  %v8787_v56 = vld [vmem:[#allocation81_spill] sm:$0xff]  ;;  %v8788_v27 = vld [vmem:[#allocation31_spill] sm:$0xff] }
 0x25a   :  { %4852 = vmatpush1.bf16.msra.mxu0 %v8779_v9  ;;  %4916 = vmatpush1.bf16.msra.mxu1 %v8714_v6  ;;  %v8789_v9 = vld [vmem:[#allocation83_spill] sm:$0xff]  ;;  %v8790_v6 = vld [vmem:[#allocation32_spill] sm:$0xff] }
 0x25b   :  { %4854 = vmatprep.subr.bf16.mxu0 %v8780_v43  ;;  %4918 = vmatprep.subr.bf16.mxu1 %v8781_v47  ;;  %v8791_v43 = vld [vmem:[#allocation85_spill] sm:$0xff] }
 0x25c   :  { %v8792_v47 = vld [vmem:[#allocation33_spill] sm:$0xff] }
 0x25e   :  { %4856 = vmatpush1.bf16.msra.mxu0 %v8782_v25  ;;  %4920 = vmatpush1.bf16.msra.mxu1 %v8783_v38  ;;  %v8793_v25 = vld [vmem:[#allocation87_spill] sm:$0xff]  ;;  %v8794_v38 = vld [vmem:[#allocation34_spill] sm:$0xff] }
 0x25f   :  { %4858 = vmatprep.subr.bf16.mxu0 %v8784_v53  ;;  %4922 = vmatprep.subr.bf16.mxu1 %v8785_v21  ;;  %v8795_v53 = vld [vmem:[#allocation89_spill] sm:$0xff]  ;;  %v8796_v21 = vld [vmem:[#allocation35_spill] sm:$0xff] }
 0x262   :  { %4860 = vmatpush1.bf16.msra.mxu0 %v8786_v11  ;;  %4924 = vmatpush1.bf16.msra.mxu1 %v8787_v56  ;;  %v8797_v11 = vld [vmem:[#allocation91_spill] sm:$0xff]  ;;  %v8798_v56 = vld [vmem:[#allocation36_spill] sm:$0xff] }
 0x263   :  { %4862 = vmatprep.subr.bf16.mxu0 %v8788_v27  ;;  %4926 = vmatprep.subr.bf16.mxu1 %v8789_v9  ;;  %v8799_v27 = vld [vmem:[#allocation93_spill] sm:$0xff] }
 0x264   :  { %v8800_v9 = vld [vmem:[#allocation37_spill] sm:$0xff] }
 0x266   :  { %4864 = vmatpush1.bf16.msra.mxu0 %v8790_v6  ;;  %4928 = vmatpush1.bf16.msra.mxu1 %v8791_v43  ;;  %v8801_v6 = vld [vmem:[#allocation95_spill] sm:$0xff]  ;;  %v8802_v43 = vld [vmem:[#allocation38_spill] sm:$0xff] }
 0x267   :  { %4866 = vmatprep.subr.bf16.mxu0 %v8792_v47  ;;  %4930 = vmatprep.subr.bf16.mxu1 %v8793_v25  ;;  %v8803_v47 = vld [vmem:[#allocation97_spill] sm:$0xff]  ;;  %v8804_v25 = vld [vmem:[#allocation39_spill] sm:$0xff] }
 0x26a   :  { %4868 = vmatpush1.bf16.msra.mxu0 %v8794_v38  ;;  %4932 = vmatpush1.bf16.msra.mxu1 %v8795_v53  ;;  %v8805_v38 = vld [vmem:[#allocation99_spill] sm:$0xff]  ;;  %v8806_v53 = vld [vmem:[#allocation40_spill] sm:$0xff] }
 0x26b   :  { %4870 = vmatprep.subr.bf16.mxu0 %v8796_v21  ;;  %4934 = vmatprep.subr.bf16.mxu1 %v8797_v11  ;;  %v8807_v21 = vld [vmem:[#allocation101_spill] sm:$0xff] }
 0x26c   :  { %v8808_v11 = vld [vmem:[#allocation41_spill] sm:$0xff] }
 0x26e   :  { %4872 = vmatpush1.bf16.msra.mxu0 %v8798_v56  ;;  %4936 = vmatpush1.bf16.msra.mxu1 %v8799_v27  ;;  %v8809_v56 = vld [vmem:[#allocation103_spill] sm:$0xff]  ;;  %v8810_v27 = vld [vmem:[#allocation42_spill] sm:$0xff] }
 0x26f   :  { %4874 = vmatprep.subr.bf16.mxu0 %v8800_v9  ;;  %4938 = vmatprep.subr.bf16.mxu1 %v8801_v6  ;;  %v8811_v9 = vld [vmem:[#allocation105_spill] sm:$0xff]  ;;  %v8812_v6 = vld [vmem:[#allocation44_spill] sm:$0xff] }
 0x272   :  { %4876 = vmatpush1.bf16.msra.mxu0 %v8802_v43  ;;  %4940 = vmatpush1.bf16.msra.mxu1 %v8803_v47  ;;  %v8813_v43 = vld [vmem:[#allocation107_spill] sm:$0xff] }
 0x273   :  { %4878 = vmatprep.subr.bf16.mxu0 %v8804_v25  ;;  %4942 = vmatprep.subr.bf16.mxu1 %v8805_v38 }
 0x276   :  { %4880 = vmatpush1.bf16.msra.mxu0 %v8806_v53  ;;  %4944 = vmatpush1.bf16.msra.mxu1 %v8807_v21  ;;  %v1158_v53 = vld [vmem:[#allocation2 + $0x10] sm:$0xc] }
 0x277   :  { %4882 = vmatprep.subr.bf16.mxu0 %v8808_v11  ;;  %4946 = vmatprep.subr.bf16.mxu1 %v8809_v56 }
 0x27a   :  { %4884 = vmatpush1.bf16.msra.mxu0 %v8810_v27  ;;  %4948 = vmatpush1.bf16.msra.mxu1 %v8811_v9 }
 0x27b   :  { %4950 = vmatprep.subr.bf16.mxu0 %v8812_v6  ;;  %5014 = vmatprep.subr.bf16.mxu1 %v8813_v43  ;;  %v1520_v43 = vrot.slane %v7308_v60, 6 }
 0x2d0   :  { %v1230_v47 = vpop.f32.mrb[8].mxu0  ;;  %v1301_v25 = vpop.f32.mrb[16].mxu1 }
 0x2d1   :  { %v1458_v23 = vrot.slane %v1301_v25, 6  ;;  %v1232_v38 = vpop.f32.mrb[9].mxu0  ;;  %v1303_v26 = vpop.f32.mrb[17].mxu1 }
 0x2d2   :  { %v1459_v5 = vrot.slane %v1303_v26, 6 }
 0x2d3   :  { %v1474_v21 = vadd.f32 %v1458_v23, %v1158_v53  ;;  %v1456_v53 = vrot.slane %v1230_v47, 6  ;;  %v1160_v47 = vld [vmem:[#allocation2 + $0x20] sm:$0xc] }
 0x2d4   :  { %v1475_v11 = vadd.f32 %v1459_v5, %v1159_v63  ;;  %v1457_v63 = vrot.slane %v1232_v38, 6  ;;  %v1162_v38 = vld [vmem:[#allocation2 + $0x30] sm:$0xc] }
 0x2d5   :  { %v4034_v8 = vmul.f32 -1.442695, %v1474_v21  ;;  %v1156_v21 = vld [vmem:[#allocation2] sm:$0xc] }
 0x2d6   :  { %v4035_v56 = vmul.f32 -1.442695, %v1475_v11  ;;  %v1472_v5 = vadd.f32 %v1456_v53, %v1156_v21 }
 0x2d7   :  { %6460 = vpow2.f32 %v4034_v8  ;;  %v1157_v8 = vld [vmem:[#allocation2 + $0x8] sm:$0xc] }
 0x2d8   :  { %6462 = vpow2.f32 %v4035_v56  ;;  %v1473_v56 = vadd.f32 %v1457_v63, %v1157_v8  ;;  %v4032_v11 = vmul.f32 -1.442695, %v1472_v5  ;;  %v1161_v5 = vld [vmem:[#allocation2 + $0x28] sm:$0xc]  ;;  %v1163_v8 = vld [vmem:[#allocation2 + $0x38] sm:$0xc] }
 0x2e1   :  { %v6461_v27 = vpop.eup %6460 }
 0x2e2   :  { %v1500_v9 = vadd.f32 1.0, %v6461_v27  ;;  %v6463_v32 = vpop.eup %6462  ;;  %v4033_v27 = vmul.f32 -1.442695, %v1473_v56 }
 0x2e3   :  { %v1501_v6 = vadd.f32 1.0, %v6463_v32 }
 0x2e4   :  { %6464 = vrcp.f32 %v1500_v9 }
 0x2e5   :  { %6466 = vrcp.f32 %v1501_v6 }
 0x2e6   :  { %6468 = vpow2.f32 %v4032_v11 }
 0x2e7   :  { %6470 = vpow2.f32 %v4033_v27 }
 0x2ee   :  { %v6465_v25 = vpop.eup %6464 }
 0x2ef   :  { %v1524_v3 = vmul.f32 %v6465_v25, %v1520_v43  ;;  %v6467_v26 = vpop.eup %6466 }
 0x2f0   :  { %v1525_v23 = vmul.f32 %v6467_v26, %v1521_v49  ;;  %v6469_v32 = vpop.eup %6468 }
 0x2f1   :  { %v6471_v9 = vpop.eup %6470  ;;  %v1498_v6 = vadd.f32 1.0, %v6469_v32 }
 0x2f2   :  { %v1499_v60 = vadd.f32 1.0, %v6471_v9 }
 0x2f3   :  { %6472 = vrcp.f32 %v1498_v6 }
 0x2f4   :  { %6474 = vrcp.f32 %v1499_v60 }
 0x310   :  { %v1372_v33 = vpop.f32.mrb[10].mxu0  ;;  %v1443_v41 = vpop.f32.mrb[18].mxu1 }
 0x311   :  { %v1460_v44 = vrot.slane %v1372_v33, 6  ;;  %v1462_v43 = vrot.slane %v1443_v41, 6  ;;  %v1374_v25 = vpop.f32.mrb[11].mxu0  ;;  %v1445_v49 = vpop.f32.mrb[19].mxu1 }
 0x312   :  { %v1461_v26 = vrot.slane %v1374_v25, 6  ;;  %v1463_v53 = vrot.slane %v1445_v49, 6  ;;  %v6473_v33 = vpop.eup %6472 }
 0x313   :  { %v1476_v63 = vadd.f32 %v1460_v44, %v1160_v47  ;;  %v1478_v21 = vadd.f32 %v1462_v43, %v1162_v38  ;;  %v6475_v41 = vpop.eup %6474 }
 0x314   :  { %v1477_v56 = vadd.f32 %v1461_v26, %v1161_v5  ;;  %v1479_v11 = vadd.f32 %v1463_v53, %v1163_v8 }
 0x315   :  { %v4036_v27 = vmul.f32 -1.442695, %v1476_v63  ;;  %6476 = vtanh.f32 %v1478_v21 }
 0x316   :  { %v4037_v32 = vmul.f32 -1.442695, %v1477_v56  ;;  %6478 = vtanh.f32 %v1479_v11  ;;  %v8815_v56 = vld [vmem:[#allocation109_spill] sm:$0xff]  ;;  %v8816_v11 = vld [vmem:[#allocation110_spill] sm:$0xff] }
 0x317   :  { %6480 = vpow2.f32 %v4036_v27  ;;  %v8817_v27 = vld [vmem:[#allocation111_spill] sm:$0xff] }
 0x318   :  { %6482 = vpow2.f32 %v4037_v32  ;;  %v8818_v32 = vld [vmem:[#allocation112_spill] sm:$0xff] }
 0x31f   :  { %v6477_v9 = vpop.eup %6476 }
 0x320   :  { %v6479_v2 = vpop.eup %6478  ;;  %v1526_v25 = vmul.f32 %v6477_v9, %v6473_v33  ;;  %v8819_v33 = vld [vmem:[#allocation113_spill] sm:$0xff] }
 0x321   :  { %v6481_v49 = vpop.eup %6480  ;;  %v1527_v6 = vmul.f32 %v6479_v2, %v6475_v41  ;;  %v8820_v41 = vld [vmem:[#allocation116_spill] sm:$0xff]  ;;  %v8821_v9 = vld [vmem:[#allocation117_spill] sm:$0xff] }
 0x322   :  { %v6483_v44 = vpop.eup %6482  ;;  %v1502_v43 = vadd.f32 1.0, %v6481_v49  ;;  %v7451_v47 = vadd.f32 %v1526_v25, %v1524_v3  ;;  %v8822_v25 = vld [vmem:[#allocation94_spill] sm:$0xff] }
 0x323   :  { %v1503_v60 = vadd.f32 1.0, %v6483_v44  ;;  %v7453_v38 = vadd.f32 %v1527_v6, %v1525_v23  ;;  %v8814_v23 = vld [vmem:[#allocation108_spill] sm:$0xff]  ;;  %v8823_v49 = vld [vmem:[#allocation118_spill] sm:$0xff]  ;;  %v8825_v44 = vld [vmem:[#allocation119_spill] sm:$0xff] }
 0x324   :  { %6484 = vrcp.f32 %v1502_v43  ;;  %v8824_v6 = vld [vmem:[#allocation96_spill] sm:$0xff]  ;;  %v8826_v43 = vld [vmem:[#allocation98_spill] sm:$0xff] }
 0x325   :  { %6486 = vtanh.f32 %v7451_v47 }
 0x326   :  { %6488 = vrcp.f32 %v1503_v60  ;;  %v8827_v60 = vld [vmem:[#allocation120_spill] sm:$0xff] }
 0x327   :  { %6490 = vtanh.f32 %v7453_v38 }
 0x32e   :  { %v6485_v26 = vpop.eup %6484 }
 0x32f   :  { %v6487_v53 = vpop.eup %6486 }
 0x330   :  { %v6489_v63 = vpop.eup %6488  ;;  %v1532_v21 = vmul.f32 %v6487_v53, %v6485_v26  ;;  %v8828_v26 = vld [vmem:[#allocation100_spill] sm:$0xff]  ;;  %v8829_v53 = vld [vmem:[#allocation121_spill] sm:$0xff] }
 0x331   :  { %v6491_v5 = vpop.eup %6490 }
 0x332   :  { %v1533_v8 = vmul.f32 %v6491_v5, %v6489_v63  ;;  %1534 = vst [vmem:[#allocation3] sm:$0xc] %v1532_v21  ;;  %v7457_v3 = vrot.slane %v1532_v21, 2  ;;  %v8830_v63 = vld [vmem:[#allocation102_spill] sm:$0xff]  ;;  %v8832_v5 = vld [vmem:[#allocation104_spill] sm:$0xff] }
 0x333   :  { %v8831_v21 = vld [vmem:[#allocation122_spill] sm:$0xff] }
 0x334   :  { %1535 = vst [vmem:[#allocation4 + $0xa] sm:$0xc] %v1533_v8  ;;  %v1547_v2 = vrot.slane %v1533_v8, 2  ;;  %v8833_v8 = vld [vmem:[#allocation123_spill] sm:$0xff] }
 0x336   :  { %1614 = vmatprep.mubr.f32.mxu0 %v1547_v2  ;;  %1685 = vmatprep.mubr.f32.mxu1 %v1547_v2 }
 0x337   :  { %1615 = vmatmul.mubr.f32.vlgmr.msra.gmra.mrb[12].mxu0 %v7457_v3  ;;  %1686 = vmatmul.mubr.f32.vlgmr.msra.gmra.mrb[20].mxu1 %v7457_v3 }
 0x338   :  { %4952 = vmatpush1.bf16.msra.mxu0 %v8727_v39  ;;  %5016 = vmatpush1.bf16.msra.mxu1 %v7120_v45 }
 0x339   :  { %1756 = vmatprep.mubr.f32.mxu0 %v1547_v2  ;;  %1827 = vmatprep.mubr.f32.mxu1 %v1547_v2  ;;  %v8834_v2 = vld [vmem:[#allocation106_spill] sm:$0xff] }
 0x33a   :  { %4954 = vmatprep.subr.bf16.mxu0 %v8728_v30  ;;  %5018 = vmatprep.subr.bf16.mxu1 %v7124_v61 }
 0x33c   :  { %4956 = vmatpush1.bf16.msra.mxu0 %v8729_v10  ;;  %5020 = vmatpush1.bf16.msra.mxu1 %v7130_v35 }
 0x33d   :  { %4958 = vmatprep.subr.bf16.mxu0 %v8730_v52  ;;  %5022 = vmatprep.subr.bf16.mxu1 %v7133_v22 }
 0x340   :  { %4960 = vmatpush1.bf16.msra.mxu0 %v8731_v48  ;;  %5024 = vmatpush1.bf16.msra.mxu1 %v7139_v42 }
 0x341   :  { %4962 = vmatprep.subr.bf16.mxu0 %v8732_v20  ;;  %5026 = vmatprep.subr.bf16.mxu1 %v7142_v15 }
 0x344   :  { %4964 = vmatpush1.bf16.msra.mxu0 %v8733_v14  ;;  %5028 = vmatpush1.bf16.msra.mxu1 %v7147_v50 }
 0x345   :  { %4966 = vmatprep.subr.bf16.mxu0 %v8734_v31  ;;  %5030 = vmatprep.subr.bf16.mxu1 %v7150_v37 }
 0x348   :  { %4968 = vmatpush1.bf16.msra.mxu0 %v8735_v40  ;;  %5032 = vmatpush1.bf16.msra.mxu1 %v7155_v62 }
 0x349   :  { %4970 = vmatprep.subr.bf16.mxu0 %v8736_v13  ;;  %5034 = vmatprep.subr.bf16.mxu1 %v7158_v7 }
 0x34c   :  { %4972 = vmatpush1.bf16.msra.mxu0 %v8737_v34  ;;  %5036 = vmatpush1.bf16.msra.mxu1 %v7163_v12 }
 0x34d   :  { %4974 = vmatprep.subr.bf16.mxu0 %v8738_v46  ;;  %5038 = vmatprep.subr.bf16.mxu1 %v7166_v55 }
 0x350   :  { %4976 = vmatpush1.bf16.msra.mxu0 %v8739_v58  ;;  %5040 = vmatpush1.bf16.msra.mxu1 %v7171_v24 }
 0x351   :  { %4978 = vmatprep.subr.bf16.mxu0 %v8740_v16  ;;  %5042 = vmatprep.subr.bf16.mxu1 %v7174_v4 }
 0x354   :  { %4980 = vmatpush1.bf16.msra.mxu0 %v8741_v1  ;;  %5044 = vmatpush1.bf16.msra.mxu1 %v8814_v23 }
 0x355   :  { %4982 = vmatprep.subr.bf16.mxu0 %v8742_v59  ;;  %5046 = vmatprep.subr.bf16.mxu1 %v8815_v56 }
 0x358   :  { %4984 = vmatpush1.bf16.msra.mxu0 %v8743_v19  ;;  %5048 = vmatpush1.bf16.msra.mxu1 %v8816_v11 }
 0x359   :  { %4986 = vmatprep.subr.bf16.mxu0 %v8744_v54  ;;  %5050 = vmatprep.subr.bf16.mxu1 %v8817_v27 }
 0x35c   :  { %4988 = vmatpush1.bf16.msra.mxu0 %v8745_v0  ;;  %5052 = vmatpush1.bf16.msra.mxu1 %v8818_v32 }
 0x35d   :  { %4990 = vmatprep.subr.bf16.mxu0 %v8746_v28  ;;  %5054 = vmatprep.subr.bf16.mxu1 %v8819_v33 }
 0x360   :  { %4992 = vmatpush1.bf16.msra.mxu0 %v8747_v36  ;;  %5056 = vmatpush1.bf16.msra.mxu1 %v7203_v18 }
 0x361   :  { %4994 = vmatprep.subr.bf16.mxu0 %v8748_v17  ;;  %5058 = vmatprep.subr.bf16.mxu1 %v7206_v57 }
 0x364   :  { %4996 = vmatpush1.bf16.msra.mxu0 %v8749_v51  ;;  %5060 = vmatpush1.bf16.msra.mxu1 %v8820_v41  ;;  %v1907_v51 = vrot.slane %v7453_v38, 6 }
 0x365   :  { %4998 = vmatprep.subr.bf16.mxu0 %v8750_v29  ;;  %5062 = vmatprep.subr.bf16.mxu1 %v8821_v9  ;;  %v1539_v9 = vld [vmem:[#allocation2 + $0x18] sm:$0x30] }
 0x368   :  { %5000 = vmatpush1.bf16.msra.mxu0 %v8822_v25  ;;  %5064 = vmatpush1.bf16.msra.mxu1 %v8823_v49 }
 0x369   :  { %5002 = vmatprep.subr.bf16.mxu0 %v8824_v6  ;;  %5066 = vmatprep.subr.bf16.mxu1 %v8825_v44  ;;  %v8835_v6 = vld [vmem:[#allocation124_spill] sm:$0xff]  ;;  %v8836_v44 = vld [vmem:[#allocation11_spill] sm:$0xff] }
 0x36c   :  { %5004 = vmatpush1.bf16.msra.mxu0 %v8826_v43  ;;  %5068 = vmatpush1.bf16.msra.mxu1 %v8827_v60  ;;  %v8837_v43 = vld [vmem:[#allocation43_spill] sm:$0xff] }
 0x36d   :  { %5006 = vmatprep.subr.bf16.mxu0 %v8828_v26  ;;  %5070 = vmatprep.subr.bf16.mxu1 %v8829_v53  ;;  %v8838_v53 = vld [vmem:[#allocation12_spill] sm:$0xff]  ;;  %v8847_v26 = vld [vmem:[#allocation53_spill] sm:$0xff] }
 0x370   :  { %5008 = vmatpush1.bf16.msra.mxu0 %v8830_v63  ;;  %5072 = vmatpush1.bf16.msra.mxu1 %v8831_v21  ;;  %v8839_v63 = vld [vmem:[#allocation45_spill] sm:$0xff] }
 0x371   :  { %5010 = vmatprep.subr.bf16.mxu0 %v8832_v5  ;;  %5074 = vmatprep.subr.bf16.mxu1 %v8833_v8  ;;  %v8840_v21 = vld [vmem:[#allocation13_spill] sm:$0xff]  ;;  %v8841_v5 = vld [vmem:[#allocation47_spill] sm:$0xff]  ;;  %v8842_v8 = vld [vmem:[#allocation14_spill] sm:$0xff] }
 0x374   :  { %5012 = vmatpush1.bf16.msra.mxu0 %v8834_v2  ;;  %5076 = vmatpush1.bf16.msra.mxu1 %v8835_v6  ;;  %v8843_v2 = vld [vmem:[#allocation49_spill] sm:$0xff]  ;;  %v8844_v6 = vld [vmem:[#allocation15_spill] sm:$0xff] }
 0x375   :  { %5078 = vmatprep.subr.bf16.mxu0 %v8836_v44  ;;  %5142 = vmatprep.subr.bf16.mxu1 %v8837_v43  ;;  %v8845_v44 = vld [vmem:[#allocation51_spill] sm:$0xff]  ;;  %v8846_v43 = vld [vmem:[#allocation16_spill] sm:$0xff] }
 0x377   :  { %1757 = vmatmul.mubr.f32.vlgmr.msra.gmra.mrb[14].mxu0 %v7457_v3  ;;  %1828 = vmatmul.mubr.f32.vlgmr.msra.gmra.mrb[22].mxu1 %v7457_v3  ;;  %v8848_v3 = vld [vmem:[#allocation17_spill] sm:$0xff] }
 0x378   :  { %5080 = vmatpush1.bf16.msra.mxu0 %v8838_v53  ;;  %5144 = vmatpush1.bf16.msra.mxu1 %v8839_v63  ;;  %v8849_v53 = vld [vmem:[#allocation55_spill] sm:$0xff]  ;;  %v8850_v63 = vld [vmem:[#allocation18_spill] sm:$0xff] }
 0x379   :  { %5082 = vmatprep.subr.bf16.mxu0 %v8840_v21  ;;  %5146 = vmatprep.subr.bf16.mxu1 %v8841_v5  ;;  %v8851_v21 = vld [vmem:[#allocation57_spill] sm:$0xff]  ;;  %v8852_v5 = vld [vmem:[#allocation19_spill] sm:$0xff] }
 0x37c   :  { %5084 = vmatpush1.bf16.msra.mxu0 %v8842_v8  ;;  %5148 = vmatpush1.bf16.msra.mxu1 %v8843_v2  ;;  %v8853_v8 = vld [vmem:[#allocation59_spill] sm:$0xff]  ;;  %v8854_v2 = vld [vmem:[#allocation20_spill] sm:$0xff] }
 0x37d   :  { %5086 = vmatprep.subr.bf16.mxu0 %v8844_v6  ;;  %5150 = vmatprep.subr.bf16.mxu1 %v8845_v44  ;;  %v8855_v6 = vld [vmem:[#allocation61_spill] sm:$0xff] }
 0x37e   :  { %v8856_v44 = vld [vmem:[#allocation21_spill] sm:$0xff] }
 0x380   :  { %5088 = vmatpush1.bf16.msra.mxu0 %v8846_v43  ;;  %5152 = vmatpush1.bf16.msra.mxu1 %v8847_v26  ;;  %v8857_v43 = vld [vmem:[#allocation63_spill] sm:$0xff]  ;;  %v8858_v26 = vld [vmem:[#allocation22_spill] sm:$0xff] }
 0x381   :  { %5090 = vmatprep.subr.bf16.mxu0 %v8848_v3  ;;  %5154 = vmatprep.subr.bf16.mxu1 %v8849_v53  ;;  %v8859_v3 = vld [vmem:[#allocation65_spill] sm:$0xff]  ;;  %v8860_v53 = vld [vmem:[#allocation23_spill] sm:$0xff] }
 0x384   :  { %5092 = vmatpush1.bf16.msra.mxu0 %v8850_v63  ;;  %5156 = vmatpush1.bf16.msra.mxu1 %v8851_v21  ;;  %v8861_v63 = vld [vmem:[#allocation67_spill] sm:$0xff]  ;;  %v8862_v21 = vld [vmem:[#allocation24_spill] sm:$0xff] }
 0x385   :  { %5094 = vmatprep.subr.bf16.mxu0 %v8852_v5  ;;  %5158 = vmatprep.subr.bf16.mxu1 %v8853_v8  ;;  %v8863_v5 = vld [vmem:[#allocation69_spill] sm:$0xff] }
 0x386   :  { %v8864_v8 = vld [vmem:[#allocation25_spill] sm:$0xff] }
 0x388   :  { %5096 = vmatpush1.bf16.msra.mxu0 %v8854_v2  ;;  %5160 = vmatpush1.bf16.msra.mxu1 %v8855_v6  ;;  %v8865_v2 = vld [vmem:[#allocation71_spill] sm:$0xff]  ;;  %v8866_v6 = vld [vmem:[#allocation26_spill] sm:$0xff] }
 0x389   :  { %5098 = vmatprep.subr.bf16.mxu0 %v8856_v44  ;;  %5162 = vmatprep.subr.bf16.mxu1 %v8857_v43  ;;  %v8867_v44 = vld [vmem:[#allocation73_spill] sm:$0xff]  ;;  %v8868_v43 = vld [vmem:[#allocation27_spill] sm:$0xff] }
 0x38c   :  { %5100 = vmatpush1.bf16.msra.mxu0 %v8858_v26  ;;  %5164 = vmatpush1.bf16.msra.mxu1 %v8859_v3  ;;  %v8869_v26 = vld [vmem:[#allocation75_spill] sm:$0xff]  ;;  %v8870_v3 = vld [vmem:[#allocation28_spill] sm:$0xff] }
 0x38d   :  { %5102 = vmatprep.subr.bf16.mxu0 %v8860_v53  ;;  %5166 = vmatprep.subr.bf16.mxu1 %v8861_v63  ;;  %v8871_v53 = vld [vmem:[#allocation77_spill] sm:$0xff] }
 0x38e   :  { %v8872_v63 = vld [vmem:[#allocation29_spill] sm:$0xff] }
 0x390   :  { %5104 = vmatpush1.bf16.msra.mxu0 %v8862_v21  ;;  %5168 = vmatpush1.bf16.msra.mxu1 %v8863_v5  ;;  %v8873_v21 = vld [vmem:[#allocation79_spill] sm:$0xff]  ;;  %v8874_v5 = vld [vmem:[#allocation30_spill] sm:$0xff] }
 0x391   :  { %5106 = vmatprep.subr.bf16.mxu0 %v8864_v8  ;;  %5170 = vmatprep.subr.bf16.mxu1 %v8865_v2  ;;  %v8875_v8 = vld [vmem:[#allocation81_spill] sm:$0xff]  ;;  %v8876_v2 = vld [vmem:[#allocation31_spill] sm:$0xff] }
 0x394   :  { %5108 = vmatpush1.bf16.msra.mxu0 %v8866_v6  ;;  %5172 = vmatpush1.bf16.msra.mxu1 %v8867_v44  ;;  %v8877_v6 = vld [vmem:[#allocation83_spill] sm:$0xff]  ;;  %v8878_v44 = vld [vmem:[#allocation32_spill] sm:$0xff] }
 0x395   :  { %5110 = vmatprep.subr.bf16.mxu0 %v8868_v43  ;;  %5174 = vmatprep.subr.bf16.mxu1 %v8869_v26  ;;  %v8879_v43 = vld [vmem:[#allocation85_spill] sm:$0xff] }
 0x396   :  { %v8880_v26 = vld [vmem:[#allocation33_spill] sm:$0xff] }
 0x398   :  { %5112 = vmatpush1.bf16.msra.mxu0 %v8870_v3  ;;  %5176 = vmatpush1.bf16.msra.mxu1 %v8871_v53  ;;  %v8881_v3 = vld [vmem:[#allocation87_spill] sm:$0xff]  ;;  %v8882_v53 = vld [vmem:[#allocation34_spill] sm:$0xff] }
 0x399   :  { %5114 = vmatprep.subr.bf16.mxu0 %v8872_v63  ;;  %5178 = vmatprep.subr.bf16.mxu1 %v8873_v21  ;;  %v8883_v63 = vld [vmem:[#allocation89_spill] sm:$0xff]  ;;  %v8884_v21 = vld [vmem:[#allocation35_spill] sm:$0xff] }
 0x39c   :  { %5116 = vmatpush1.bf16.msra.mxu0 %v8874_v5  ;;  %5180 = vmatpush1.bf16.msra.mxu1 %v8875_v8  ;;  %v8885_v5 = vld [vmem:[#allocation91_spill] sm:$0xff]  ;;  %v8886_v8 = vld [vmem:[#allocation36_spill] sm:$0xff] }
 0x39d   :  { %5118 = vmatprep.subr.bf16.mxu0 %v8876_v2  ;;  %5182 = vmatprep.subr.bf16.mxu1 %v8877_v6  ;;  %v8887_v2 = vld [vmem:[#allocation93_spill] sm:$0xff] }
 0x39e   :  { %v8888_v6 = vld [vmem:[#allocation37_spill] sm:$0xff] }
 0x3a0   :  { %5120 = vmatpush1.bf16.msra.mxu0 %v8878_v44  ;;  %5184 = vmatpush1.bf16.msra.mxu1 %v8879_v43  ;;  %v8889_v44 = vld [vmem:[#allocation95_spill] sm:$0xff]  ;;  %v8890_v43 = vld [vmem:[#allocation38_spill] sm:$0xff] }
 0x3a1   :  { %5122 = vmatprep.subr.bf16.mxu0 %v8880_v26  ;;  %5186 = vmatprep.subr.bf16.mxu1 %v8881_v3  ;;  %v8891_v26 = vld [vmem:[#allocation97_spill] sm:$0xff]  ;;  %v8892_v3 = vld [vmem:[#allocation39_spill] sm:$0xff] }
 0x3a4   :  { %5124 = vmatpush1.bf16.msra.mxu0 %v8882_v53  ;;  %5188 = vmatpush1.bf16.msra.mxu1 %v8883_v63  ;;  %v8893_v53 = vld [vmem:[#allocation99_spill] sm:$0xff]  ;;  %v8894_v63 = vld [vmem:[#allocation40_spill] sm:$0xff] }
 0x3a5   :  { %5126 = vmatprep.subr.bf16.mxu0 %v8884_v21  ;;  %5190 = vmatprep.subr.bf16.mxu1 %v8885_v5  ;;  %v8895_v21 = vld [vmem:[#allocation101_spill] sm:$0xff] }
 0x3a6   :  { %v8896_v5 = vld [vmem:[#allocation41_spill] sm:$0xff] }
 0x3a8   :  { %5128 = vmatpush1.bf16.msra.mxu0 %v8886_v8  ;;  %5192 = vmatpush1.bf16.msra.mxu1 %v8887_v2  ;;  %v8897_v8 = vld [vmem:[#allocation103_spill] sm:$0xff]  ;;  %v8898_v2 = vld [vmem:[#allocation42_spill] sm:$0xff] }
 0x3a9   :  { %5130 = vmatprep.subr.bf16.mxu0 %v8888_v6  ;;  %5194 = vmatprep.subr.bf16.mxu1 %v8889_v44  ;;  %v8899_v6 = vld [vmem:[#allocation105_spill] sm:$0xff]  ;;  %v8900_v44 = vld [vmem:[#allocation44_spill] sm:$0xff] }
 0x3ac   :  { %5132 = vmatpush1.bf16.msra.mxu0 %v8890_v43  ;;  %5196 = vmatpush1.bf16.msra.mxu1 %v8891_v26  ;;  %v8901_v43 = vld [vmem:[#allocation107_spill] sm:$0xff] }
 0x3ad   :  { %5134 = vmatprep.subr.bf16.mxu0 %v8892_v3  ;;  %5198 = vmatprep.subr.bf16.mxu1 %v8893_v53 }
 0x3b0   :  { %5136 = vmatpush1.bf16.msra.mxu0 %v8894_v63  ;;  %5200 = vmatpush1.bf16.msra.mxu1 %v8895_v21  ;;  %v1538_v63 = vld [vmem:[#allocation2 + $0x10] sm:$0x30] }
 0x3b1   :  { %5138 = vmatprep.subr.bf16.mxu0 %v8896_v5  ;;  %5202 = vmatprep.subr.bf16.mxu1 %v8897_v8 }
 0x3b4   :  { %5140 = vmatpush1.bf16.msra.mxu0 %v8898_v2  ;;  %5204 = vmatpush1.bf16.msra.mxu1 %v8899_v6 }
 0x3b5   :  { %5206 = vmatprep.subr.bf16.mxu0 %v8900_v44  ;;  %5270 = vmatprep.subr.bf16.mxu1 %v8901_v43  ;;  %v1906_v43 = vrot.slane %v7451_v47, 6 }
 0x40a   :  { %v1616_v26 = vpop.f32.mrb[12].mxu0  ;;  %v1687_v3 = vpop.f32.mrb[20].mxu1 }
 0x40b   :  { %v1844_v60 = vrot.slane %v1687_v3, 4  ;;  %v1618_v53 = vpop.f32.mrb[13].mxu0  ;;  %v1689_v49 = vpop.f32.mrb[21].mxu1 }
 0x40c   :  { %v1845_v25 = vrot.slane %v1689_v49, 4 }
 0x40d   :  { %v1860_v21 = vadd.f32 %v1844_v60, %v1538_v63  ;;  %v1842_v63 = vrot.slane %v1616_v26, 4  ;;  %v1540_v26 = vld [vmem:[#allocation2 + $0x20] sm:$0x30] }
 0x40e   :  { %v1861_v5 = vadd.f32 %v1845_v25, %v1539_v9  ;;  %v1843_v9 = vrot.slane %v1618_v53, 4  ;;  %v1536_v25 = vld [vmem:[#allocation2] sm:$0x30]  ;;  %v1542_v53 = vld [vmem:[#allocation2 + $0x30] sm:$0x30] }
 0x40f   :  { %v4040_v29 = vmul.f32 -1.442695, %v1860_v21  ;;  %v1858_v21 = vadd.f32 %v1842_v63, %v1536_v25 }
 0x410   :  { %v4041_v8 = vmul.f32 -1.442695, %v1861_v5 }
 0x411   :  { %6492 = vpow2.f32 %v4040_v29  ;;  %v1537_v29 = vld [vmem:[#allocation2 + $0x8] sm:$0x30] }
 0x412   :  { %6494 = vpow2.f32 %v4041_v8  ;;  %v1859_v5 = vadd.f32 %v1843_v9, %v1537_v29  ;;  %v4038_v8 = vmul.f32 -1.442695, %v1858_v21  ;;  %v1541_v21 = vld [vmem:[#allocation2 + $0x28] sm:$0x30]  ;;  %v1543_v29 = vld [vmem:[#allocation2 + $0x38] sm:$0x30] }
 0x41b   :  { %v6493_v2 = vpop.eup %6492 }
 0x41c   :  { %v1886_v6 = vadd.f32 1.0, %v6493_v2  ;;  %v6495_v41 = vpop.eup %6494  ;;  %v4039_v2 = vmul.f32 -1.442695, %v1859_v5 }
 0x41d   :  { %v1887_v44 = vadd.f32 1.0, %v6495_v41 }
 0x41e   :  { %6496 = vrcp.f32 %v1886_v6 }
 0x41f   :  { %6498 = vrcp.f32 %v1887_v44 }
 0x420   :  { %6500 = vpow2.f32 %v4038_v8 }
 0x421   :  { %6502 = vpow2.f32 %v4039_v2 }
 0x428   :  { %v6497_v3 = vpop.eup %6496 }
 0x429   :  { %v1910_v57 = vmul.f32 %v6497_v3, %v1906_v43  ;;  %v6499_v49 = vpop.eup %6498 }
 0x42a   :  { %v1911_v60 = vmul.f32 %v6499_v49, %v1907_v51  ;;  %v6501_v41 = vpop.eup %6500 }
 0x42b   :  { %v6503_v6 = vpop.eup %6502  ;;  %v1884_v44 = vadd.f32 1.0, %v6501_v41 }
 0x42c   :  { %v1885_v47 = vadd.f32 1.0, %v6503_v6 }
 0x42d   :  { %6504 = vrcp.f32 %v1884_v44 }
 0x42e   :  { %6506 = vrcp.f32 %v1885_v47 }
 0x44a   :  { %v1758_v17 = vpop.f32.mrb[14].mxu0  ;;  %v1829_v18 = vpop.f32.mrb[22].mxu1 }
 0x44b   :  { %v1846_v38 = vrot.slane %v1758_v17, 4  ;;  %v1848_v43 = vrot.slane %v1829_v18, 4  ;;  %v1760_v3 = vpop.f32.mrb[15].mxu0  ;;  %v1831_v51 = vpop.f32.mrb[23].mxu1 }
 0x44c   :  { %v1847_v49 = vrot.slane %v1760_v3, 4  ;;  %v1849_v63 = vrot.slane %v1831_v51, 4  ;;  %v6505_v18 = vpop.eup %6504 }
 0x44d   :  { %v1862_v9 = vadd.f32 %v1846_v38, %v1540_v26  ;;  %v1864_v25 = vadd.f32 %v1848_v43, %v1542_v53  ;;  %v6507_v17 = vpop.eup %6506 }
 0x44e   :  { %v1863_v5 = vadd.f32 %v1847_v49, %v1541_v21  ;;  %v1865_v8 = vadd.f32 %v1849_v63, %v1543_v29 }
 0x44f   :  { %v4042_v2 = vmul.f32 -1.442695, %v1862_v9  ;;  %6508 = vtanh.f32 %v1864_v25 }
 0x450   :  { %v4043_v41 = vmul.f32 -1.442695, %v1863_v5  ;;  %6510 = vtanh.f32 %v1865_v8  ;;  %v8903_v5 = vld [vmem:[#allocation114_spill] sm:$0xff]  ;;  %v8904_v8 = vld [vmem:[#allocation88_spill] sm:$0xff] }
 0x451   :  { %6512 = vpow2.f32 %v4042_v2  ;;  %v8905_v2 = vld [vmem:[#allocation115_spill] sm:$0xff] }
 0x452   :  { %6514 = vpow2.f32 %v4043_v41  ;;  %v8906_v41 = vld [vmem:[#allocation90_spill] sm:$0xff] }
 0x459   :  { %v6509_v6 = vpop.eup %6508 }
 0x45a   :  { %v6511_v36 = vpop.eup %6510  ;;  %v1912_v3 = vmul.f32 %v6509_v6, %v6505_v18  ;;  %v8907_v18 = vld [vmem:[#allocation116_spill] sm:$0xff]  ;;  %v8909_v6 = vld [vmem:[#allocation117_spill] sm:$0xff] }
 0x45b   :  { %v6513_v51 = vpop.eup %6512  ;;  %v1913_v44 = vmul.f32 %v6511_v36, %v6507_v17  ;;  %v8908_v17 = vld [vmem:[#allocation92_spill] sm:$0xff] }
 0x45c   :  { %v6515_v38 = vpop.eup %6514  ;;  %v1888_v43 = vadd.f32 1.0, %v6513_v51  ;;  %v7593_v26 = vadd.f32 %v1912_v3, %v1910_v57  ;;  %v8910_v3 = vld [vmem:[#allocation94_spill] sm:$0xff] }
 0x45d   :  { %v1889_v47 = vadd.f32 1.0, %v6515_v38  ;;  %v7595_v53 = vadd.f32 %v1913_v44, %v1911_v60  ;;  %v8902_v60 = vld [vmem:[#allocation86_spill] sm:$0xff]  ;;  %v8912_v44 = vld [vmem:[#allocation96_spill] sm:$0xff]  ;;  %v8913_v38 = vld [vmem:[#allocation119_spill] sm:$0xff] }
 0x45e   :  { %6516 = vrcp.f32 %v1888_v43  ;;  %v8911_v51 = vld [vmem:[#allocation118_spill] sm:$0xff] }
 0x45f   :  { %6518 = vtanh.f32 %v7593_v26  ;;  %v8914_v43 = vld [vmem:[#allocation98_spill] sm:$0xff] }
 0x460   :  { %6520 = vrcp.f32 %v1889_v47  ;;  %v8915_v47 = vld [vmem:[#allocation120_spill] sm:$0xff] }
 0x461   :  { %6522 = vtanh.f32 %v7595_v53 }
 0x468   :  { %v6517_v49 = vpop.eup %6516 }
 0x469   :  { %v6519_v63 = vpop.eup %6518 }
 0x46a   :  { %v6521_v9 = vpop.eup %6520  ;;  %v1918_v25 = vmul.f32 %v6519_v63, %v6517_v49  ;;  %v8916_v49 = vld [vmem:[#allocation100_spill] sm:$0xff]  ;;  %v8917_v63 = vld [vmem:[#allocation121_spill] sm:$0xff] }
 0x46b   :  { %v6523_v21 = vpop.eup %6522 }
 0x46c   :  { %v1919_v29 = vmul.f32 %v6523_v21, %v6521_v9  ;;  %1920 = vst [vmem:[#allocation3] sm:$0x30] %v1918_v25  ;;  %v7599_v57 = vrot.slane %v1918_v25, 4  ;;  %v8918_v9 = vld [vmem:[#allocation102_spill] sm:$0xff]  ;;  %v8920_v21 = vld [vmem:[#allocation104_spill] sm:$0xff] }
 0x46d   :  { %v8919_v25 = vld [vmem:[#allocation122_spill] sm:$0xff] }
 0x46e   :  { %1921 = vst [vmem:[#allocation4 + $0x6] sm:$0x30] %v1919_v29  ;;  %v1933_v36 = vrot.slane %v1919_v29, 4  ;;  %v8921_v29 = vld [vmem:[#allocation123_spill] sm:$0xff] }
 0x470   :  { %2000 = vmatprep.mubr.f32.mxu0 %v1933_v36  ;;  %2071 = vmatprep.mubr.f32.mxu1 %v1933_v36 }
 0x471   :  { %2001 = vmatmul.mubr.f32.vlgmr.msra.gmra.mrb[16].mxu0 %v7599_v57  ;;  %2072 = vmatmul.mubr.f32.vlgmr.msra.gmra.mrb[24].mxu1 %v7599_v57 }
 0x472   :  { %5208 = vmatpush1.bf16.msra.mxu0 %v8727_v39  ;;  %5272 = vmatpush1.bf16.msra.mxu1 %v7120_v45 }
 0x473   :  { %2142 = vmatprep.mubr.f32.mxu0 %v1933_v36  ;;  %2213 = vmatprep.mubr.f32.mxu1 %v1933_v36  ;;  %v8922_v36 = vld [vmem:[#allocation106_spill] sm:$0xff] }
 0x474   :  { %5210 = vmatprep.subr.bf16.mxu0 %v8728_v30  ;;  %5274 = vmatprep.subr.bf16.mxu1 %v7124_v61 }
 0x476   :  { %5212 = vmatpush1.bf16.msra.mxu0 %v8729_v10  ;;  %5276 = vmatpush1.bf16.msra.mxu1 %v7130_v35 }
 0x477   :  { %5214 = vmatprep.subr.bf16.mxu0 %v8730_v52  ;;  %5278 = vmatprep.subr.bf16.mxu1 %v7133_v22 }
 0x47a   :  { %5216 = vmatpush1.bf16.msra.mxu0 %v8731_v48  ;;  %5280 = vmatpush1.bf16.msra.mxu1 %v7139_v42 }
 0x47b   :  { %5218 = vmatprep.subr.bf16.mxu0 %v8732_v20  ;;  %5282 = vmatprep.subr.bf16.mxu1 %v7142_v15 }
 0x47e   :  { %5220 = vmatpush1.bf16.msra.mxu0 %v8733_v14  ;;  %5284 = vmatpush1.bf16.msra.mxu1 %v7147_v50 }
 0x47f   :  { %5222 = vmatprep.subr.bf16.mxu0 %v8734_v31  ;;  %5286 = vmatprep.subr.bf16.mxu1 %v7150_v37 }
 0x482   :  { %5224 = vmatpush1.bf16.msra.mxu0 %v8735_v40  ;;  %5288 = vmatpush1.bf16.msra.mxu1 %v7155_v62 }
 0x483   :  { %5226 = vmatprep.subr.bf16.mxu0 %v8736_v13  ;;  %5290 = vmatprep.subr.bf16.mxu1 %v7158_v7 }
 0x486   :  { %5228 = vmatpush1.bf16.msra.mxu0 %v8737_v34  ;;  %5292 = vmatpush1.bf16.msra.mxu1 %v7163_v12 }
 0x487   :  { %5230 = vmatprep.subr.bf16.mxu0 %v8738_v46  ;;  %5294 = vmatprep.subr.bf16.mxu1 %v7166_v55 }
 0x48a   :  { %5232 = vmatpush1.bf16.msra.mxu0 %v8739_v58  ;;  %5296 = vmatpush1.bf16.msra.mxu1 %v7171_v24 }
 0x48b   :  { %5234 = vmatprep.subr.bf16.mxu0 %v8740_v16  ;;  %5298 = vmatprep.subr.bf16.mxu1 %v7174_v4 }
 0x48e   :  { %5236 = vmatpush1.bf16.msra.mxu0 %v8741_v1  ;;  %5300 = vmatpush1.bf16.msra.mxu1 %v8814_v23 }
 0x48f   :  { %5238 = vmatprep.subr.bf16.mxu0 %v8742_v59  ;;  %5302 = vmatprep.subr.bf16.mxu1 %v8815_v56 }
 0x492   :  { %5240 = vmatpush1.bf16.msra.mxu0 %v8743_v19  ;;  %5304 = vmatpush1.bf16.msra.mxu1 %v8816_v11 }
 0x493   :  { %5242 = vmatprep.subr.bf16.mxu0 %v8744_v54  ;;  %5306 = vmatprep.subr.bf16.mxu1 %v8817_v27 }
 0x496   :  { %5244 = vmatpush1.bf16.msra.mxu0 %v8745_v0  ;;  %5308 = vmatpush1.bf16.msra.mxu1 %v8818_v32 }
 0x497   :  { %5246 = vmatprep.subr.bf16.mxu0 %v8746_v28  ;;  %5310 = vmatprep.subr.bf16.mxu1 %v8819_v33 }
 0x49a   :  { %5248 = vmatpush1.bf16.msra.mxu0 %v8902_v60  ;;  %5312 = vmatpush1.bf16.msra.mxu1 %v8903_v5 }
 0x49b   :  { %5250 = vmatprep.subr.bf16.mxu0 %v8904_v8  ;;  %5314 = vmatprep.subr.bf16.mxu1 %v8905_v2 }
 0x49e   :  { %5252 = vmatpush1.bf16.msra.mxu0 %v8906_v41  ;;  %5316 = vmatpush1.bf16.msra.mxu1 %v8907_v18  ;;  %v2293_v41 = vrot.slane %v7595_v53, 6 }
 0x49f   :  { %5254 = vmatprep.subr.bf16.mxu0 %v8908_v17  ;;  %5318 = vmatprep.subr.bf16.mxu1 %v8909_v6  ;;  %v1925_v6 = vld [vmem:[#allocation2 + $0x18] sm:$0xc0] }
 0x4a2   :  { %5256 = vmatpush1.bf16.msra.mxu0 %v8910_v3  ;;  %5320 = vmatpush1.bf16.msra.mxu1 %v8911_v51 }
 0x4a3   :  { %5258 = vmatprep.subr.bf16.mxu0 %v8912_v44  ;;  %5322 = vmatprep.subr.bf16.mxu1 %v8913_v38  ;;  %v8923_v44 = vld [vmem:[#allocation124_spill] sm:$0xff]  ;;  %v8924_v38 = vld [vmem:[#allocation11_spill] sm:$0xff] }
 0x4a6   :  { %5260 = vmatpush1.bf16.msra.mxu0 %v8914_v43  ;;  %5324 = vmatpush1.bf16.msra.mxu1 %v8915_v47  ;;  %v8925_v43 = vld [vmem:[#allocation43_spill] sm:$0xff] }
 0x4a7   :  { %5262 = vmatprep.subr.bf16.mxu0 %v8916_v49  ;;  %5326 = vmatprep.subr.bf16.mxu1 %v8917_v63  ;;  %v8926_v63 = vld [vmem:[#allocation12_spill] sm:$0xff]  ;;  %v8935_v49 = vld [vmem:[#allocation53_spill] sm:$0xff] }
 0x4aa   :  { %5264 = vmatpush1.bf16.msra.mxu0 %v8918_v9  ;;  %5328 = vmatpush1.bf16.msra.mxu1 %v8919_v25  ;;  %v8927_v9 = vld [vmem:[#allocation45_spill] sm:$0xff] }
 0x4ab   :  { %5266 = vmatprep.subr.bf16.mxu0 %v8920_v21  ;;  %5330 = vmatprep.subr.bf16.mxu1 %v8921_v29  ;;  %v8928_v25 = vld [vmem:[#allocation13_spill] sm:$0xff]  ;;  %v8929_v21 = vld [vmem:[#allocation47_spill] sm:$0xff]  ;;  %v8930_v29 = vld [vmem:[#allocation14_spill] sm:$0xff] }
 0x4ae   :  { %5268 = vmatpush1.bf16.msra.mxu0 %v8922_v36  ;;  %5332 = vmatpush1.bf16.msra.mxu1 %v8923_v44  ;;  %v8931_v36 = vld [vmem:[#allocation49_spill] sm:$0xff]  ;;  %v8932_v44 = vld [vmem:[#allocation15_spill] sm:$0xff] }
 0x4af   :  { %5334 = vmatprep.subr.bf16.mxu0 %v8924_v38  ;;  %5398 = vmatprep.subr.bf16.mxu1 %v8925_v43  ;;  %v8933_v38 = vld [vmem:[#allocation51_spill] sm:$0xff]  ;;  %v8934_v43 = vld [vmem:[#allocation16_spill] sm:$0xff] }
 0x4b1   :  { %2143 = vmatmul.mubr.f32.vlgmr.msra.gmra.mrb[18].mxu0 %v7599_v57  ;;  %2214 = vmatmul.mubr.f32.vlgmr.msra.gmra.mrb[26].mxu1 %v7599_v57  ;;  %v8936_v57 = vld [vmem:[#allocation17_spill] sm:$0xff] }
 0x4b2   :  { %5336 = vmatpush1.bf16.msra.mxu0 %v8926_v63  ;;  %5400 = vmatpush1.bf16.msra.mxu1 %v8927_v9  ;;  %v8937_v63 = vld [vmem:[#allocation55_spill] sm:$0xff]  ;;  %v8938_v9 = vld [vmem:[#allocation18_spill] sm:$0xff] }
 0x4b3   :  { %5338 = vmatprep.subr.bf16.mxu0 %v8928_v25  ;;  %5402 = vmatprep.subr.bf16.mxu1 %v8929_v21  ;;  %v8939_v25 = vld [vmem:[#allocation57_spill] sm:$0xff]  ;;  %v8940_v21 = vld [vmem:[#allocation19_spill] sm:$0xff] }
 0x4b6   :  { %5340 = vmatpush1.bf16.msra.mxu0 %v8930_v29  ;;  %5404 = vmatpush1.bf16.msra.mxu1 %v8931_v36  ;;  %v8941_v29 = vld [vmem:[#allocation59_spill] sm:$0xff]  ;;  %v8942_v36 = vld [vmem:[#allocation20_spill] sm:$0xff] }
 0x4b7   :  { %5342 = vmatprep.subr.bf16.mxu0 %v8932_v44  ;;  %5406 = vmatprep.subr.bf16.mxu1 %v8933_v38  ;;  %v8943_v44 = vld [vmem:[#allocation61_spill] sm:$0xff] }
 0x4b8   :  { %v8944_v38 = vld [vmem:[#allocation21_spill] sm:$0xff] }
 0x4ba   :  { %5344 = vmatpush1.bf16.msra.mxu0 %v8934_v43  ;;  %5408 = vmatpush1.bf16.msra.mxu1 %v8935_v49  ;;  %v8945_v43 = vld [vmem:[#allocation63_spill] sm:$0xff]  ;;  %v8946_v49 = vld [vmem:[#allocation22_spill] sm:$0xff] }
 0x4bb   :  { %5346 = vmatprep.subr.bf16.mxu0 %v8936_v57  ;;  %5410 = vmatprep.subr.bf16.mxu1 %v8937_v63  ;;  %v8947_v57 = vld [vmem:[#allocation65_spill] sm:$0xff]  ;;  %v8948_v63 = vld [vmem:[#allocation23_spill] sm:$0xff] }
 0x4be   :  { %5348 = vmatpush1.bf16.msra.mxu0 %v8938_v9  ;;  %5412 = vmatpush1.bf16.msra.mxu1 %v8939_v25  ;;  %v8949_v9 = vld [vmem:[#allocation67_spill] sm:$0xff]  ;;  %v8950_v25 = vld [vmem:[#allocation24_spill] sm:$0xff] }
 0x4bf   :  { %5350 = vmatprep.subr.bf16.mxu0 %v8940_v21  ;;  %5414 = vmatprep.subr.bf16.mxu1 %v8941_v29  ;;  %v8951_v21 = vld [vmem:[#allocation69_spill] sm:$0xff] }
 0x4c0   :  { %v8952_v29 = vld [vmem:[#allocation25_spill] sm:$0xff] }
 0x4c2   :  { %5352 = vmatpush1.bf16.msra.mxu0 %v8942_v36  ;;  %5416 = vmatpush1.bf16.msra.mxu1 %v8943_v44  ;;  %v8953_v36 = vld [vmem:[#allocation71_spill] sm:$0xff]  ;;  %v8954_v44 = vld [vmem:[#allocation26_spill] sm:$0xff] }
 0x4c3   :  { %5354 = vmatprep.subr.bf16.mxu0 %v8944_v38  ;;  %5418 = vmatprep.subr.bf16.mxu1 %v8945_v43  ;;  %v8955_v38 = vld [vmem:[#allocation73_spill] sm:$0xff]  ;;  %v8956_v43 = vld [vmem:[#allocation27_spill] sm:$0xff] }
 0x4c6   :  { %5356 = vmatpush1.bf16.msra.mxu0 %v8946_v49  ;;  %5420 = vmatpush1.bf16.msra.mxu1 %v8947_v57  ;;  %v8957_v49 = vld [vmem:[#allocation75_spill] sm:$0xff]  ;;  %v8958_v57 = vld [vmem:[#allocation28_spill] sm:$0xff] }
 0x4c7   :  { %5358 = vmatprep.subr.bf16.mxu0 %v8948_v63  ;;  %5422 = vmatprep.subr.bf16.mxu1 %v8949_v9  ;;  %v8959_v63 = vld [vmem:[#allocation77_spill] sm:$0xff] }
 0x4c8   :  { %v8960_v9 = vld [vmem:[#allocation29_spill] sm:$0xff] }
 0x4ca   :  { %5360 = vmatpush1.bf16.msra.mxu0 %v8950_v25  ;;  %5424 = vmatpush1.bf16.msra.mxu1 %v8951_v21  ;;  %v8961_v25 = vld [vmem:[#allocation79_spill] sm:$0xff]  ;;  %v8962_v21 = vld [vmem:[#allocation30_spill] sm:$0xff] }
 0x4cb   :  { %5362 = vmatprep.subr.bf16.mxu0 %v8952_v29  ;;  %5426 = vmatprep.subr.bf16.mxu1 %v8953_v36  ;;  %v8963_v29 = vld [vmem:[#allocation81_spill] sm:$0xff]  ;;  %v8964_v36 = vld [vmem:[#allocation31_spill] sm:$0xff] }
 0x4ce   :  { %5364 = vmatpush1.bf16.msra.mxu0 %v8954_v44  ;;  %5428 = vmatpush1.bf16.msra.mxu1 %v8955_v38  ;;  %v8965_v44 = vld [vmem:[#allocation83_spill] sm:$0xff]  ;;  %v8966_v38 = vld [vmem:[#allocation32_spill] sm:$0xff] }
 0x4cf   :  { %5366 = vmatprep.subr.bf16.mxu0 %v8956_v43  ;;  %5430 = vmatprep.subr.bf16.mxu1 %v8957_v49  ;;  %v8967_v43 = vld [vmem:[#allocation85_spill] sm:$0xff] }
 0x4d0   :  { %v8968_v49 = vld [vmem:[#allocation33_spill] sm:$0xff] }
 0x4d2   :  { %5368 = vmatpush1.bf16.msra.mxu0 %v8958_v57  ;;  %5432 = vmatpush1.bf16.msra.mxu1 %v8959_v63  ;;  %v8969_v57 = vld [vmem:[#allocation87_spill] sm:$0xff]  ;;  %v8970_v63 = vld [vmem:[#allocation34_spill] sm:$0xff] }
 0x4d3   :  { %5370 = vmatprep.subr.bf16.mxu0 %v8960_v9  ;;  %5434 = vmatprep.subr.bf16.mxu1 %v8961_v25  ;;  %v8971_v9 = vld [vmem:[#allocation89_spill] sm:$0xff]  ;;  %v8972_v25 = vld [vmem:[#allocation35_spill] sm:$0xff] }
 0x4d6   :  { %5372 = vmatpush1.bf16.msra.mxu0 %v8962_v21  ;;  %5436 = vmatpush1.bf16.msra.mxu1 %v8963_v29  ;;  %v8973_v21 = vld [vmem:[#allocation91_spill] sm:$0xff]  ;;  %v8974_v29 = vld [vmem:[#allocation36_spill] sm:$0xff] }
 0x4d7   :  { %5374 = vmatprep.subr.bf16.mxu0 %v8964_v36  ;;  %5438 = vmatprep.subr.bf16.mxu1 %v8965_v44  ;;  %v8975_v36 = vld [vmem:[#allocation93_spill] sm:$0xff] }
 0x4d8   :  { %v8976_v44 = vld [vmem:[#allocation37_spill] sm:$0xff] }
 0x4da   :  { %5376 = vmatpush1.bf16.msra.mxu0 %v8966_v38  ;;  %5440 = vmatpush1.bf16.msra.mxu1 %v8967_v43  ;;  %v8977_v38 = vld [vmem:[#allocation95_spill] sm:$0xff]  ;;  %v8978_v43 = vld [vmem:[#allocation38_spill] sm:$0xff] }
 0x4db   :  { %5378 = vmatprep.subr.bf16.mxu0 %v8968_v49  ;;  %5442 = vmatprep.subr.bf16.mxu1 %v8969_v57  ;;  %v8979_v49 = vld [vmem:[#allocation97_spill] sm:$0xff]  ;;  %v8980_v57 = vld [vmem:[#allocation39_spill] sm:$0xff] }
 0x4de   :  { %5380 = vmatpush1.bf16.msra.mxu0 %v8970_v63  ;;  %5444 = vmatpush1.bf16.msra.mxu1 %v8971_v9  ;;  %v8981_v63 = vld [vmem:[#allocation99_spill] sm:$0xff]  ;;  %v8982_v9 = vld [vmem:[#allocation40_spill] sm:$0xff] }
 0x4df   :  { %5382 = vmatprep.subr.bf16.mxu0 %v8972_v25  ;;  %5446 = vmatprep.subr.bf16.mxu1 %v8973_v21  ;;  %v8983_v25 = vld [vmem:[#allocation101_spill] sm:$0xff] }
 0x4e0   :  { %v8984_v21 = vld [vmem:[#allocation41_spill] sm:$0xff] }
 0x4e2   :  { %5384 = vmatpush1.bf16.msra.mxu0 %v8974_v29  ;;  %5448 = vmatpush1.bf16.msra.mxu1 %v8975_v36  ;;  %v8985_v29 = vld [vmem:[#allocation103_spill] sm:$0xff]  ;;  %v8986_v36 = vld [vmem:[#allocation42_spill] sm:$0xff] }
 0x4e3   :  { %5386 = vmatprep.subr.bf16.mxu0 %v8976_v44  ;;  %5450 = vmatprep.subr.bf16.mxu1 %v8977_v38  ;;  %v8987_v44 = vld [vmem:[#allocation105_spill] sm:$0xff]  ;;  %v8988_v38 = vld [vmem:[#allocation44_spill] sm:$0xff] }
 0x4e6   :  { %5388 = vmatpush1.bf16.msra.mxu0 %v8978_v43  ;;  %5452 = vmatpush1.bf16.msra.mxu1 %v8979_v49  ;;  %v8989_v43 = vld [vmem:[#allocation107_spill] sm:$0xff] }
 0x4e7   :  { %5390 = vmatprep.subr.bf16.mxu0 %v8980_v57  ;;  %5454 = vmatprep.subr.bf16.mxu1 %v8981_v63 }
 0x4ea   :  { %5392 = vmatpush1.bf16.msra.mxu0 %v8982_v9  ;;  %5456 = vmatpush1.bf16.msra.mxu1 %v8983_v25  ;;  %v1924_v9 = vld [vmem:[#allocation2 + $0x10] sm:$0xc0] }
 0x4eb   :  { %5394 = vmatprep.subr.bf16.mxu0 %v8984_v21  ;;  %5458 = vmatprep.subr.bf16.mxu1 %v8985_v29 }
 0x4ee   :  { %5396 = vmatpush1.bf16.msra.mxu0 %v8986_v36  ;;  %5460 = vmatpush1.bf16.msra.mxu1 %v8987_v44 }
 0x4ef   :  { %5462 = vmatprep.subr.bf16.mxu0 %v8988_v38  ;;  %5526 = vmatprep.subr.bf16.mxu1 %v8989_v43  ;;  %v2292_v43 = vrot.slane %v7593_v26, 6 }
 0x544   :  { %v2002_v49 = vpop.f32.mrb[16].mxu0  ;;  %v2073_v57 = vpop.f32.mrb[24].mxu1 }
 0x545   :  { %v2230_v47 = vrot.slane %v2073_v57, 2  ;;  %v2004_v63 = vpop.f32.mrb[17].mxu0  ;;  %v2075_v51 = vpop.f32.mrb[25].mxu1 }
 0x546   :  { %v2231_v3 = vrot.slane %v2075_v51, 2 }
 0x547   :  { %v2246_v25 = vadd.f32 %v2230_v47, %v1924_v9  ;;  %v2228_v9 = vrot.slane %v2002_v49, 2  ;;  %v1926_v49 = vld [vmem:[#allocation2 + $0x20] sm:$0xc0] }
 0x548   :  { %v2247_v21 = vadd.f32 %v2231_v3, %v1925_v6  ;;  %v2229_v6 = vrot.slane %v2004_v63, 2  ;;  %v1922_v3 = vld [vmem:[#allocation2] sm:$0xc0]  ;;  %v1928_v63 = vld [vmem:[#allocation2 + $0x30] sm:$0xc0] }
 0x549   :  { %v4046_v17 = vmul.f32 -1.442695, %v2246_v25  ;;  %v2244_v25 = vadd.f32 %v2228_v9, %v1922_v3 }
 0x54a   :  { %v4047_v29 = vmul.f32 -1.442695, %v2247_v21 }
 0x54b   :  { %6524 = vpow2.f32 %v4046_v17  ;;  %v1923_v17 = vld [vmem:[#allocation2 + $0x8] sm:$0xc0] }
 0x54c   :  { %6526 = vpow2.f32 %v4047_v29  ;;  %v2245_v21 = vadd.f32 %v2229_v6, %v1923_v17  ;;  %v4044_v29 = vmul.f32 -1.442695, %v2244_v25  ;;  %v1927_v25 = vld [vmem:[#allocation2 + $0x28] sm:$0xc0]  ;;  %v1929_v17 = vld [vmem:[#allocation2 + $0x38] sm:$0xc0] }
 0x555   :  { %v6525_v36 = vpop.eup %6524 }
 0x556   :  { %v2272_v44 = vadd.f32 1.0, %v6525_v36  ;;  %v6527_v18 = vpop.eup %6526  ;;  %v4045_v36 = vmul.f32 -1.442695, %v2245_v21 }
 0x557   :  { %v2273_v38 = vadd.f32 1.0, %v6527_v18 }
 0x558   :  { %6528 = vrcp.f32 %v2272_v44 }
 0x559   :  { %6530 = vrcp.f32 %v2273_v38 }
 0x55a   :  { %6532 = vpow2.f32 %v4044_v29 }
 0x55b   :  { %6534 = vpow2.f32 %v4045_v36 }
 0x562   :  { %v6529_v57 = vpop.eup %6528 }
 0x563   :  { %v2296_v2 = vmul.f32 %v6529_v57, %v2292_v43  ;;  %v6531_v51 = vpop.eup %6530 }
 0x564   :  { %v2297_v47 = vmul.f32 %v6531_v51, %v2293_v41  ;;  %v6533_v18 = vpop.eup %6532 }
 0x565   :  { %v6535_v44 = vpop.eup %6534  ;;  %v2270_v38 = vadd.f32 1.0, %v6533_v18 }
 0x566   :  { %v2271_v26 = vadd.f32 1.0, %v6535_v44 }
 0x567   :  { %6536 = vrcp.f32 %v2270_v38 }
 0x568   :  { %6538 = vrcp.f32 %v2271_v26 }
 0x584   :  { %v2144_v8 = vpop.f32.mrb[18].mxu0  ;;  %v2215_v5 = vpop.f32.mrb[26].mxu1 }
 0x585   :  { %v2232_v53 = vrot.slane %v2144_v8, 2  ;;  %v2234_v43 = vrot.slane %v2215_v5, 2  ;;  %v2146_v57 = vpop.f32.mrb[19].mxu0  ;;  %v2217_v41 = vpop.f32.mrb[27].mxu1 }
 0x586   :  { %v2233_v51 = vrot.slane %v2146_v57, 2  ;;  %v2235_v9 = vrot.slane %v2217_v41, 2  ;;  %v6537_v5 = vpop.eup %6536 }
 0x587   :  { %v2248_v6 = vadd.f32 %v2232_v53, %v1926_v49  ;;  %v2250_v3 = vadd.f32 %v2234_v43, %v1928_v63  ;;  %v6539_v8 = vpop.eup %6538 }
 0x588   :  { %v2249_v21 = vadd.f32 %v2233_v51, %v1927_v25  ;;  %v2251_v29 = vadd.f32 %v2235_v9, %v1929_v17 }
 0x589   :  { %v4048_v36 = vmul.f32 -1.442695, %v2248_v6  ;;  %6540 = vtanh.f32 %v2250_v3 }
 0x58a   :  { %v4049_v18 = vmul.f32 -1.442695, %v2249_v21  ;;  %6542 = vtanh.f32 %v2251_v29  ;;  %v8991_v21 = vld [vmem:[#allocation114_spill] sm:$0xff]  ;;  %v8992_v29 = vld [vmem:[#allocation88_spill] sm:$0xff] }
 0x58b   :  { %6544 = vpow2.f32 %v4048_v36  ;;  %v8993_v36 = vld [vmem:[#allocation115_spill] sm:$0xff] }
 0x58c   :  { %6546 = vpow2.f32 %v4049_v18  ;;  %v8994_v18 = vld [vmem:[#allocation90_spill] sm:$0xff] }
 0x593   :  { %v6541_v44 = vpop.eup %6540 }
 0x594   :  { %v6543_v60 = vpop.eup %6542  ;;  %v2298_v57 = vmul.f32 %v6541_v44, %v6537_v5  ;;  %v8995_v5 = vld [vmem:[#allocation116_spill] sm:$0xff]  ;;  %v8997_v44 = vld [vmem:[#allocation117_spill] sm:$0xff] }
 0x595   :  { %v6545_v41 = vpop.eup %6544  ;;  %v2299_v38 = vmul.f32 %v6543_v60, %v6539_v8  ;;  %v8996_v8 = vld [vmem:[#allocation92_spill] sm:$0xff] }
 0x596   :  { %v6547_v53 = vpop.eup %6546  ;;  %v2274_v43 = vadd.f32 1.0, %v6545_v41  ;;  %v7735_v49 = vadd.f32 %v2298_v57, %v2296_v2  ;;  %v8998_v57 = vld [vmem:[#allocation94_spill] sm:$0xff] }
 0x597   :  { %v2275_v26 = vadd.f32 1.0, %v6547_v53  ;;  %v7737_v63 = vadd.f32 %v2299_v38, %v2297_v47  ;;  %v8990_v47 = vld [vmem:[#allocation86_spill] sm:$0xff]  ;;  %v9000_v38 = vld [vmem:[#allocation96_spill] sm:$0xff]  ;;  %v9001_v53 = vld [vmem:[#allocation119_spill] sm:$0xff] }
 0x598   :  { %6548 = vrcp.f32 %v2274_v43  ;;  %v8999_v41 = vld [vmem:[#allocation118_spill] sm:$0xff] }
 0x599   :  { %6550 = vtanh.f32 %v7735_v49  ;;  %v9002_v43 = vld [vmem:[#allocation98_spill] sm:$0xff] }
 0x59a   :  { %6552 = vrcp.f32 %v2275_v26  ;;  %v9003_v26 = vld [vmem:[#allocation120_spill] sm:$0xff] }
 0x59b   :  { %6554 = vtanh.f32 %v7737_v63 }
 0x5a2   :  { %v6549_v51 = vpop.eup %6548 }
 0x5a3   :  { %v6551_v9 = vpop.eup %6550 }
 0x5a4   :  { %v6553_v6 = vpop.eup %6552  ;;  %v2304_v3 = vmul.f32 %v6551_v9, %v6549_v51  ;;  %v9004_v51 = vld [vmem:[#allocation100_spill] sm:$0xff]  ;;  %v9005_v9 = vld [vmem:[#allocation121_spill] sm:$0xff] }
 0x5a5   :  { %v6555_v25 = vpop.eup %6554 }
 0x5a6   :  { %v2305_v17 = vmul.f32 %v6555_v25, %v6553_v6  ;;  %2306 = vst [vmem:[#allocation3] sm:$0xc0] %v2304_v3  ;;  %v7741_v2 = vrot.slane %v2304_v3, 6  ;;  %v9006_v6 = vld [vmem:[#allocation102_spill] sm:$0xff]  ;;  %v9008_v25 = vld [vmem:[#allocation104_spill] sm:$0xff] }
 0x5a7   :  { %v9007_v3 = vld [vmem:[#allocation122_spill] sm:$0xff] }
 0x5a8   :  { %2307 = vst [vmem:[#allocation4 + $0x2] sm:$0xc0] %v2305_v17  ;;  %v2319_v60 = vrot.slane %v2305_v17, 6  ;;  %v9009_v17 = vld [vmem:[#allocation123_spill] sm:$0xff] }
 0x5aa   :  { %2386 = vmatprep.mubr.f32.mxu0 %v2319_v60  ;;  %2457 = vmatprep.mubr.f32.mxu1 %v2319_v60 }
 0x5ab   :  { %2387 = vmatmul.mubr.f32.vlgmr.msra.gmra.mrb[20].mxu0 %v7741_v2  ;;  %2458 = vmatmul.mubr.f32.vlgmr.msra.gmra.mrb[28].mxu1 %v7741_v2 }
 0x5ac   :  { %5464 = vmatpush1.bf16.msra.mxu0 %v8727_v39  ;;  %5528 = vmatpush1.bf16.msra.mxu1 %v7120_v45 }
 0x5ad   :  { %2528 = vmatprep.mubr.f32.mxu0 %v2319_v60  ;;  %2599 = vmatprep.mubr.f32.mxu1 %v2319_v60  ;;  %v9010_v60 = vld [vmem:[#allocation106_spill] sm:$0xff] }
 0x5ae   :  { %5466 = vmatprep.subr.bf16.mxu0 %v8728_v30  ;;  %5530 = vmatprep.subr.bf16.mxu1 %v7124_v61 }
 0x5b0   :  { %5468 = vmatpush1.bf16.msra.mxu0 %v8729_v10  ;;  %5532 = vmatpush1.bf16.msra.mxu1 %v7130_v35 }
 0x5b1   :  { %5470 = vmatprep.subr.bf16.mxu0 %v8730_v52  ;;  %5534 = vmatprep.subr.bf16.mxu1 %v7133_v22 }
 0x5b4   :  { %5472 = vmatpush1.bf16.msra.mxu0 %v8731_v48  ;;  %5536 = vmatpush1.bf16.msra.mxu1 %v7139_v42 }
 0x5b5   :  { %5474 = vmatprep.subr.bf16.mxu0 %v8732_v20  ;;  %5538 = vmatprep.subr.bf16.mxu1 %v7142_v15 }
 0x5b8   :  { %5476 = vmatpush1.bf16.msra.mxu0 %v8733_v14  ;;  %5540 = vmatpush1.bf16.msra.mxu1 %v7147_v50 }
 0x5b9   :  { %5478 = vmatprep.subr.bf16.mxu0 %v8734_v31  ;;  %5542 = vmatprep.subr.bf16.mxu1 %v7150_v37 }
 0x5bc   :  { %5480 = vmatpush1.bf16.msra.mxu0 %v8735_v40  ;;  %5544 = vmatpush1.bf16.msra.mxu1 %v7155_v62 }
 0x5bd   :  { %5482 = vmatprep.subr.bf16.mxu0 %v8736_v13  ;;  %5546 = vmatprep.subr.bf16.mxu1 %v7158_v7 }
 0x5c0   :  { %5484 = vmatpush1.bf16.msra.mxu0 %v8737_v34  ;;  %5548 = vmatpush1.bf16.msra.mxu1 %v7163_v12 }
 0x5c1   :  { %5486 = vmatprep.subr.bf16.mxu0 %v8738_v46  ;;  %5550 = vmatprep.subr.bf16.mxu1 %v7166_v55 }
 0x5c4   :  { %5488 = vmatpush1.bf16.msra.mxu0 %v8739_v58  ;;  %5552 = vmatpush1.bf16.msra.mxu1 %v7171_v24 }
 0x5c5   :  { %5490 = vmatprep.subr.bf16.mxu0 %v8740_v16  ;;  %5554 = vmatprep.subr.bf16.mxu1 %v7174_v4 }
 0x5c8   :  { %5492 = vmatpush1.bf16.msra.mxu0 %v8741_v1  ;;  %5556 = vmatpush1.bf16.msra.mxu1 %v8814_v23 }
 0x5c9   :  { %5494 = vmatprep.subr.bf16.mxu0 %v8742_v59  ;;  %5558 = vmatprep.subr.bf16.mxu1 %v8815_v56 }
 0x5cc   :  { %5496 = vmatpush1.bf16.msra.mxu0 %v8743_v19  ;;  %5560 = vmatpush1.bf16.msra.mxu1 %v8816_v11 }
 0x5cd   :  { %5498 = vmatprep.subr.bf16.mxu0 %v8744_v54  ;;  %5562 = vmatprep.subr.bf16.mxu1 %v8817_v27 }
 0x5d0   :  { %5500 = vmatpush1.bf16.msra.mxu0 %v8745_v0  ;;  %5564 = vmatpush1.bf16.msra.mxu1 %v8818_v32 }
 0x5d1   :  { %5502 = vmatprep.subr.bf16.mxu0 %v8746_v28  ;;  %5566 = vmatprep.subr.bf16.mxu1 %v8819_v33 }
 0x5d4   :  { %5504 = vmatpush1.bf16.msra.mxu0 %v8990_v47  ;;  %5568 = vmatpush1.bf16.msra.mxu1 %v8991_v21 }
 0x5d5   :  { %5506 = vmatprep.subr.bf16.mxu0 %v8992_v29  ;;  %5570 = vmatprep.subr.bf16.mxu1 %v8993_v36  ;;  %v2308_v36 = vld [vmem:[#allocation2 + $0x40] sm:$0x3]  ;;  %v2314_v29 = vld [vmem:[#allocation2 + $0x70] sm:$0x3] }
 0x5d8   :  { %5508 = vmatpush1.bf16.msra.mxu0 %v8994_v18  ;;  %5572 = vmatpush1.bf16.msra.mxu1 %v8995_v5 }
 0x5d9   :  { %5510 = vmatprep.subr.bf16.mxu0 %v8996_v8  ;;  %5574 = vmatprep.subr.bf16.mxu1 %v8997_v44 }
 0x5dc   :  { %5512 = vmatpush1.bf16.msra.mxu0 %v8998_v57  ;;  %5576 = vmatpush1.bf16.msra.mxu1 %v8999_v41 }
 0x5dd   :  { %5514 = vmatprep.subr.bf16.mxu0 %v9000_v38  ;;  %5578 = vmatprep.subr.bf16.mxu1 %v9001_v53  ;;  %v9011_v38 = vld [vmem:[#allocation124_spill] sm:$0xff]  ;;  %v9012_v53 = vld [vmem:[#allocation11_spill] sm:$0xff] }
 0x5e0   :  { %5516 = vmatpush1.bf16.msra.mxu0 %v9002_v43  ;;  %5580 = vmatpush1.bf16.msra.mxu1 %v9003_v26  ;;  %v9013_v43 = vld [vmem:[#allocation43_spill] sm:$0xff] }
 0x5e1   :  { %5518 = vmatprep.subr.bf16.mxu0 %v9004_v51  ;;  %5582 = vmatprep.subr.bf16.mxu1 %v9005_v9  ;;  %v9014_v9 = vld [vmem:[#allocation12_spill] sm:$0xff]  ;;  %v9023_v51 = vld [vmem:[#allocation53_spill] sm:$0xff] }
 0x5e4   :  { %5520 = vmatpush1.bf16.msra.mxu0 %v9006_v6  ;;  %5584 = vmatpush1.bf16.msra.mxu1 %v9007_v3  ;;  %v9015_v6 = vld [vmem:[#allocation45_spill] sm:$0xff] }
 0x5e5   :  { %5522 = vmatprep.subr.bf16.mxu0 %v9008_v25  ;;  %5586 = vmatprep.subr.bf16.mxu1 %v9009_v17  ;;  %v9016_v3 = vld [vmem:[#allocation13_spill] sm:$0xff]  ;;  %v9017_v25 = vld [vmem:[#allocation47_spill] sm:$0xff]  ;;  %v9018_v17 = vld [vmem:[#allocation14_spill] sm:$0xff] }
 0x5e8   :  { %5524 = vmatpush1.bf16.msra.mxu0 %v9010_v60  ;;  %5588 = vmatpush1.bf16.msra.mxu1 %v9011_v38  ;;  %v9019_v60 = vld [vmem:[#allocation49_spill] sm:$0xff]  ;;  %v9020_v38 = vld [vmem:[#allocation15_spill] sm:$0xff] }
 0x5e9   :  { %5590 = vmatprep.subr.bf16.mxu0 %v9012_v53  ;;  %5654 = vmatprep.subr.bf16.mxu1 %v9013_v43  ;;  %v9021_v53 = vld [vmem:[#allocation51_spill] sm:$0xff]  ;;  %v9022_v43 = vld [vmem:[#allocation16_spill] sm:$0xff] }
 0x5eb   :  { %2529 = vmatmul.mubr.f32.vlgmr.msra.gmra.mrb[22].mxu0 %v7741_v2  ;;  %2600 = vmatmul.mubr.f32.vlgmr.msra.gmra.mrb[30].mxu1 %v7741_v2  ;;  %v9024_v2 = vld [vmem:[#allocation17_spill] sm:$0xff] }
 0x5ec   :  { %5592 = vmatpush1.bf16.msra.mxu0 %v9014_v9  ;;  %5656 = vmatpush1.bf16.msra.mxu1 %v9015_v6  ;;  %v9025_v9 = vld [vmem:[#allocation55_spill] sm:$0xff]  ;;  %v9026_v6 = vld [vmem:[#allocation18_spill] sm:$0xff] }
 0x5ed   :  { %5594 = vmatprep.subr.bf16.mxu0 %v9016_v3  ;;  %5658 = vmatprep.subr.bf16.mxu1 %v9017_v25  ;;  %v9027_v3 = vld [vmem:[#allocation57_spill] sm:$0xff]  ;;  %v9028_v25 = vld [vmem:[#allocation19_spill] sm:$0xff] }
 0x5f0   :  { %5596 = vmatpush1.bf16.msra.mxu0 %v9018_v17  ;;  %5660 = vmatpush1.bf16.msra.mxu1 %v9019_v60  ;;  %v9029_v17 = vld [vmem:[#allocation59_spill] sm:$0xff]  ;;  %v9030_v60 = vld [vmem:[#allocation20_spill] sm:$0xff] }
 0x5f1   :  { %5598 = vmatprep.subr.bf16.mxu0 %v9020_v38  ;;  %5662 = vmatprep.subr.bf16.mxu1 %v9021_v53  ;;  %v9031_v38 = vld [vmem:[#allocation61_spill] sm:$0xff] }
 0x5f2   :  { %v9032_v53 = vld [vmem:[#allocation21_spill] sm:$0xff] }
 0x5f4   :  { %5600 = vmatpush1.bf16.msra.mxu0 %v9022_v43  ;;  %5664 = vmatpush1.bf16.msra.mxu1 %v9023_v51  ;;  %v9033_v43 = vld [vmem:[#allocation63_spill] sm:$0xff]  ;;  %v9034_v51 = vld [vmem:[#allocation22_spill] sm:$0xff] }
 0x5f5   :  { %5602 = vmatprep.subr.bf16.mxu0 %v9024_v2  ;;  %5666 = vmatprep.subr.bf16.mxu1 %v9025_v9  ;;  %v9035_v2 = vld [vmem:[#allocation65_spill] sm:$0xff]  ;;  %v9036_v9 = vld [vmem:[#allocation23_spill] sm:$0xff] }
 0x5f8   :  { %5604 = vmatpush1.bf16.msra.mxu0 %v9026_v6  ;;  %5668 = vmatpush1.bf16.msra.mxu1 %v9027_v3  ;;  %v9037_v6 = vld [vmem:[#allocation67_spill] sm:$0xff]  ;;  %v9038_v3 = vld [vmem:[#allocation24_spill] sm:$0xff] }
 0x5f9   :  { %5606 = vmatprep.subr.bf16.mxu0 %v9028_v25  ;;  %5670 = vmatprep.subr.bf16.mxu1 %v9029_v17  ;;  %v9039_v25 = vld [vmem:[#allocation69_spill] sm:$0xff] }
 0x5fa   :  { %v9040_v17 = vld [vmem:[#allocation25_spill] sm:$0xff] }
 0x5fc   :  { %5608 = vmatpush1.bf16.msra.mxu0 %v9030_v60  ;;  %5672 = vmatpush1.bf16.msra.mxu1 %v9031_v38  ;;  %v9041_v60 = vld [vmem:[#allocation71_spill] sm:$0xff]  ;;  %v9042_v38 = vld [vmem:[#allocation26_spill] sm:$0xff] }
 0x5fd   :  { %5610 = vmatprep.subr.bf16.mxu0 %v9032_v53  ;;  %5674 = vmatprep.subr.bf16.mxu1 %v9033_v43  ;;  %v9043_v53 = vld [vmem:[#allocation73_spill] sm:$0xff]  ;;  %v9044_v43 = vld [vmem:[#allocation27_spill] sm:$0xff] }
 0x600   :  { %5612 = vmatpush1.bf16.msra.mxu0 %v9034_v51  ;;  %5676 = vmatpush1.bf16.msra.mxu1 %v9035_v2  ;;  %v9045_v51 = vld [vmem:[#allocation75_spill] sm:$0xff]  ;;  %v9046_v2 = vld [vmem:[#allocation28_spill] sm:$0xff] }
 0x601   :  { %5614 = vmatprep.subr.bf16.mxu0 %v9036_v9  ;;  %5678 = vmatprep.subr.bf16.mxu1 %v9037_v6  ;;  %v9047_v9 = vld [vmem:[#allocation77_spill] sm:$0xff] }
 0x602   :  { %v9048_v6 = vld [vmem:[#allocation29_spill] sm:$0xff] }
 0x604   :  { %5616 = vmatpush1.bf16.msra.mxu0 %v9038_v3  ;;  %5680 = vmatpush1.bf16.msra.mxu1 %v9039_v25  ;;  %v9049_v3 = vld [vmem:[#allocation79_spill] sm:$0xff]  ;;  %v9050_v25 = vld [vmem:[#allocation30_spill] sm:$0xff] }
 0x605   :  { %5618 = vmatprep.subr.bf16.mxu0 %v9040_v17  ;;  %5682 = vmatprep.subr.bf16.mxu1 %v9041_v60  ;;  %v9051_v17 = vld [vmem:[#allocation81_spill] sm:$0xff]  ;;  %v9052_v60 = vld [vmem:[#allocation31_spill] sm:$0xff] }
 0x608   :  { %5620 = vmatpush1.bf16.msra.mxu0 %v9042_v38  ;;  %5684 = vmatpush1.bf16.msra.mxu1 %v9043_v53  ;;  %v9053_v38 = vld [vmem:[#allocation83_spill] sm:$0xff]  ;;  %v9054_v53 = vld [vmem:[#allocation32_spill] sm:$0xff] }
 0x609   :  { %5622 = vmatprep.subr.bf16.mxu0 %v9044_v43  ;;  %5686 = vmatprep.subr.bf16.mxu1 %v9045_v51  ;;  %v9055_v43 = vld [vmem:[#allocation85_spill] sm:$0xff] }
 0x60a   :  { %v9056_v51 = vld [vmem:[#allocation33_spill] sm:$0xff] }
 0x60c   :  { %5624 = vmatpush1.bf16.msra.mxu0 %v9046_v2  ;;  %5688 = vmatpush1.bf16.msra.mxu1 %v9047_v9  ;;  %v9057_v2 = vld [vmem:[#allocation87_spill] sm:$0xff]  ;;  %v9058_v9 = vld [vmem:[#allocation34_spill] sm:$0xff] }
 0x60d   :  { %5626 = vmatprep.subr.bf16.mxu0 %v9048_v6  ;;  %5690 = vmatprep.subr.bf16.mxu1 %v9049_v3  ;;  %v9059_v6 = vld [vmem:[#allocation89_spill] sm:$0xff]  ;;  %v9060_v3 = vld [vmem:[#allocation35_spill] sm:$0xff] }
 0x610   :  { %5628 = vmatpush1.bf16.msra.mxu0 %v9050_v25  ;;  %5692 = vmatpush1.bf16.msra.mxu1 %v9051_v17  ;;  %v9061_v25 = vld [vmem:[#allocation91_spill] sm:$0xff]  ;;  %v9062_v17 = vld [vmem:[#allocation36_spill] sm:$0xff] }
 0x611   :  { %5630 = vmatprep.subr.bf16.mxu0 %v9052_v60  ;;  %5694 = vmatprep.subr.bf16.mxu1 %v9053_v38  ;;  %v9063_v60 = vld [vmem:[#allocation93_spill] sm:$0xff] }
 0x612   :  { %v9064_v38 = vld [vmem:[#allocation37_spill] sm:$0xff] }
 0x614   :  { %5632 = vmatpush1.bf16.msra.mxu0 %v9054_v53  ;;  %5696 = vmatpush1.bf16.msra.mxu1 %v9055_v43  ;;  %v9065_v53 = vld [vmem:[#allocation95_spill] sm:$0xff]  ;;  %v9066_v43 = vld [vmem:[#allocation38_spill] sm:$0xff] }
 0x615   :  { %5634 = vmatprep.subr.bf16.mxu0 %v9056_v51  ;;  %5698 = vmatprep.subr.bf16.mxu1 %v9057_v2  ;;  %v9067_v51 = vld [vmem:[#allocation97_spill] sm:$0xff]  ;;  %v9068_v2 = vld [vmem:[#allocation39_spill] sm:$0xff] }
 0x618   :  { %5636 = vmatpush1.bf16.msra.mxu0 %v9058_v9  ;;  %5700 = vmatpush1.bf16.msra.mxu1 %v9059_v6  ;;  %v9069_v9 = vld [vmem:[#allocation99_spill] sm:$0xff]  ;;  %v9070_v6 = vld [vmem:[#allocation40_spill] sm:$0xff] }
 0x619   :  { %5638 = vmatprep.subr.bf16.mxu0 %v9060_v3  ;;  %5702 = vmatprep.subr.bf16.mxu1 %v9061_v25  ;;  %v9071_v3 = vld [vmem:[#allocation101_spill] sm:$0xff] }
 0x61a   :  { %v9072_v25 = vld [vmem:[#allocation41_spill] sm:$0xff] }
 0x61c   :  { %5640 = vmatpush1.bf16.msra.mxu0 %v9062_v17  ;;  %5704 = vmatpush1.bf16.msra.mxu1 %v9063_v60  ;;  %v9073_v17 = vld [vmem:[#allocation103_spill] sm:$0xff]  ;;  %v9074_v60 = vld [vmem:[#allocation42_spill] sm:$0xff] }
 0x61d   :  { %5642 = vmatprep.subr.bf16.mxu0 %v9064_v38  ;;  %5706 = vmatprep.subr.bf16.mxu1 %v9065_v53  ;;  %v9075_v38 = vld [vmem:[#allocation105_spill] sm:$0xff]  ;;  %v9076_v53 = vld [vmem:[#allocation44_spill] sm:$0xff] }
 0x620   :  { %5644 = vmatpush1.bf16.msra.mxu0 %v9066_v43  ;;  %5708 = vmatpush1.bf16.msra.mxu1 %v9067_v51  ;;  %v9077_v43 = vld [vmem:[#allocation107_spill] sm:$0xff] }
 0x621   :  { %5646 = vmatprep.subr.bf16.mxu0 %v9068_v2  ;;  %5710 = vmatprep.subr.bf16.mxu1 %v9069_v9  ;;  %v2310_v2 = vld [vmem:[#allocation2 + $0x50] sm:$0x3] }
 0x624   :  { %5648 = vmatpush1.bf16.msra.mxu0 %v9070_v6  ;;  %5712 = vmatpush1.bf16.msra.mxu1 %v9071_v3  ;;  %v2311_v6 = vld [vmem:[#allocation2 + $0x58] sm:$0x3] }
 0x625   :  { %5650 = vmatprep.subr.bf16.mxu0 %v9072_v25  ;;  %5714 = vmatprep.subr.bf16.mxu1 %v9073_v17 }
 0x628   :  { %5652 = vmatpush1.bf16.msra.mxu0 %v9074_v60  ;;  %5716 = vmatpush1.bf16.msra.mxu1 %v9075_v38 }
 0x629   :  { %5718 = vmatprep.subr.bf16.mxu0 %v9076_v53  ;;  %5782 = vmatprep.subr.bf16.mxu1 %v9077_v43  ;;  %v2654_v43 = vrot.slane %v7735_v49, 6 }
 0x67e   :  { %v2388_v51 = vpop.f32.mrb[20].mxu0  ;;  %v2459_v26 = vpop.f32.mrb[28].mxu1 }
 0x67f   :  { %v2608_v9 = vadd.f32 %v2459_v26, %v2310_v2  ;;  %v2390_v41 = vpop.f32.mrb[21].mxu0  ;;  %v2461_v57 = vpop.f32.mrb[29].mxu1  ;;  %v2655_v26 = vrot.slane %v7737_v63, 6 }
 0x680   :  { %v2609_v3 = vadd.f32 %v2461_v57, %v2311_v6  ;;  %v2606_v57 = vadd.f32 %v2388_v51, %v2308_v36  ;;  %v2315_v36 = vld [vmem:[#allocation2 + $0x78] sm:$0x3] }
 0x681   :  { %v4052_v44 = vmul.f32 -1.442695, %v2608_v9  ;;  %v2309_v9 = vld [vmem:[#allocation2 + $0x48] sm:$0x3] }
 0x682   :  { %v4053_v25 = vmul.f32 -1.442695, %v2609_v3  ;;  %v2607_v6 = vadd.f32 %v2390_v41, %v2309_v9 }
 0x683   :  { %6556 = vpow2.f32 %v4052_v44  ;;  %v4050_v44 = vmul.f32 -1.442695, %v2606_v57 }
 0x684   :  { %6558 = vpow2.f32 %v4053_v25  ;;  %v4051_v3 = vmul.f32 -1.442695, %v2607_v6 }
 0x68d   :  { %v6557_v17 = vpop.eup %6556 }
 0x68e   :  { %v2634_v60 = vadd.f32 1.0, %v6557_v17  ;;  %v6559_v8 = vpop.eup %6558 }
 0x68f   :  { %v2635_v38 = vadd.f32 1.0, %v6559_v8 }
 0x690   :  { %6560 = vrcp.f32 %v2634_v60  ;;  %v2312_v60 = vld [vmem:[#allocation2 + $0x60] sm:$0x3] }
 0x691   :  { %6562 = vrcp.f32 %v2635_v38 }
 0x692   :  { %6564 = vpow2.f32 %v4050_v44 }
 0x693   :  { %6566 = vpow2.f32 %v4051_v3 }
 0x69a   :  { %v6561_v53 = vpop.eup %6560 }
 0x69b   :  { %v2658_v5 = vmul.f32 %v6561_v53, %v2654_v43  ;;  %v6563_v2 = vpop.eup %6562 }
 0x69c   :  { %v2659_v18 = vmul.f32 %v6563_v2, %v2655_v26  ;;  %v6565_v25 = vpop.eup %6564  ;;  %v2313_v26 = vld [vmem:[#allocation2 + $0x68] sm:$0x3] }
 0x69d   :  { %v6567_v17 = vpop.eup %6566  ;;  %v2632_v8 = vadd.f32 1.0, %v6565_v25 }
 0x69e   :  { %v2633_v38 = vadd.f32 1.0, %v6567_v17 }
 0x69f   :  { %6568 = vrcp.f32 %v2632_v8 }
 0x6a0   :  { %6570 = vrcp.f32 %v2633_v38 }
 0x6a9   :  { %v6569_v44 = vpop.eup %6568 }
 0x6aa   :  { %v6571_v3 = vpop.eup %6570 }
 0x6be   :  { %v2530_v49 = vpop.f32.mrb[22].mxu0  ;;  %v2601_v53 = vpop.f32.mrb[30].mxu1 }
 0x6bf   :  { %v2610_v63 = vadd.f32 %v2530_v49, %v2312_v60  ;;  %v2612_v43 = vadd.f32 %v2601_v53, %v2314_v29  ;;  %v2532_v2 = vpop.f32.mrb[23].mxu0  ;;  %v2603_v51 = vpop.f32.mrb[31].mxu1 }
 0x6c0   :  { %v2611_v41 = vadd.f32 %v2532_v2, %v2313_v26  ;;  %v2613_v57 = vadd.f32 %v2603_v51, %v2315_v36 }
 0x6c1   :  { %v4054_v9 = vmul.f32 -1.442695, %v2610_v63  ;;  %6572 = vtanh.f32 %v2612_v43 }
 0x6c2   :  { %v4055_v6 = vmul.f32 -1.442695, %v2611_v41  ;;  %6574 = vtanh.f32 %v2613_v57  ;;  %v9080_v57 = vld [vmem:[#allocation115_spill] sm:$0xff] }
 0x6c3   :  { %6576 = vpow2.f32 %v4054_v9  ;;  %v9081_v9 = vld [vmem:[#allocation90_spill] sm:$0xff] }
 0x6c4   :  { %6578 = vpow2.f32 %v4055_v6  ;;  %v9082_v6 = vld [vmem:[#allocation116_spill] sm:$0xff] }
 0x6cb   :  { %v6573_v25 = vpop.eup %6572 }
 0x6cc   :  { %v6575_v17 = vpop.eup %6574  ;;  %v2660_v8 = vmul.f32 %v6573_v25, %v6569_v44  ;;  %v9083_v44 = vld [vmem:[#allocation92_spill] sm:$0xff]  ;;  %v9085_v25 = vld [vmem:[#allocation94_spill] sm:$0xff] }
 0x6cd   :  { %v6577_v60 = vpop.eup %6576  ;;  %v2661_v29 = vmul.f32 %v6575_v17, %v6571_v3  ;;  %v9084_v3 = vld [vmem:[#allocation117_spill] sm:$0xff]  ;;  %v9086_v17 = vld [vmem:[#allocation118_spill] sm:$0xff] }
 0x6ce   :  { %v6579_v49 = vpop.eup %6578  ;;  %v2636_v53 = vadd.f32 1.0, %v6577_v60  ;;  %v7877_v21 = vadd.f32 %v2660_v8, %v2658_v5  ;;  %v9079_v5 = vld [vmem:[#allocation88_spill] sm:$0xff]  ;;  %v9088_v60 = vld [vmem:[#allocation119_spill] sm:$0xff] }
 0x6cf   :  { %v2637_v38 = vadd.f32 1.0, %v6579_v49  ;;  %v7879_v26 = vadd.f32 %v2661_v29, %v2659_v18  ;;  %v9078_v18 = vld [vmem:[#allocation114_spill] sm:$0xff]  ;;  %v9087_v8 = vld [vmem:[#allocation96_spill] sm:$0xff] }
 0x6d0   :  { %6580 = vrcp.f32 %v2636_v53  ;;  %v9089_v29 = vld [vmem:[#allocation98_spill] sm:$0xff]  ;;  %v9090_v49 = vld [vmem:[#allocation120_spill] sm:$0xff] }
 0x6d1   :  { %6582 = vtanh.f32 %v7877_v21  ;;  %v9091_v53 = vld [vmem:[#allocation100_spill] sm:$0xff] }
 0x6d2   :  { %6584 = vrcp.f32 %v2637_v38  ;;  %v9092_v38 = vld [vmem:[#allocation121_spill] sm:$0xff] }
 0x6d3   :  { %6586 = vtanh.f32 %v7879_v26 }
 0x6da   :  { %v6581_v63 = vpop.eup %6580 }
 0x6db   :  { %v6583_v43 = vpop.eup %6582 }
 0x6dc   :  { %v6585_v2 = vpop.eup %6584  ;;  %v7883_v36 = vmul.f32 %v6583_v43, %v6581_v63  ;;  %v9093_v63 = vld [vmem:[#allocation102_spill] sm:$0xff] }
 0x6dd   :  { %v6587_v51 = vpop.eup %6586  ;;  %v9094_v43 = vld [vmem:[#allocation122_spill] sm:$0xff] }
 0x6de   :  { %v2667_v41 = vmul.f32 %v6587_v51, %v6585_v2  ;;  %2668 = vst [vmem:[#allocation3 + $0x8] sm:$0x3] %v7883_v36  ;;  %v9095_v2 = vld [vmem:[#allocation104_spill] sm:$0xff]  ;;  %v9096_v51 = vld [vmem:[#allocation123_spill] sm:$0xff] }
 0x6e0   :  { %2669 = vst [vmem:[#allocation4 + $0x6] sm:$0x3] %v2667_v41  ;;  %2742 = vmatprep.mubr.f32.mxu0 %v2667_v41  ;;  %2813 = vmatprep.mubr.f32.mxu1 %v2667_v41 }
 0x6e1   :  { %2743 = vmatmul.mubr.f32.vlgmr.msra.gmra.mrb[24].mxu0 %v7883_v36  ;;  %2814 = vmatmul.mubr.f32.vlgmr.msra.gmra.mrb[32].mxu1 %v7883_v36 }
 0x6e2   :  { %5720 = vmatpush1.bf16.msra.mxu0 %v8727_v39  ;;  %5784 = vmatpush1.bf16.msra.mxu1 %v7120_v45 }
 0x6e3   :  { %2884 = vmatprep.mubr.f32.mxu0 %v2667_v41  ;;  %2955 = vmatprep.mubr.f32.mxu1 %v2667_v41  ;;  %v9097_v41 = vld [vmem:[#allocation106_spill] sm:$0xff] }
 0x6e4   :  { %5722 = vmatprep.subr.bf16.mxu0 %v8728_v30  ;;  %5786 = vmatprep.subr.bf16.mxu1 %v7124_v61 }
 0x6e6   :  { %5724 = vmatpush1.bf16.msra.mxu0 %v8729_v10  ;;  %5788 = vmatpush1.bf16.msra.mxu1 %v7130_v35 }
 0x6e7   :  { %5726 = vmatprep.subr.bf16.mxu0 %v8730_v52  ;;  %5790 = vmatprep.subr.bf16.mxu1 %v7133_v22 }
 0x6ea   :  { %5728 = vmatpush1.bf16.msra.mxu0 %v8731_v48  ;;  %5792 = vmatpush1.bf16.msra.mxu1 %v7139_v42 }
 0x6eb   :  { %5730 = vmatprep.subr.bf16.mxu0 %v8732_v20  ;;  %5794 = vmatprep.subr.bf16.mxu1 %v7142_v15 }
 0x6ee   :  { %5732 = vmatpush1.bf16.msra.mxu0 %v8733_v14  ;;  %5796 = vmatpush1.bf16.msra.mxu1 %v7147_v50 }
 0x6ef   :  { %5734 = vmatprep.subr.bf16.mxu0 %v8734_v31  ;;  %5798 = vmatprep.subr.bf16.mxu1 %v7150_v37 }
 0x6f2   :  { %5736 = vmatpush1.bf16.msra.mxu0 %v8735_v40  ;;  %5800 = vmatpush1.bf16.msra.mxu1 %v7155_v62 }
 0x6f3   :  { %5738 = vmatprep.subr.bf16.mxu0 %v8736_v13  ;;  %5802 = vmatprep.subr.bf16.mxu1 %v7158_v7 }
 0x6f6   :  { %5740 = vmatpush1.bf16.msra.mxu0 %v8737_v34  ;;  %5804 = vmatpush1.bf16.msra.mxu1 %v7163_v12 }
 0x6f7   :  { %5742 = vmatprep.subr.bf16.mxu0 %v8738_v46  ;;  %5806 = vmatprep.subr.bf16.mxu1 %v7166_v55 }
 0x6fa   :  { %5744 = vmatpush1.bf16.msra.mxu0 %v8739_v58  ;;  %5808 = vmatpush1.bf16.msra.mxu1 %v7171_v24 }
 0x6fb   :  { %5746 = vmatprep.subr.bf16.mxu0 %v8740_v16  ;;  %5810 = vmatprep.subr.bf16.mxu1 %v7174_v4 }
 0x6fe   :  { %5748 = vmatpush1.bf16.msra.mxu0 %v8741_v1  ;;  %5812 = vmatpush1.bf16.msra.mxu1 %v8814_v23 }
 0x6ff   :  { %5750 = vmatprep.subr.bf16.mxu0 %v8742_v59  ;;  %5814 = vmatprep.subr.bf16.mxu1 %v8815_v56 }
 0x702   :  { %5752 = vmatpush1.bf16.msra.mxu0 %v8743_v19  ;;  %5816 = vmatpush1.bf16.msra.mxu1 %v8816_v11 }
 0x703   :  { %5754 = vmatprep.subr.bf16.mxu0 %v8744_v54  ;;  %5818 = vmatprep.subr.bf16.mxu1 %v8817_v27 }
 0x706   :  { %5756 = vmatpush1.bf16.msra.mxu0 %v8745_v0  ;;  %5820 = vmatpush1.bf16.msra.mxu1 %v8818_v32 }
 0x707   :  { %5758 = vmatprep.subr.bf16.mxu0 %v8746_v28  ;;  %5822 = vmatprep.subr.bf16.mxu1 %v8819_v33 }
 0x70a   :  { %5760 = vmatpush1.bf16.msra.mxu0 %v8990_v47  ;;  %5824 = vmatpush1.bf16.msra.mxu1 %v9078_v18 }
 0x70b   :  { %5762 = vmatprep.subr.bf16.mxu0 %v9079_v5  ;;  %5826 = vmatprep.subr.bf16.mxu1 %v9080_v57 }
 0x70e   :  { %5764 = vmatpush1.bf16.msra.mxu0 %v9081_v9  ;;  %5828 = vmatpush1.bf16.msra.mxu1 %v9082_v6  ;;  %v3035_v9 = vrot.slane %v7879_v26, 6 }
 0x70f   :  { %5766 = vmatprep.subr.bf16.mxu0 %v9083_v44  ;;  %5830 = vmatprep.subr.bf16.mxu1 %v9084_v3  ;;  %v2673_v3 = vld [vmem:[#allocation2 + $0x58] sm:$0xc] }
 0x712   :  { %5768 = vmatpush1.bf16.msra.mxu0 %v9085_v25  ;;  %5832 = vmatpush1.bf16.msra.mxu1 %v9086_v17 }
 0x713   :  { %5770 = vmatprep.subr.bf16.mxu0 %v9087_v8  ;;  %5834 = vmatprep.subr.bf16.mxu1 %v9088_v60  ;;  %v9098_v8 = vld [vmem:[#allocation124_spill] sm:$0xff]  ;;  %v9099_v60 = vld [vmem:[#allocation11_spill] sm:$0xff] }
 0x716   :  { %5772 = vmatpush1.bf16.msra.mxu0 %v9089_v29  ;;  %5836 = vmatpush1.bf16.msra.mxu1 %v9090_v49  ;;  %v9100_v29 = vld [vmem:[#allocation43_spill] sm:$0xff] }
 0x717   :  { %5774 = vmatprep.subr.bf16.mxu0 %v9091_v53  ;;  %5838 = vmatprep.subr.bf16.mxu1 %v9092_v38  ;;  %v9101_v38 = vld [vmem:[#allocation12_spill] sm:$0xff]  ;;  %v9110_v53 = vld [vmem:[#allocation53_spill] sm:$0xff] }
 0x71a   :  { %5776 = vmatpush1.bf16.msra.mxu0 %v9093_v63  ;;  %5840 = vmatpush1.bf16.msra.mxu1 %v9094_v43  ;;  %v9102_v63 = vld [vmem:[#allocation45_spill] sm:$0xff] }
 0x71b   :  { %5778 = vmatprep.subr.bf16.mxu0 %v9095_v2  ;;  %5842 = vmatprep.subr.bf16.mxu1 %v9096_v51  ;;  %v9103_v43 = vld [vmem:[#allocation13_spill] sm:$0xff]  ;;  %v9104_v2 = vld [vmem:[#allocation47_spill] sm:$0xff]  ;;  %v9105_v51 = vld [vmem:[#allocation14_spill] sm:$0xff] }
 0x71e   :  { %5780 = vmatpush1.bf16.msra.mxu0 %v9097_v41  ;;  %5844 = vmatpush1.bf16.msra.mxu1 %v9098_v8  ;;  %v9106_v41 = vld [vmem:[#allocation49_spill] sm:$0xff]  ;;  %v9107_v8 = vld [vmem:[#allocation15_spill] sm:$0xff] }
 0x71f   :  { %5846 = vmatprep.subr.bf16.mxu0 %v9099_v60  ;;  %5910 = vmatprep.subr.bf16.mxu1 %v9100_v29  ;;  %v9108_v60 = vld [vmem:[#allocation51_spill] sm:$0xff]  ;;  %v9109_v29 = vld [vmem:[#allocation16_spill] sm:$0xff] }
 0x721   :  { %2885 = vmatmul.mubr.f32.vlgmr.msra.gmra.mrb[26].mxu0 %v7883_v36  ;;  %2956 = vmatmul.mubr.f32.vlgmr.msra.gmra.mrb[34].mxu1 %v7883_v36  ;;  %v9111_v36 = vld [vmem:[#allocation17_spill] sm:$0xff] }
 0x722   :  { %5848 = vmatpush1.bf16.msra.mxu0 %v9101_v38  ;;  %5912 = vmatpush1.bf16.msra.mxu1 %v9102_v63  ;;  %v9112_v38 = vld [vmem:[#allocation55_spill] sm:$0xff]  ;;  %v9113_v63 = vld [vmem:[#allocation18_spill] sm:$0xff] }
 0x723   :  { %5850 = vmatprep.subr.bf16.mxu0 %v9103_v43  ;;  %5914 = vmatprep.subr.bf16.mxu1 %v9104_v2  ;;  %v9114_v43 = vld [vmem:[#allocation57_spill] sm:$0xff]  ;;  %v9115_v2 = vld [vmem:[#allocation19_spill] sm:$0xff] }
 0x726   :  { %5852 = vmatpush1.bf16.msra.mxu0 %v9105_v51  ;;  %5916 = vmatpush1.bf16.msra.mxu1 %v9106_v41  ;;  %v9116_v51 = vld [vmem:[#allocation59_spill] sm:$0xff]  ;;  %v9117_v41 = vld [vmem:[#allocation20_spill] sm:$0xff] }
 0x727   :  { %5854 = vmatprep.subr.bf16.mxu0 %v9107_v8  ;;  %5918 = vmatprep.subr.bf16.mxu1 %v9108_v60  ;;  %v9118_v8 = vld [vmem:[#allocation61_spill] sm:$0xff] }
 0x728   :  { %v9119_v60 = vld [vmem:[#allocation21_spill] sm:$0xff] }
 0x72a   :  { %5856 = vmatpush1.bf16.msra.mxu0 %v9109_v29  ;;  %5920 = vmatpush1.bf16.msra.mxu1 %v9110_v53  ;;  %v9120_v29 = vld [vmem:[#allocation63_spill] sm:$0xff]  ;;  %v9121_v53 = vld [vmem:[#allocation22_spill] sm:$0xff] }
 0x72b   :  { %5858 = vmatprep.subr.bf16.mxu0 %v9111_v36  ;;  %5922 = vmatprep.subr.bf16.mxu1 %v9112_v38  ;;  %v9122_v36 = vld [vmem:[#allocation65_spill] sm:$0xff]  ;;  %v9123_v38 = vld [vmem:[#allocation23_spill] sm:$0xff] }
 0x72e   :  { %5860 = vmatpush1.bf16.msra.mxu0 %v9113_v63  ;;  %5924 = vmatpush1.bf16.msra.mxu1 %v9114_v43  ;;  %v9124_v63 = vld [vmem:[#allocation67_spill] sm:$0xff]  ;;  %v9125_v43 = vld [vmem:[#allocation24_spill] sm:$0xff] }
 0x72f   :  { %5862 = vmatprep.subr.bf16.mxu0 %v9115_v2  ;;  %5926 = vmatprep.subr.bf16.mxu1 %v9116_v51  ;;  %v9126_v2 = vld [vmem:[#allocation69_spill] sm:$0xff] }
 0x730   :  { %v9127_v51 = vld [vmem:[#allocation25_spill] sm:$0xff] }
 0x732   :  { %5864 = vmatpush1.bf16.msra.mxu0 %v9117_v41  ;;  %5928 = vmatpush1.bf16.msra.mxu1 %v9118_v8  ;;  %v9128_v41 = vld [vmem:[#allocation71_spill] sm:$0xff]  ;;  %v9129_v8 = vld [vmem:[#allocation26_spill] sm:$0xff] }
 0x733   :  { %5866 = vmatprep.subr.bf16.mxu0 %v9119_v60  ;;  %5930 = vmatprep.subr.bf16.mxu1 %v9120_v29  ;;  %v9130_v60 = vld [vmem:[#allocation73_spill] sm:$0xff]  ;;  %v9131_v29 = vld [vmem:[#allocation27_spill] sm:$0xff] }
 0x736   :  { %5868 = vmatpush1.bf16.msra.mxu0 %v9121_v53  ;;  %5932 = vmatpush1.bf16.msra.mxu1 %v9122_v36  ;;  %v9132_v53 = vld [vmem:[#allocation75_spill] sm:$0xff]  ;;  %v9133_v36 = vld [vmem:[#allocation28_spill] sm:$0xff] }
 0x737   :  { %5870 = vmatprep.subr.bf16.mxu0 %v9123_v38  ;;  %5934 = vmatprep.subr.bf16.mxu1 %v9124_v63  ;;  %v9134_v38 = vld [vmem:[#allocation77_spill] sm:$0xff] }
 0x738   :  { %v9135_v63 = vld [vmem:[#allocation29_spill] sm:$0xff] }
 0x73a   :  { %5872 = vmatpush1.bf16.msra.mxu0 %v9125_v43  ;;  %5936 = vmatpush1.bf16.msra.mxu1 %v9126_v2  ;;  %v9136_v43 = vld [vmem:[#allocation79_spill] sm:$0xff]  ;;  %v9137_v2 = vld [vmem:[#allocation30_spill] sm:$0xff] }
 0x73b   :  { %5874 = vmatprep.subr.bf16.mxu0 %v9127_v51  ;;  %5938 = vmatprep.subr.bf16.mxu1 %v9128_v41  ;;  %v9138_v51 = vld [vmem:[#allocation81_spill] sm:$0xff]  ;;  %v9139_v41 = vld [vmem:[#allocation31_spill] sm:$0xff] }
 0x73e   :  { %5876 = vmatpush1.bf16.msra.mxu0 %v9129_v8  ;;  %5940 = vmatpush1.bf16.msra.mxu1 %v9130_v60  ;;  %v9140_v8 = vld [vmem:[#allocation83_spill] sm:$0xff]  ;;  %v9141_v60 = vld [vmem:[#allocation32_spill] sm:$0xff] }
 0x73f   :  { %5878 = vmatprep.subr.bf16.mxu0 %v9131_v29  ;;  %5942 = vmatprep.subr.bf16.mxu1 %v9132_v53  ;;  %v9142_v29 = vld [vmem:[#allocation85_spill] sm:$0xff] }
 0x740   :  { %v9143_v53 = vld [vmem:[#allocation33_spill] sm:$0xff] }
 0x742   :  { %5880 = vmatpush1.bf16.msra.mxu0 %v9133_v36  ;;  %5944 = vmatpush1.bf16.msra.mxu1 %v9134_v38  ;;  %v9144_v36 = vld [vmem:[#allocation87_spill] sm:$0xff]  ;;  %v9145_v38 = vld [vmem:[#allocation34_spill] sm:$0xff] }
 0x743   :  { %5882 = vmatprep.subr.bf16.mxu0 %v9135_v63  ;;  %5946 = vmatprep.subr.bf16.mxu1 %v9136_v43  ;;  %v9146_v63 = vld [vmem:[#allocation89_spill] sm:$0xff]  ;;  %v9147_v43 = vld [vmem:[#allocation35_spill] sm:$0xff] }
 0x746   :  { %5884 = vmatpush1.bf16.msra.mxu0 %v9137_v2  ;;  %5948 = vmatpush1.bf16.msra.mxu1 %v9138_v51  ;;  %v9148_v2 = vld [vmem:[#allocation91_spill] sm:$0xff]  ;;  %v9149_v51 = vld [vmem:[#allocation36_spill] sm:$0xff] }
 0x747   :  { %5886 = vmatprep.subr.bf16.mxu0 %v9139_v41  ;;  %5950 = vmatprep.subr.bf16.mxu1 %v9140_v8  ;;  %v9150_v41 = vld [vmem:[#allocation93_spill] sm:$0xff] }
 0x748   :  { %v9151_v8 = vld [vmem:[#allocation37_spill] sm:$0xff] }
 0x74a   :  { %5888 = vmatpush1.bf16.msra.mxu0 %v9141_v60  ;;  %5952 = vmatpush1.bf16.msra.mxu1 %v9142_v29  ;;  %v9152_v60 = vld [vmem:[#allocation95_spill] sm:$0xff]  ;;  %v9153_v29 = vld [vmem:[#allocation38_spill] sm:$0xff] }
 0x74b   :  { %5890 = vmatprep.subr.bf16.mxu0 %v9143_v53  ;;  %5954 = vmatprep.subr.bf16.mxu1 %v9144_v36  ;;  %v9154_v53 = vld [vmem:[#allocation97_spill] sm:$0xff]  ;;  %v9155_v36 = vld [vmem:[#allocation39_spill] sm:$0xff] }
 0x74e   :  { %5892 = vmatpush1.bf16.msra.mxu0 %v9145_v38  ;;  %5956 = vmatpush1.bf16.msra.mxu1 %v9146_v63  ;;  %v9156_v38 = vld [vmem:[#allocation99_spill] sm:$0xff]  ;;  %v9157_v63 = vld [vmem:[#allocation40_spill] sm:$0xff] }
 0x74f   :  { %5894 = vmatprep.subr.bf16.mxu0 %v9147_v43  ;;  %5958 = vmatprep.subr.bf16.mxu1 %v9148_v2  ;;  %v9158_v43 = vld [vmem:[#allocation101_spill] sm:$0xff] }
 0x750   :  { %v9159_v2 = vld [vmem:[#allocation41_spill] sm:$0xff] }
 0x752   :  { %5896 = vmatpush1.bf16.msra.mxu0 %v9149_v51  ;;  %5960 = vmatpush1.bf16.msra.mxu1 %v9150_v41  ;;  %v9160_v51 = vld [vmem:[#allocation103_spill] sm:$0xff]  ;;  %v9161_v41 = vld [vmem:[#allocation42_spill] sm:$0xff] }
 0x753   :  { %5898 = vmatprep.subr.bf16.mxu0 %v9151_v8  ;;  %5962 = vmatprep.subr.bf16.mxu1 %v9152_v60  ;;  %v9162_v8 = vld [vmem:[#allocation105_spill] sm:$0xff]  ;;  %v9163_v60 = vld [vmem:[#allocation44_spill] sm:$0xff] }
 0x756   :  { %5900 = vmatpush1.bf16.msra.mxu0 %v9153_v29  ;;  %5964 = vmatpush1.bf16.msra.mxu1 %v9154_v53  ;;  %v9164_v29 = vld [vmem:[#allocation107_spill] sm:$0xff] }
 0x757   :  { %5902 = vmatprep.subr.bf16.mxu0 %v9155_v36  ;;  %5966 = vmatprep.subr.bf16.mxu1 %v9156_v38 }
 0x75a   :  { %5904 = vmatpush1.bf16.msra.mxu0 %v9157_v63  ;;  %5968 = vmatpush1.bf16.msra.mxu1 %v9158_v43  ;;  %v2672_v63 = vld [vmem:[#allocation2 + $0x50] sm:$0xc] }
 0x75b   :  { %5906 = vmatprep.subr.bf16.mxu0 %v9159_v2  ;;  %5970 = vmatprep.subr.bf16.mxu1 %v9160_v51 }
 0x75e   :  { %5908 = vmatpush1.bf16.msra.mxu0 %v9161_v41  ;;  %5972 = vmatpush1.bf16.msra.mxu1 %v9162_v8 }
 0x75f   :  { %5974 = vmatprep.subr.bf16.mxu0 %v9163_v60  ;;  %6038 = vmatprep.subr.bf16.mxu1 %v9164_v29  ;;  %v3034_v29 = vrot.slane %v7877_v21, 6 }
 0x7b4   :  { %v2744_v53 = vpop.f32.mrb[24].mxu0  ;;  %v2815_v36 = vpop.f32.mrb[32].mxu1 }
 0x7b5   :  { %v2972_v49 = vrot.slane %v2815_v36, 6  ;;  %v2746_v38 = vpop.f32.mrb[25].mxu0  ;;  %v2817_v17 = vpop.f32.mrb[33].mxu1 }
 0x7b6   :  { %v2973_v25 = vrot.slane %v2817_v17, 6 }
 0x7b7   :  { %v2988_v43 = vadd.f32 %v2972_v49, %v2672_v63  ;;  %v2970_v63 = vrot.slane %v2744_v53, 6  ;;  %v2674_v53 = vld [vmem:[#allocation2 + $0x60] sm:$0xc] }
 0x7b8   :  { %v2989_v2 = vadd.f32 %v2973_v25, %v2673_v3  ;;  %v2971_v3 = vrot.slane %v2746_v38, 6  ;;  %v2670_v25 = vld [vmem:[#allocation2 + $0x40] sm:$0xc]  ;;  %v2676_v38 = vld [vmem:[#allocation2 + $0x70] sm:$0xc] }
 0x7b9   :  { %v4058_v44 = vmul.f32 -1.442695, %v2988_v43  ;;  %v2986_v43 = vadd.f32 %v2970_v63, %v2670_v25 }
 0x7ba   :  { %v4059_v51 = vmul.f32 -1.442695, %v2989_v2 }
 0x7bb   :  { %6588 = vpow2.f32 %v4058_v44  ;;  %v2671_v44 = vld [vmem:[#allocation2 + $0x48] sm:$0xc] }
 0x7bc   :  { %6590 = vpow2.f32 %v4059_v51  ;;  %v2987_v2 = vadd.f32 %v2971_v3, %v2671_v44  ;;  %v4056_v51 = vmul.f32 -1.442695, %v2986_v43  ;;  %v2675_v43 = vld [vmem:[#allocation2 + $0x68] sm:$0xc]  ;;  %v2677_v44 = vld [vmem:[#allocation2 + $0x78] sm:$0xc] }
 0x7c5   :  { %v6589_v41 = vpop.eup %6588 }
 0x7c6   :  { %v3014_v8 = vadd.f32 1.0, %v6589_v41  ;;  %v6591_v6 = vpop.eup %6590  ;;  %v4057_v41 = vmul.f32 -1.442695, %v2987_v2 }
 0x7c7   :  { %v3015_v60 = vadd.f32 1.0, %v6591_v6 }
 0x7c8   :  { %6592 = vrcp.f32 %v3014_v8 }
 0x7c9   :  { %6594 = vrcp.f32 %v3015_v60 }
 0x7ca   :  { %6596 = vpow2.f32 %v4056_v51 }
 0x7cb   :  { %6598 = vpow2.f32 %v4057_v41 }
 0x7d2   :  { %v6593_v36 = vpop.eup %6592 }
 0x7d3   :  { %v3038_v57 = vmul.f32 %v6593_v36, %v3034_v29  ;;  %v6595_v17 = vpop.eup %6594 }
 0x7d4   :  { %v3039_v49 = vmul.f32 %v6595_v17, %v3035_v9  ;;  %v6597_v6 = vpop.eup %6596 }
 0x7d5   :  { %v6599_v8 = vpop.eup %6598  ;;  %v3012_v60 = vadd.f32 1.0, %v6597_v6 }
 0x7d6   :  { %v3013_v21 = vadd.f32 1.0, %v6599_v8 }
 0x7d7   :  { %6600 = vrcp.f32 %v3012_v60 }
 0x7d8   :  { %6602 = vrcp.f32 %v3013_v21 }
 0x7f4   :  { %v2886_v5 = vpop.f32.mrb[26].mxu0  ;;  %v2957_v18 = vpop.f32.mrb[34].mxu1 }
 0x7f5   :  { %v2974_v26 = vrot.slane %v2886_v5, 6  ;;  %v2976_v29 = vrot.slane %v2957_v18, 6  ;;  %v2888_v36 = vpop.f32.mrb[27].mxu0  ;;  %v2959_v9 = vpop.f32.mrb[35].mxu1 }
 0x7f6   :  { %v2975_v17 = vrot.slane %v2888_v36, 6  ;;  %v2977_v63 = vrot.slane %v2959_v9, 6  ;;  %v6601_v18 = vpop.eup %6600 }
 0x7f7   :  { %v2990_v3 = vadd.f32 %v2974_v26, %v2674_v53  ;;  %v2992_v25 = vadd.f32 %v2976_v29, %v2676_v38  ;;  %v6603_v5 = vpop.eup %6602 }
 0x7f8   :  { %v2991_v2 = vadd.f32 %v2975_v17, %v2675_v43  ;;  %v2993_v51 = vadd.f32 %v2977_v63, %v2677_v44 }
 0x7f9   :  { %v4060_v41 = vmul.f32 -1.442695, %v2990_v3  ;;  %6604 = vtanh.f32 %v2992_v25 }
 0x7fa   :  { %v4061_v6 = vmul.f32 -1.442695, %v2991_v2  ;;  %6606 = vtanh.f32 %v2993_v51  ;;  %v9166_v2 = vld [vmem:[#allocation114_spill] sm:$0xff]  ;;  %v9167_v51 = vld [vmem:[#allocation88_spill] sm:$0xff] }
 0x7fb   :  { %6608 = vpow2.f32 %v4060_v41  ;;  %v9168_v41 = vld [vmem:[#allocation115_spill] sm:$0xff] }
 0x7fc   :  { %6610 = vpow2.f32 %v4061_v6  ;;  %v9169_v6 = vld [vmem:[#allocation90_spill] sm:$0xff] }
 0x803   :  { %v6605_v8 = vpop.eup %6604 }
 0x804   :  { %v6607_v47 = vpop.eup %6606  ;;  %v3040_v36 = vmul.f32 %v6605_v8, %v6601_v18  ;;  %v9170_v18 = vld [vmem:[#allocation116_spill] sm:$0xff]  ;;  %v9172_v8 = vld [vmem:[#allocation117_spill] sm:$0xff] }
 0x805   :  { %v6609_v9 = vpop.eup %6608  ;;  %v3041_v60 = vmul.f32 %v6607_v47, %v6603_v5  ;;  %v9171_v5 = vld [vmem:[#allocation92_spill] sm:$0xff] }
 0x806   :  { %v6611_v26 = vpop.eup %6610  ;;  %v3016_v29 = vadd.f32 1.0, %v6609_v9  ;;  %v8020_v53 = vadd.f32 %v3040_v36, %v3038_v57  ;;  %v9173_v36 = vld [vmem:[#allocation94_spill] sm:$0xff] }
 0x807   :  { %v3017_v21 = vadd.f32 1.0, %v6611_v26  ;;  %v8022_v38 = vadd.f32 %v3041_v60, %v3039_v49  ;;  %v9165_v49 = vld [vmem:[#allocation86_spill] sm:$0xff]  ;;  %v9175_v60 = vld [vmem:[#allocation96_spill] sm:$0xff]  ;;  %v9176_v26 = vld [vmem:[#allocation119_spill] sm:$0xff] }
 0x808   :  { %6612 = vrcp.f32 %v3016_v29  ;;  %v9174_v9 = vld [vmem:[#allocation118_spill] sm:$0xff] }
 0x809   :  { %6614 = vtanh.f32 %v8020_v53  ;;  %v9177_v29 = vld [vmem:[#allocation98_spill] sm:$0xff] }
 0x80a   :  { %6616 = vrcp.f32 %v3017_v21  ;;  %v9178_v21 = vld [vmem:[#allocation120_spill] sm:$0xff] }
 0x80b   :  { %6618 = vtanh.f32 %v8022_v38 }
 0x812   :  { %v6613_v17 = vpop.eup %6612 }
 0x813   :  { %v6615_v63 = vpop.eup %6614 }
 0x814   :  { %v6617_v3 = vpop.eup %6616  ;;  %v3046_v25 = vmul.f32 %v6615_v63, %v6613_v17  ;;  %v9179_v17 = vld [vmem:[#allocation100_spill] sm:$0xff]  ;;  %v9180_v63 = vld [vmem:[#allocation121_spill] sm:$0xff] }
 0x815   :  { %v6619_v43 = vpop.eup %6618 }
 0x816   :  { %v3047_v44 = vmul.f32 %v6619_v43, %v6617_v3  ;;  %3048 = vst [vmem:[#allocation3 + $0x8] sm:$0xc] %v3046_v25  ;;  %v8026_v57 = vrot.slane %v3046_v25, 2  ;;  %v9181_v3 = vld [vmem:[#allocation102_spill] sm:$0xff]  ;;  %v9183_v43 = vld [vmem:[#allocation104_spill] sm:$0xff] }
 0x817   :  { %v9182_v25 = vld [vmem:[#allocation122_spill] sm:$0xff] }
 0x818   :  { %3049 = vst [vmem:[#allocation4 + $0x2] sm:$0xc] %v3047_v44  ;;  %v3061_v47 = vrot.slane %v3047_v44, 2  ;;  %v9184_v44 = vld [vmem:[#allocation123_spill] sm:$0xff] }
 0x81a   :  { %3128 = vmatprep.mubr.f32.mxu0 %v3061_v47  ;;  %3199 = vmatprep.mubr.f32.mxu1 %v3061_v47 }
 0x81b   :  { %3129 = vmatmul.mubr.f32.vlgmr.msra.gmra.mrb[28].mxu0 %v8026_v57  ;;  %3200 = vmatmul.mubr.f32.vlgmr.msra.gmra.mrb[36].mxu1 %v8026_v57 }
 0x81c   :  { %5976 = vmatpush1.bf16.msra.mxu0 %v8727_v39  ;;  %6040 = vmatpush1.bf16.msra.mxu1 %v7120_v45 }
 0x81d   :  { %3270 = vmatprep.mubr.f32.mxu0 %v3061_v47  ;;  %3341 = vmatprep.mubr.f32.mxu1 %v3061_v47  ;;  %v9185_v47 = vld [vmem:[#allocation106_spill] sm:$0xff] }
 0x81e   :  { %5978 = vmatprep.subr.bf16.mxu0 %v8728_v30  ;;  %6042 = vmatprep.subr.bf16.mxu1 %v7124_v61 }
 0x820   :  { %5980 = vmatpush1.bf16.msra.mxu0 %v8729_v10  ;;  %6044 = vmatpush1.bf16.msra.mxu1 %v7130_v35 }
 0x821   :  { %5982 = vmatprep.subr.bf16.mxu0 %v8730_v52  ;;  %6046 = vmatprep.subr.bf16.mxu1 %v7133_v22 }
 0x824   :  { %5984 = vmatpush1.bf16.msra.mxu0 %v8731_v48  ;;  %6048 = vmatpush1.bf16.msra.mxu1 %v7139_v42 }
 0x825   :  { %5986 = vmatprep.subr.bf16.mxu0 %v8732_v20  ;;  %6050 = vmatprep.subr.bf16.mxu1 %v7142_v15 }
 0x828   :  { %5988 = vmatpush1.bf16.msra.mxu0 %v8733_v14  ;;  %6052 = vmatpush1.bf16.msra.mxu1 %v7147_v50 }
 0x829   :  { %5990 = vmatprep.subr.bf16.mxu0 %v8734_v31  ;;  %6054 = vmatprep.subr.bf16.mxu1 %v7150_v37 }
 0x82c   :  { %5992 = vmatpush1.bf16.msra.mxu0 %v8735_v40  ;;  %6056 = vmatpush1.bf16.msra.mxu1 %v7155_v62 }
 0x82d   :  { %5994 = vmatprep.subr.bf16.mxu0 %v8736_v13  ;;  %6058 = vmatprep.subr.bf16.mxu1 %v7158_v7 }
 0x830   :  { %5996 = vmatpush1.bf16.msra.mxu0 %v8737_v34  ;;  %6060 = vmatpush1.bf16.msra.mxu1 %v7163_v12 }
 0x831   :  { %5998 = vmatprep.subr.bf16.mxu0 %v8738_v46  ;;  %6062 = vmatprep.subr.bf16.mxu1 %v7166_v55 }
 0x834   :  { %6000 = vmatpush1.bf16.msra.mxu0 %v8739_v58  ;;  %6064 = vmatpush1.bf16.msra.mxu1 %v7171_v24 }
 0x835   :  { %6002 = vmatprep.subr.bf16.mxu0 %v8740_v16  ;;  %6066 = vmatprep.subr.bf16.mxu1 %v7174_v4 }
 0x838   :  { %6004 = vmatpush1.bf16.msra.mxu0 %v8741_v1  ;;  %6068 = vmatpush1.bf16.msra.mxu1 %v8814_v23 }
 0x839   :  { %6006 = vmatprep.subr.bf16.mxu0 %v8742_v59  ;;  %6070 = vmatprep.subr.bf16.mxu1 %v8815_v56 }
 0x83c   :  { %6008 = vmatpush1.bf16.msra.mxu0 %v8743_v19  ;;  %6072 = vmatpush1.bf16.msra.mxu1 %v8816_v11 }
 0x83d   :  { %6010 = vmatprep.subr.bf16.mxu0 %v8744_v54  ;;  %6074 = vmatprep.subr.bf16.mxu1 %v8817_v27 }
 0x840   :  { %6012 = vmatpush1.bf16.msra.mxu0 %v8745_v0  ;;  %6076 = vmatpush1.bf16.msra.mxu1 %v8818_v32 }
 0x841   :  { %6014 = vmatprep.subr.bf16.mxu0 %v8746_v28  ;;  %6078 = vmatprep.subr.bf16.mxu1 %v8819_v33 }
 0x844   :  { %6016 = vmatpush1.bf16.msra.mxu0 %v9165_v49  ;;  %6080 = vmatpush1.bf16.msra.mxu1 %v9166_v2 }
 0x845   :  { %6018 = vmatprep.subr.bf16.mxu0 %v9167_v51  ;;  %6082 = vmatprep.subr.bf16.mxu1 %v9168_v41 }
 0x848   :  { %6020 = vmatpush1.bf16.msra.mxu0 %v9169_v6  ;;  %6084 = vmatpush1.bf16.msra.mxu1 %v9170_v18  ;;  %v3421_v6 = vrot.slane %v8022_v38, 6 }
 0x849   :  { %6022 = vmatprep.subr.bf16.mxu0 %v9171_v5  ;;  %6086 = vmatprep.subr.bf16.mxu1 %v9172_v8  ;;  %v3053_v8 = vld [vmem:[#allocation2 + $0x58] sm:$0x30] }
 0x84c   :  { %6024 = vmatpush1.bf16.msra.mxu0 %v9173_v36  ;;  %6088 = vmatpush1.bf16.msra.mxu1 %v9174_v9 }
 0x84d   :  { %6026 = vmatprep.subr.bf16.mxu0 %v9175_v60  ;;  %6090 = vmatprep.subr.bf16.mxu1 %v9176_v26  ;;  %v9186_v60 = vld [vmem:[#allocation124_spill] sm:$0xff]  ;;  %v9187_v26 = vld [vmem:[#allocation11_spill] sm:$0xff] }
 0x850   :  { %6028 = vmatpush1.bf16.msra.mxu0 %v9177_v29  ;;  %6092 = vmatpush1.bf16.msra.mxu1 %v9178_v21  ;;  %v9188_v29 = vld [vmem:[#allocation43_spill] sm:$0xff] }
 0x851   :  { %6030 = vmatprep.subr.bf16.mxu0 %v9179_v17  ;;  %6094 = vmatprep.subr.bf16.mxu1 %v9180_v63  ;;  %v9189_v63 = vld [vmem:[#allocation12_spill] sm:$0xff]  ;;  %v9198_v17 = vld [vmem:[#allocation53_spill] sm:$0xff] }
 0x854   :  { %6032 = vmatpush1.bf16.msra.mxu0 %v9181_v3  ;;  %6096 = vmatpush1.bf16.msra.mxu1 %v9182_v25  ;;  %v9190_v3 = vld [vmem:[#allocation45_spill] sm:$0xff] }
 0x855   :  { %6034 = vmatprep.subr.bf16.mxu0 %v9183_v43  ;;  %6098 = vmatprep.subr.bf16.mxu1 %v9184_v44  ;;  %v9191_v25 = vld [vmem:[#allocation13_spill] sm:$0xff]  ;;  %v9192_v43 = vld [vmem:[#allocation47_spill] sm:$0xff]  ;;  %v9193_v44 = vld [vmem:[#allocation14_spill] sm:$0xff] }
 0x858   :  { %6036 = vmatpush1.bf16.msra.mxu0 %v9185_v47  ;;  %6100 = vmatpush1.bf16.msra.mxu1 %v9186_v60  ;;  %v9194_v47 = vld [vmem:[#allocation49_spill] sm:$0xff]  ;;  %v9195_v60 = vld [vmem:[#allocation15_spill] sm:$0xff] }
 0x859   :  { %6102 = vmatprep.subr.bf16.mxu0 %v9187_v26  ;;  %6166 = vmatprep.subr.bf16.mxu1 %v9188_v29  ;;  %v9196_v26 = vld [vmem:[#allocation51_spill] sm:$0xff]  ;;  %v9197_v29 = vld [vmem:[#allocation16_spill] sm:$0xff] }
 0x85b   :  { %3271 = vmatmul.mubr.f32.vlgmr.msra.gmra.mrb[30].mxu0 %v8026_v57  ;;  %3342 = vmatmul.mubr.f32.vlgmr.msra.gmra.mrb[38].mxu1 %v8026_v57  ;;  %v9199_v57 = vld [vmem:[#allocation17_spill] sm:$0xff] }
 0x85c   :  { %6104 = vmatpush1.bf16.msra.mxu0 %v9189_v63  ;;  %6168 = vmatpush1.bf16.msra.mxu1 %v9190_v3  ;;  %v9200_v63 = vld [vmem:[#allocation55_spill] sm:$0xff]  ;;  %v9201_v3 = vld [vmem:[#allocation18_spill] sm:$0xff] }
 0x85d   :  { %6106 = vmatprep.subr.bf16.mxu0 %v9191_v25  ;;  %6170 = vmatprep.subr.bf16.mxu1 %v9192_v43  ;;  %v9202_v25 = vld [vmem:[#allocation57_spill] sm:$0xff]  ;;  %v9203_v43 = vld [vmem:[#allocation19_spill] sm:$0xff] }
 0x860   :  { %6108 = vmatpush1.bf16.msra.mxu0 %v9193_v44  ;;  %6172 = vmatpush1.bf16.msra.mxu1 %v9194_v47  ;;  %v9204_v44 = vld [vmem:[#allocation59_spill] sm:$0xff]  ;;  %v9205_v47 = vld [vmem:[#allocation20_spill] sm:$0xff] }
 0x861   :  { %6110 = vmatprep.subr.bf16.mxu0 %v9195_v60  ;;  %6174 = vmatprep.subr.bf16.mxu1 %v9196_v26  ;;  %v9206_v60 = vld [vmem:[#allocation61_spill] sm:$0xff] }
 0x862   :  { %v9207_v26 = vld [vmem:[#allocation21_spill] sm:$0xff] }
 0x864   :  { %6112 = vmatpush1.bf16.msra.mxu0 %v9197_v29  ;;  %6176 = vmatpush1.bf16.msra.mxu1 %v9198_v17  ;;  %v9208_v29 = vld [vmem:[#allocation63_spill] sm:$0xff]  ;;  %v9209_v17 = vld [vmem:[#allocation22_spill] sm:$0xff] }
 0x865   :  { %6114 = vmatprep.subr.bf16.mxu0 %v9199_v57  ;;  %6178 = vmatprep.subr.bf16.mxu1 %v9200_v63  ;;  %v9210_v57 = vld [vmem:[#allocation65_spill] sm:$0xff]  ;;  %v9211_v63 = vld [vmem:[#allocation23_spill] sm:$0xff] }
 0x868   :  { %6116 = vmatpush1.bf16.msra.mxu0 %v9201_v3  ;;  %6180 = vmatpush1.bf16.msra.mxu1 %v9202_v25  ;;  %v9212_v3 = vld [vmem:[#allocation67_spill] sm:$0xff]  ;;  %v9213_v25 = vld [vmem:[#allocation24_spill] sm:$0xff] }
 0x869   :  { %6118 = vmatprep.subr.bf16.mxu0 %v9203_v43  ;;  %6182 = vmatprep.subr.bf16.mxu1 %v9204_v44  ;;  %v9214_v43 = vld [vmem:[#allocation69_spill] sm:$0xff] }
 0x86a   :  { %v9215_v44 = vld [vmem:[#allocation25_spill] sm:$0xff] }
 0x86c   :  { %6120 = vmatpush1.bf16.msra.mxu0 %v9205_v47  ;;  %6184 = vmatpush1.bf16.msra.mxu1 %v9206_v60  ;;  %v9216_v47 = vld [vmem:[#allocation71_spill] sm:$0xff]  ;;  %v9217_v60 = vld [vmem:[#allocation26_spill] sm:$0xff] }
 0x86d   :  { %6122 = vmatprep.subr.bf16.mxu0 %v9207_v26  ;;  %6186 = vmatprep.subr.bf16.mxu1 %v9208_v29  ;;  %v9218_v26 = vld [vmem:[#allocation73_spill] sm:$0xff]  ;;  %v9219_v29 = vld [vmem:[#allocation27_spill] sm:$0xff] }
 0x870   :  { %6124 = vmatpush1.bf16.msra.mxu0 %v9209_v17  ;;  %6188 = vmatpush1.bf16.msra.mxu1 %v9210_v57  ;;  %v9220_v17 = vld [vmem:[#allocation75_spill] sm:$0xff]  ;;  %v9221_v57 = vld [vmem:[#allocation28_spill] sm:$0xff] }
 0x871   :  { %6126 = vmatprep.subr.bf16.mxu0 %v9211_v63  ;;  %6190 = vmatprep.subr.bf16.mxu1 %v9212_v3  ;;  %v9222_v63 = vld [vmem:[#allocation77_spill] sm:$0xff] }
 0x872   :  { %v9223_v3 = vld [vmem:[#allocation29_spill] sm:$0xff] }
 0x874   :  { %6128 = vmatpush1.bf16.msra.mxu0 %v9213_v25  ;;  %6192 = vmatpush1.bf16.msra.mxu1 %v9214_v43  ;;  %v9224_v25 = vld [vmem:[#allocation79_spill] sm:$0xff]  ;;  %v9225_v43 = vld [vmem:[#allocation30_spill] sm:$0xff] }
 0x875   :  { %6130 = vmatprep.subr.bf16.mxu0 %v9215_v44  ;;  %6194 = vmatprep.subr.bf16.mxu1 %v9216_v47  ;;  %v9226_v44 = vld [vmem:[#allocation81_spill] sm:$0xff]  ;;  %v9227_v47 = vld [vmem:[#allocation31_spill] sm:$0xff] }
 0x878   :  { %6132 = vmatpush1.bf16.msra.mxu0 %v9217_v60  ;;  %6196 = vmatpush1.bf16.msra.mxu1 %v9218_v26  ;;  %v9228_v60 = vld [vmem:[#allocation83_spill] sm:$0xff]  ;;  %v9229_v26 = vld [vmem:[#allocation32_spill] sm:$0xff] }
 0x879   :  { %6134 = vmatprep.subr.bf16.mxu0 %v9219_v29  ;;  %6198 = vmatprep.subr.bf16.mxu1 %v9220_v17  ;;  %v9230_v29 = vld [vmem:[#allocation85_spill] sm:$0xff] }
 0x87a   :  { %v9231_v17 = vld [vmem:[#allocation33_spill] sm:$0xff] }
 0x87c   :  { %6136 = vmatpush1.bf16.msra.mxu0 %v9221_v57  ;;  %6200 = vmatpush1.bf16.msra.mxu1 %v9222_v63  ;;  %v9232_v57 = vld [vmem:[#allocation87_spill] sm:$0xff]  ;;  %v9233_v63 = vld [vmem:[#allocation34_spill] sm:$0xff] }
 0x87d   :  { %6138 = vmatprep.subr.bf16.mxu0 %v9223_v3  ;;  %6202 = vmatprep.subr.bf16.mxu1 %v9224_v25  ;;  %v9234_v3 = vld [vmem:[#allocation89_spill] sm:$0xff]  ;;  %v9235_v25 = vld [vmem:[#allocation35_spill] sm:$0xff] }
 0x880   :  { %6140 = vmatpush1.bf16.msra.mxu0 %v9225_v43  ;;  %6204 = vmatpush1.bf16.msra.mxu1 %v9226_v44  ;;  %v9236_v43 = vld [vmem:[#allocation91_spill] sm:$0xff]  ;;  %v9237_v44 = vld [vmem:[#allocation36_spill] sm:$0xff] }
 0x881   :  { %6142 = vmatprep.subr.bf16.mxu0 %v9227_v47  ;;  %6206 = vmatprep.subr.bf16.mxu1 %v9228_v60  ;;  %v9238_v47 = vld [vmem:[#allocation93_spill] sm:$0xff] }
 0x882   :  { %v9239_v60 = vld [vmem:[#allocation37_spill] sm:$0xff] }
 0x884   :  { %6144 = vmatpush1.bf16.msra.mxu0 %v9229_v26  ;;  %6208 = vmatpush1.bf16.msra.mxu1 %v9230_v29  ;;  %v9240_v26 = vld [vmem:[#allocation95_spill] sm:$0xff]  ;;  %v9241_v29 = vld [vmem:[#allocation38_spill] sm:$0xff] }
 0x885   :  { %6146 = vmatprep.subr.bf16.mxu0 %v9231_v17  ;;  %6210 = vmatprep.subr.bf16.mxu1 %v9232_v57  ;;  %v9242_v17 = vld [vmem:[#allocation97_spill] sm:$0xff]  ;;  %v9243_v57 = vld [vmem:[#allocation39_spill] sm:$0xff] }
 0x888   :  { %6148 = vmatpush1.bf16.msra.mxu0 %v9233_v63  ;;  %6212 = vmatpush1.bf16.msra.mxu1 %v9234_v3  ;;  %v9244_v63 = vld [vmem:[#allocation99_spill] sm:$0xff]  ;;  %v9245_v3 = vld [vmem:[#allocation40_spill] sm:$0xff] }
 0x889   :  { %6150 = vmatprep.subr.bf16.mxu0 %v9235_v25  ;;  %6214 = vmatprep.subr.bf16.mxu1 %v9236_v43  ;;  %v9246_v25 = vld [vmem:[#allocation101_spill] sm:$0xff] }
 0x88a   :  { %v9247_v43 = vld [vmem:[#allocation41_spill] sm:$0xff] }
 0x88c   :  { %6152 = vmatpush1.bf16.msra.mxu0 %v9237_v44  ;;  %6216 = vmatpush1.bf16.msra.mxu1 %v9238_v47  ;;  %v9248_v44 = vld [vmem:[#allocation103_spill] sm:$0xff]  ;;  %v9249_v47 = vld [vmem:[#allocation42_spill] sm:$0xff] }
 0x88d   :  { %6154 = vmatprep.subr.bf16.mxu0 %v9239_v60  ;;  %6218 = vmatprep.subr.bf16.mxu1 %v9240_v26  ;;  %v9250_v60 = vld [vmem:[#allocation105_spill] sm:$0xff]  ;;  %v9251_v26 = vld [vmem:[#allocation44_spill] sm:$0xff] }
 0x890   :  { %6156 = vmatpush1.bf16.msra.mxu0 %v9241_v29  ;;  %6220 = vmatpush1.bf16.msra.mxu1 %v9242_v17  ;;  %v9252_v29 = vld [vmem:[#allocation107_spill] sm:$0xff] }
 0x891   :  { %6158 = vmatprep.subr.bf16.mxu0 %v9243_v57  ;;  %6222 = vmatprep.subr.bf16.mxu1 %v9244_v63 }
 0x894   :  { %6160 = vmatpush1.bf16.msra.mxu0 %v9245_v3  ;;  %6224 = vmatpush1.bf16.msra.mxu1 %v9246_v25  ;;  %v3052_v3 = vld [vmem:[#allocation2 + $0x50] sm:$0x30] }
 0x895   :  { %6162 = vmatprep.subr.bf16.mxu0 %v9247_v43  ;;  %6226 = vmatprep.subr.bf16.mxu1 %v9248_v44 }
 0x898   :  { %6164 = vmatpush1.bf16.msra.mxu0 %v9249_v47  ;;  %6228 = vmatpush1.bf16.msra.mxu1 %v9250_v60 }
 0x899   :  { %6230 = vmatprep.subr.bf16.mxu0 %v9251_v26  ;;  %6294 = vmatprep.subr.bf16.mxu1 %v9252_v29  ;;  %v3420_v29 = vrot.slane %v8020_v53, 6 }
 0x8ee   :  { %v3130_v17 = vpop.f32.mrb[28].mxu0  ;;  %v3201_v57 = vpop.f32.mrb[36].mxu1 }
 0x8ef   :  { %v3358_v21 = vrot.slane %v3201_v57, 4  ;;  %v3132_v63 = vpop.f32.mrb[29].mxu0  ;;  %v3203_v9 = vpop.f32.mrb[37].mxu1 }
 0x8f0   :  { %v3359_v36 = vrot.slane %v3203_v9, 4 }
 0x8f1   :  { %v3374_v25 = vadd.f32 %v3358_v21, %v3052_v3  ;;  %v3356_v3 = vrot.slane %v3130_v17, 4  ;;  %v3054_v17 = vld [vmem:[#allocation2 + $0x60] sm:$0x30] }
 0x8f2   :  { %v3375_v43 = vadd.f32 %v3359_v36, %v3053_v8  ;;  %v3357_v8 = vrot.slane %v3132_v63, 4  ;;  %v3050_v36 = vld [vmem:[#allocation2 + $0x40] sm:$0x30]  ;;  %v3056_v63 = vld [vmem:[#allocation2 + $0x70] sm:$0x30] }
 0x8f3   :  { %v4064_v5 = vmul.f32 -1.442695, %v3374_v25  ;;  %v3372_v25 = vadd.f32 %v3356_v3, %v3050_v36 }
 0x8f4   :  { %v4065_v44 = vmul.f32 -1.442695, %v3375_v43 }
 0x8f5   :  { %6620 = vpow2.f32 %v4064_v5  ;;  %v3051_v5 = vld [vmem:[#allocation2 + $0x48] sm:$0x30] }
 0x8f6   :  { %6622 = vpow2.f32 %v4065_v44  ;;  %v3373_v43 = vadd.f32 %v3357_v8, %v3051_v5  ;;  %v4062_v44 = vmul.f32 -1.442695, %v3372_v25  ;;  %v3055_v25 = vld [vmem:[#allocation2 + $0x68] sm:$0x30]  ;;  %v3057_v5 = vld [vmem:[#allocation2 + $0x78] sm:$0x30] }
 0x8ff   :  { %v6621_v47 = vpop.eup %6620 }
 0x900   :  { %v3400_v60 = vadd.f32 1.0, %v6621_v47  ;;  %v6623_v18 = vpop.eup %6622  ;;  %v4063_v47 = vmul.f32 -1.442695, %v3373_v43 }
 0x901   :  { %v3401_v26 = vadd.f32 1.0, %v6623_v18 }
 0x902   :  { %6624 = vrcp.f32 %v3400_v60 }
 0x903   :  { %6626 = vrcp.f32 %v3401_v26 }
 0x904   :  { %6628 = vpow2.f32 %v4062_v44 }
 0x905   :  { %6630 = vpow2.f32 %v4063_v47 }
 0x90c   :  { %v6625_v57 = vpop.eup %6624 }
 0x90d   :  { %v3424_v41 = vmul.f32 %v6625_v57, %v3420_v29  ;;  %v6627_v9 = vpop.eup %6626 }
 0x90e   :  { %v3425_v21 = vmul.f32 %v6627_v9, %v3421_v6  ;;  %v6629_v18 = vpop.eup %6628 }
 0x90f   :  { %v6631_v60 = vpop.eup %6630  ;;  %v3398_v26 = vadd.f32 1.0, %v6629_v18 }
 0x910   :  { %v3399_v53 = vadd.f32 1.0, %v6631_v60 }
 0x911   :  { %6632 = vrcp.f32 %v3398_v26 }
 0x912   :  { %6634 = vrcp.f32 %v3399_v53 }
 0x92e   :  { %v3272_v51 = vpop.f32.mrb[30].mxu0  ;;  %v3343_v2 = vpop.f32.mrb[38].mxu1 }
 0x92f   :  { %v3360_v38 = vrot.slane %v3272_v51, 4  ;;  %v3362_v29 = vrot.slane %v3343_v2, 4  ;;  %v3274_v57 = vpop.f32.mrb[31].mxu0  ;;  %v3345_v6 = vpop.f32.mrb[39].mxu1 }
 0x930   :  { %v3361_v9 = vrot.slane %v3274_v57, 4  ;;  %v3363_v3 = vrot.slane %v3345_v6, 4  ;;  %v6633_v2 = vpop.eup %6632 }
 0x931   :  { %v3376_v8 = vadd.f32 %v3360_v38, %v3054_v17  ;;  %v3378_v36 = vadd.f32 %v3362_v29, %v3056_v63  ;;  %v6635_v51 = vpop.eup %6634 }
 0x932   :  { %v3377_v43 = vadd.f32 %v3361_v9, %v3055_v25  ;;  %v3379_v44 = vadd.f32 %v3363_v3, %v3057_v5 }
 0x933   :  { %v4066_v47 = vmul.f32 -1.442695, %v3376_v8  ;;  %6636 = vtanh.f32 %v3378_v36 }
 0x934   :  { %v4067_v18 = vmul.f32 -1.442695, %v3377_v43  ;;  %6638 = vtanh.f32 %v3379_v44  ;;  %v3855_v43 = vld [vmem:[%s8352_s5 + $0x68] sm:$0xff] }
 0x935   :  { %6640 = vpow2.f32 %v4066_v47  ;;  %v3856_v47 = vld [vmem:[%s8352_s5 + $0x70] sm:$0xff] }
 0x936   :  { %6642 = vpow2.f32 %v4067_v18  ;;  %v3857_v18 = vld [vmem:[%s8352_s5 + $0x78] sm:$0xff] }
 0x93d   :  { %v6637_v60 = vpop.eup %6636 }
 0x93e   :  { %v6639_v49 = vpop.eup %6638  ;;  %v3426_v57 = vmul.f32 %v6637_v60, %v6633_v2  ;;  %v6385_v2 = vpack.c.bf16 %v3857_v18, %v3856_v47  ;;  %v3825_v60 = vld [vmem:[%s8351_s4 + $0x8] sm:$0xff] }
 0x93f   :  { %v6641_v6 = vpop.eup %6640  ;;  %v3427_v26 = vmul.f32 %v6639_v49, %v6635_v51  ;;  %v3824_v51 = vld [vmem:[%s8351_s4] sm:$0xff] }
 0x940   :  { %v6643_v38 = vpop.eup %6642  ;;  %v3402_v29 = vadd.f32 1.0, %v6641_v6  ;;  %v8162_v17 = vadd.f32 %v3426_v57, %v3424_v41  ;;  %v8290_v57 = vpack.c.bf16 %v3825_v60, %v3824_v51 }
 0x941   :  { %v3403_v53 = vadd.f32 1.0, %v6643_v38  ;;  %v8164_v63 = vadd.f32 %v3427_v26, %v3425_v21  ;;  %v3854_v21 = vld [vmem:[%s8352_s5 + $0x60] sm:$0xff] }
 0x942   :  { %6644 = vrcp.f32 %v3402_v29  ;;  %v6381_v44 = vpack.c.bf16 %v3855_v43, %v3854_v21 }
 0x943   :  { %6646 = vtanh.f32 %v8162_v17 }
 0x944   :  { %6648 = vrcp.f32 %v3403_v53 }
 0x945   :  { %6650 = vtanh.f32 %v8164_v63 }
 0x94c   :  { %v6645_v9 = vpop.eup %6644 }
 0x94d   :  { %v6647_v3 = vpop.eup %6646 }
 0x94e   :  { %v6649_v8 = vpop.eup %6648  ;;  %v3432_v36 = vmul.f32 %v6647_v3, %v6645_v9  ;;  %v3438_v9 = vld [vmem:[#allocation2 + $0x50] sm:$0xc0] }
 0x94f   :  { %v6651_v25 = vpop.eup %6650 }
 0x950   :  { %v3433_v5 = vmul.f32 %v6651_v25, %v6649_v8  ;;  %3434 = vst [vmem:[#allocation3 + $0x8] sm:$0x30] %v3432_v36  ;;  %v8168_v41 = vrot.slane %v3432_v36, 4  ;;  %v3439_v36 = vld [vmem:[#allocation2 + $0x58] sm:$0xc0] }
 0x952   :  { %3435 = vst [vmem:[#allocation4 - $0x2] sm:$0x30] %v3433_v5  ;;  %v3447_v49 = vrot.slane %v3433_v5, 4 }
 0x954   :  { %3514 = vmatprep.mubr.f32.mxu0 %v3447_v49  ;;  %3585 = vmatprep.mubr.f32.mxu1 %v3447_v49 }
 0x955   :  { %3515 = vmatmul.mubr.f32.vlgmr.msra.gmra.mrb[32].mxu0 %v8168_v41  ;;  %3586 = vmatmul.mubr.f32.vlgmr.msra.gmra.mrb[40].mxu1 %v8168_v41 }
 0x956   :  { %6232 = vmatpush1.bf16.msra.mxu0 %v8727_v39  ;;  %6296 = vmatpush1.bf16.msra.mxu1 %v7120_v45  ;;  %v9258_v45 = vld [vmem:[#allocation116_spill] sm:$0xff] }
 0x957   :  { %3656 = vmatprep.mubr.f32.mxu0 %v3447_v49  ;;  %3727 = vmatprep.mubr.f32.mxu1 %v3447_v49  ;;  %v9267_v39 = vld [vmem:[#allocation100_spill] sm:$0xff] }
 0x958   :  { %6234 = vmatprep.subr.bf16.mxu0 %v8728_v30  ;;  %6298 = vmatprep.subr.bf16.mxu1 %v7124_v61  ;;  %v9259_v61 = vld [vmem:[#allocation92_spill] sm:$0xff]  ;;  %v9268_v30 = vld [vmem:[#allocation121_spill] sm:$0xff] }
 0x95a   :  { %6236 = vmatpush1.bf16.msra.mxu0 %v8729_v10  ;;  %6300 = vmatpush1.bf16.msra.mxu1 %v7130_v35  ;;  %v9260_v35 = vld [vmem:[#allocation117_spill] sm:$0xff]  ;;  %v9269_v10 = vld [vmem:[#allocation102_spill] sm:$0xff] }
 0x95b   :  { %6238 = vmatprep.subr.bf16.mxu0 %v8730_v52  ;;  %6302 = vmatprep.subr.bf16.mxu1 %v7133_v22  ;;  %v9261_v22 = vld [vmem:[#allocation94_spill] sm:$0xff] }
 0x95c   :  { %v9270_v52 = vld [vmem:[#allocation122_spill] sm:$0xff] }
 0x95e   :  { %6240 = vmatpush1.bf16.msra.mxu0 %v8731_v48  ;;  %6304 = vmatpush1.bf16.msra.mxu1 %v7139_v42  ;;  %v9253_v42 = vld [vmem:[#allocation86_spill] sm:$0xff]  ;;  %v9271_v48 = vld [vmem:[#allocation104_spill] sm:$0xff] }
 0x95f   :  { %6242 = vmatprep.subr.bf16.mxu0 %v8732_v20  ;;  %6306 = vmatprep.subr.bf16.mxu1 %v7142_v15  ;;  %v9262_v15 = vld [vmem:[#allocation118_spill] sm:$0xff]  ;;  %v9272_v20 = vld [vmem:[#allocation123_spill] sm:$0xff] }
 0x962   :  { %6244 = vmatpush1.bf16.msra.mxu0 %v8733_v14  ;;  %6308 = vmatpush1.bf16.msra.mxu1 %v7147_v50  ;;  %v9254_v50 = vld [vmem:[#allocation114_spill] sm:$0xff] }
 0x963   :  { %6246 = vmatprep.subr.bf16.mxu0 %v8734_v31  ;;  %6310 = vmatprep.subr.bf16.mxu1 %v7150_v37  ;;  %v9263_v37 = vld [vmem:[#allocation96_spill] sm:$0xff]  ;;  %v9273_v14 = vld [vmem:[#allocation106_spill] sm:$0xff] }
 0x964   :  { %v9274_v31 = vld [vmem:[#allocation124_spill] sm:$0xff] }
 0x966   :  { %6248 = vmatpush1.bf16.msra.mxu0 %v8735_v40  ;;  %6312 = vmatpush1.bf16.msra.mxu1 %v7155_v62  ;;  %v9255_v62 = vld [vmem:[#allocation88_spill] sm:$0xff]  ;;  %v3842_v40 = vld [vmem:[%s8352_s5] sm:$0xff] }
 0x967   :  { %6250 = vmatprep.subr.bf16.mxu0 %v8736_v13  ;;  %6314 = vmatprep.subr.bf16.mxu1 %v7158_v7  ;;  %v9264_v7 = vld [vmem:[#allocation119_spill] sm:$0xff]  ;;  %v3843_v13 = vld [vmem:[%s8352_s5 + $0x8] sm:$0xff] }
 0x96a   :  { %6252 = vmatpush1.bf16.msra.mxu0 %v8737_v34  ;;  %6316 = vmatpush1.bf16.msra.mxu1 %v7163_v12  ;;  %v9256_v12 = vld [vmem:[#allocation115_spill] sm:$0xff]  ;;  %v6357_v34 = vpack.c.bf16 %v3843_v13, %v3842_v40 }
 0x96b   :  { %6254 = vmatprep.subr.bf16.mxu0 %v8738_v46  ;;  %6318 = vmatprep.subr.bf16.mxu1 %v7166_v55  ;;  %v9265_v55 = vld [vmem:[#allocation98_spill] sm:$0xff]  ;;  %v3844_v46 = vld [vmem:[%s8352_s5 + $0x10] sm:$0xff] }
 0x96e   :  { %6256 = vmatpush1.bf16.msra.mxu0 %v8739_v58  ;;  %6320 = vmatpush1.bf16.msra.mxu1 %v7171_v24  ;;  %v9257_v24 = vld [vmem:[#allocation90_spill] sm:$0xff] }
 0x96f   :  { %6258 = vmatprep.subr.bf16.mxu0 %v8740_v16  ;;  %6322 = vmatprep.subr.bf16.mxu1 %v7174_v4  ;;  %v9266_v4 = vld [vmem:[#allocation120_spill] sm:$0xff]  ;;  %v3845_v58 = vld [vmem:[%s8352_s5 + $0x18] sm:$0xff] }
 0x970   :  { %v6361_v16 = vpack.c.bf16 %v3845_v58, %v3844_v46  ;;  %v3440_v46 = vld [vmem:[#allocation2 + $0x60] sm:$0xc0]  ;;  %v3442_v58 = vld [vmem:[#allocation2 + $0x70] sm:$0xc0] }
 0x972   :  { %6260 = vmatpush1.bf16.msra.mxu0 %v8741_v1  ;;  %6324 = vmatpush1.bf16.msra.mxu1 %v8814_v23  ;;  %v3846_v1 = vld [vmem:[%s8352_s5 + $0x20] sm:$0xff] }
 0x973   :  { %6262 = vmatprep.subr.bf16.mxu0 %v8742_v59  ;;  %6326 = vmatprep.subr.bf16.mxu1 %v8815_v56  ;;  %v3847_v59 = vld [vmem:[%s8352_s5 + $0x28] sm:$0xff]  ;;  %v3850_v23 = vld [vmem:[%s8352_s5 + $0x40] sm:$0xff] }
 0x974   :  { %v3851_v56 = vld [vmem:[%s8352_s5 + $0x48] sm:$0xff] }
 0x976   :  { %6264 = vmatpush1.bf16.msra.mxu0 %v8743_v19  ;;  %6328 = vmatpush1.bf16.msra.mxu1 %v8816_v11  ;;  %v6365_v19 = vpack.c.bf16 %v3847_v59, %v3846_v1  ;;  %v6373_v11 = vpack.c.bf16 %v3851_v56, %v3850_v23 }
 0x977   :  { %6266 = vmatprep.subr.bf16.mxu0 %v8744_v54  ;;  %6330 = vmatprep.subr.bf16.mxu1 %v8817_v27  ;;  %v3848_v54 = vld [vmem:[%s8352_s5 + $0x30] sm:$0xff] }
 0x978   :  { %v3852_v27 = vld [vmem:[%s8352_s5 + $0x50] sm:$0xff] }
 0x97a   :  { %6268 = vmatpush1.bf16.msra.mxu0 %v8745_v0  ;;  %6332 = vmatpush1.bf16.msra.mxu1 %v8818_v32  ;;  %v3849_v0 = vld [vmem:[%s8352_s5 + $0x38] sm:$0xff] }
 0x97b   :  { %6270 = vmatprep.subr.bf16.mxu0 %v8746_v28  ;;  %6334 = vmatprep.subr.bf16.mxu1 %v8819_v33  ;;  %v6369_v28 = vpack.c.bf16 %v3849_v0, %v3848_v54  ;;  %v3853_v32 = vld [vmem:[%s8352_s5 + $0x58] sm:$0xff]  ;;  %v3441_v54 = vld [vmem:[#allocation2 + $0x68] sm:$0xc0] }
 0x97c   :  { %v6377_v33 = vpack.c.bf16 %v3853_v32, %v3852_v27  ;;  %v3443_v0 = vld [vmem:[#allocation2 + $0x78] sm:$0xc0] }
 0x97e   :  { %6272 = vmatpush1.bf16.msra.mxu0 %v9253_v42  ;;  %6336 = vmatpush1.bf16.msra.mxu1 %v9254_v50 }
 0x97f   :  { %6274 = vmatprep.subr.bf16.mxu0 %v9255_v62  ;;  %6338 = vmatprep.subr.bf16.mxu1 %v9256_v12  ;;  %v3806_v12 = vrot.slane %v8162_v17, 6 }
 0x982   :  { %6276 = vmatpush1.bf16.msra.mxu0 %v9257_v24  ;;  %6340 = vmatpush1.bf16.msra.mxu1 %v9258_v45  ;;  %v3807_v45 = vrot.slane %v8164_v63, 6 }
 0x983   :  { %6278 = vmatprep.subr.bf16.mxu0 %v9259_v61  ;;  %6342 = vmatprep.subr.bf16.mxu1 %v9260_v35 }
 0x986   :  { %6280 = vmatpush1.bf16.msra.mxu0 %v9261_v22  ;;  %6344 = vmatpush1.bf16.msra.mxu1 %v9262_v15 }
 0x987   :  { %6282 = vmatprep.subr.bf16.mxu0 %v9263_v37  ;;  %6346 = vmatprep.subr.bf16.mxu1 %v9264_v7  ;;  %v3436_v7 = vld [vmem:[#allocation2 + $0x40] sm:$0xc0] }
 0x98a   :  { %6284 = vmatpush1.bf16.msra.mxu0 %v9265_v55  ;;  %6348 = vmatpush1.bf16.msra.mxu1 %v9266_v4  ;;  %v3437_v4 = vld [vmem:[#allocation2 + $0x48] sm:$0xc0] }
 0x98b   :  { %6286 = vmatprep.subr.bf16.mxu0 %v9267_v39  ;;  %6350 = vmatprep.subr.bf16.mxu1 %v9268_v30 }
 0x98e   :  { %6288 = vmatpush1.bf16.msra.mxu0 %v9269_v10  ;;  %6352 = vmatpush1.bf16.msra.mxu1 %v9270_v52 }
 0x98f   :  { %6290 = vmatprep.subr.bf16.mxu0 %v9271_v48  ;;  %6354 = vmatprep.subr.bf16.mxu1 %v9272_v20 }
 0x992   :  { %6292 = vmatpush1.bf16.msra.mxu0 %v9273_v14  ;;  %6356 = vmatpush1.bf16.msra.mxu1 %v9274_v31 }
 0x993   :  { %6358 = vmatprep.subr.bf16.mxu0 %v6357_v34 }
 0x995   :  { %3657 = vmatmul.mubr.f32.vlgmr.msra.gmra.mrb[34].mxu0 %v8168_v41  ;;  %3728 = vmatmul.mubr.f32.vlgmr.msra.gmra.mrb[42].mxu1 %v8168_v41 }
 0x996   :  { %6360 = vmatpush3.bf16.msra.mxu0 %v6357_v34 }
 0x997   :  { %6362 = vmatprep.subr.bf16.mxu0 %v6361_v16 }
 0x99a   :  { %6364 = vmatpush3.bf16.msra.mxu0 %v6361_v16 }
 0x99b   :  { %6366 = vmatprep.subr.bf16.mxu0 %v6365_v19 }
 0x99e   :  { %6368 = vmatpush3.bf16.msra.mxu0 %v6365_v19 }
 0x99f   :  { %6370 = vmatprep.subr.bf16.mxu0 %v6369_v28 }
 0x9a2   :  { %6372 = vmatpush3.bf16.msra.mxu0 %v6369_v28 }
 0x9a3   :  { %6374 = vmatprep.subr.bf16.mxu0 %v6373_v11 }
 0x9a6   :  { %6376 = vmatpush3.bf16.msra.mxu0 %v6373_v11 }
 0x9a7   :  { %6378 = vmatprep.subr.bf16.mxu0 %v6377_v33 }
 0x9aa   :  { %6380 = vmatpush3.bf16.msra.mxu0 %v6377_v33 }
 0x9ab   :  { %6382 = vmatprep.subr.bf16.mxu0 %v6381_v44 }
 0x9ae   :  { %6384 = vmatpush3.bf16.msra.mxu0 %v6381_v44 }
 0x9af   :  { %6386 = vmatprep.subr.bf16.mxu0 %v6385_v2 }
 0x9b2   :  { %6388 = vmatpush3.bf16.msra.mxu0 %v6385_v2 }
 0x9b3   :  { %6390 = vmatprep.subr.bf16.mxu0 %v8290_v57 }
 0xa28   :  { %v3516_v6 = vpop.f32.mrb[32].mxu0  ;;  %v3587_v26 = vpop.f32.mrb[40].mxu1 }
 0xa29   :  { %v3744_v38 = vrot.slane %v3587_v26, 2  ;;  %v3518_v29 = vpop.f32.mrb[33].mxu0  ;;  %v3589_v53 = vpop.f32.mrb[41].mxu1  ;;  %v3742_v15 = vrot.slane %v3516_v6, 2 }
 0xa2a   :  { %v3745_v3 = vrot.slane %v3589_v53, 2  ;;  %v3743_v37 = vrot.slane %v3518_v29, 2 }
 0xa2b   :  { %v3760_v8 = vadd.f32 %v3744_v38, %v3438_v9  ;;  %v3758_v55 = vadd.f32 %v3742_v15, %v3436_v7  ;;  %v3835_v15 = vld [vmem:[%s8351_s4 + $0x58] sm:$0xff]  ;;  %v3836_v7 = vld [vmem:[%s8351_s4 + $0x60] sm:$0xff] }
 0xa2c   :  { %v3761_v25 = vadd.f32 %v3745_v3, %v3439_v36  ;;  %v3759_v39 = vadd.f32 %v3743_v37, %v3437_v4  ;;  %v3827_v36 = vld [vmem:[%s8351_s4 + $0x18] sm:$0xff] }
 0xa2d   :  { %v4070_v5 = vmul.f32 -1.442695, %v3760_v8  ;;  %v4068_v30 = vmul.f32 -1.442695, %v3758_v55  ;;  %v3826_v8 = vld [vmem:[%s8351_s4 + $0x10] sm:$0xff]  ;;  %v3837_v55 = vld [vmem:[%s8351_s4 + $0x68] sm:$0xff] }
 0xa2e   :  { %v4071_v49 = vmul.f32 -1.442695, %v3761_v25  ;;  %v4069_v10 = vmul.f32 -1.442695, %v3759_v39  ;;  %v6413_v4 = vpack.c.bf16 %v3837_v55, %v3836_v7  ;;  %v3838_v39 = vld [vmem:[%s8351_s4 + $0x70] sm:$0xff] }
 0xa2f   :  { %6652 = vpow2.f32 %v4070_v5  ;;  %v6393_v5 = vpack.c.bf16 %v3827_v36, %v3826_v8 }
 0xa30   :  { %6654 = vpow2.f32 %v4071_v49  ;;  %v3841_v49 = vld [vmem:[#allocation4 + $0x8] sm:$0xff] }
 0xa39   :  { %v6653_v41 = vpop.eup %6652 }
 0xa3a   :  { %v3786_v42 = vadd.f32 1.0, %v6653_v41  ;;  %v6655_v50 = vpop.eup %6654  ;;  %v3828_v41 = vld [vmem:[%s8351_s4 + $0x20] sm:$0xff] }
 0xa3b   :  { %v3787_v62 = vadd.f32 1.0, %v6655_v50  ;;  %v3822_v50 = vld [vmem:[#allocation3] sm:$0xff] }
 0xa3c   :  { %6656 = vrcp.f32 %v3786_v42  ;;  %v3829_v42 = vld [vmem:[%s8351_s4 + $0x28] sm:$0xff] }
 0xa3d   :  { %6658 = vrcp.f32 %v3787_v62  ;;  %v6397_v62 = vpack.c.bf16 %v3829_v42, %v3828_v41 }
 0xa3e   :  { %6660 = vpow2.f32 %v4068_v30  ;;  %v3839_v30 = vld [vmem:[%s8351_s4 + $0x78] sm:$0xff] }
 0xa3f   :  { %6662 = vpow2.f32 %v4069_v10  ;;  %v6417_v10 = vpack.c.bf16 %v3839_v30, %v3838_v39 }
 0xa46   :  { %v6657_v24 = vpop.eup %6656 }
 0xa47   :  { %v3810_v61 = vmul.f32 %v6657_v24, %v3806_v12  ;;  %v6659_v35 = vpop.eup %6658  ;;  %v3830_v12 = vld [vmem:[%s8351_s4 + $0x30] sm:$0xff]  ;;  %v3831_v24 = vld [vmem:[%s8351_s4 + $0x38] sm:$0xff] }
 0xa48   :  { %v3811_v22 = vmul.f32 %v6659_v35, %v3807_v45  ;;  %v6661_v52 = vpop.eup %6660  ;;  %v6401_v45 = vpack.c.bf16 %v3831_v24, %v3830_v12 }
 0xa49   :  { %v6663_v48 = vpop.eup %6662  ;;  %v3784_v20 = vadd.f32 1.0, %v6661_v52 }
 0xa4a   :  { %v3785_v17 = vadd.f32 1.0, %v6663_v48  ;;  %v4074_v48 = vld [vmem:[%s8353_s6] ss:$0 sm:$0xff] }
 0xa4b   :  { %6664 = vrcp.f32 %v3784_v20 }
 0xa4c   :  { %6666 = vrcp.f32 %v3785_v17 }
 0xa55   :  { %v6665_v27 = vpop.eup %6664 }
 0xa56   :  { %v6667_v32 = vpop.eup %6666 }
 0xa68   :  { %v3658_v14 = vpop.f32.mrb[34].mxu0  ;;  %v3729_v31 = vpop.f32.mrb[42].mxu1 }
 0xa69   :  { %v3746_v63 = vrot.slane %v3658_v14, 2  ;;  %v3748_v40 = vrot.slane %v3729_v31, 2  ;;  %v3660_v13 = vpop.f32.mrb[35].mxu0  ;;  %v3731_v34 = vpop.f32.mrb[43].mxu1 }
 0xa6a   :  { %v3747_v16 = vrot.slane %v3660_v13, 2  ;;  %v3749_v1 = vrot.slane %v3731_v34, 2 }
 0xa6b   :  { %v3762_v59 = vadd.f32 %v3746_v63, %v3440_v46  ;;  %v3764_v19 = vadd.f32 %v3748_v40, %v3442_v58 }
 0xa6c   :  { %v3763_v28 = vadd.f32 %v3747_v16, %v3441_v54  ;;  %v3765_v23 = vadd.f32 %v3749_v1, %v3443_v0 }
 0xa6d   :  { %v4072_v56 = vmul.f32 -1.442695, %v3762_v59  ;;  %6668 = vtanh.f32 %v3764_v19 }
 0xa6e   :  { %v4073_v11 = vmul.f32 -1.442695, %v3763_v28  ;;  %6670 = vtanh.f32 %v3765_v23 }
 0xa6f   :  { %6672 = vpow2.f32 %v4072_v56 }
 0xa70   :  { %6674 = vpow2.f32 %v4073_v11 }
 0xa77   :  { %v6669_v33 = vpop.eup %6668 }
 0xa78   :  { %v6671_v21 = vpop.eup %6670  ;;  %v3812_v43 = vmul.f32 %v6669_v33, %v6665_v27 }
 0xa79   :  { %v6673_v44 = vpop.eup %6672  ;;  %v3813_v47 = vmul.f32 %v6671_v21, %v6667_v32 }
 0xa7a   :  { %v6675_v18 = vpop.eup %6674  ;;  %v3788_v2 = vadd.f32 1.0, %v6673_v44  ;;  %v3814_v51 = vadd.f32 %v3812_v43, %v3810_v61  ;;  %v3832_v61 = vld [vmem:[%s8351_s4 + $0x40] sm:$0xff] }
 0xa7b   :  { %v3789_v60 = vadd.f32 1.0, %v6675_v18  ;;  %v3815_v6 = vadd.f32 %v3813_v47, %v3811_v22  ;;  %v3834_v22 = vld [vmem:[%s8351_s4 + $0x50] sm:$0xff] }
 0xa7c   :  { %6676 = vrcp.f32 %v3788_v2  ;;  %v6409_v37 = vpack.c.bf16 %v3835_v15, %v3834_v22 }
 0xa7d   :  { %6678 = vtanh.f32 %v3814_v51 }
 0xa7e   :  { %6680 = vrcp.f32 %v3789_v60 }
 0xa7f   :  { %6682 = vtanh.f32 %v3815_v6 }
 0xa86   :  { %v6677_v26 = vpop.eup %6676 }
 0xa87   :  { %v6679_v38 = vpop.eup %6678 }
 0xa88   :  { %v6681_v29 = vpop.eup %6680  ;;  %v3818_v53 = vmul.f32 %v6679_v38, %v6677_v26 }
 0xa89   :  { %v6683_v9 = vpop.eup %6682 }
 0xa8a   :  { %3820 = vst [vmem:[#allocation3 + $0x8] sm:$0xc0] %v3818_v53  ;;  %v3819_v3 = vmul.f32 %v6683_v9, %v6681_v29 }
 0xa8c   :  { %3821 = vst [vmem:[#allocation4 - $0x6] sm:$0xc0] %v3819_v3 }
 0xa91   :  { %v3823_v52 = vld [vmem:[#allocation3 + $0x8] sm:$0xff] }
 0xa93   :  { %v3840_v25 = vld [vmem:[#allocation4] sm:$0xff] }
 0xa94   :  { %4143 = vmatprep.mubr.f32.mxu0 %v3840_v25 }
 0xa95   :  { %4144 = vmatmul.mubr.f32.vlgmr.msra.gmra.mrb[36].mxu0 %v3841_v49 }
 0xa96   :  { %6392 = vmatpush3.bf16.msra.mxu0 %v8290_v57  ;;  %4178 = vmatprep.mubr.f32.mxu0 %v3822_v50  ;;  %v3833_v57 = vld [vmem:[%s8351_s4 + $0x48] sm:$0xff] }
 0xa97   :  { %6394 = vmatprep.subr.bf16.mxu0 %v6393_v5  ;;  %v6405_v35 = vpack.c.bf16 %v3833_v57, %v3832_v61 }
 0xa9a   :  { %6396 = vmatpush3.bf16.msra.mxu0 %v6393_v5 }
 0xa9b   :  { %6398 = vmatprep.subr.bf16.mxu0 %v6397_v62 }
 0xa9e   :  { %6400 = vmatpush3.bf16.msra.mxu0 %v6397_v62 }
 0xa9f   :  { %6402 = vmatprep.subr.bf16.mxu0 %v6401_v45 }
 0xaa2   :  { %6404 = vmatpush3.bf16.msra.mxu0 %v6401_v45 }
 0xaa3   :  { %6406 = vmatprep.subr.bf16.mxu0 %v6405_v35 }
 0xaa6   :  { %6408 = vmatpush3.bf16.msra.mxu0 %v6405_v35 }
 0xaa7   :  { %6410 = vmatprep.subr.bf16.mxu0 %v6409_v37 }
 0xaaa   :  { %6412 = vmatpush3.bf16.msra.mxu0 %v6409_v37 }
 0xaab   :  { %6414 = vmatprep.subr.bf16.mxu0 %v6413_v4 }
 0xaae   :  { %6416 = vmatpush3.bf16.msra.mxu0 %v6413_v4 }
 0xaaf   :  { %6418 = vmatprep.subr.bf16.mxu0 %v6417_v10 }
 0xab2   :  { %6420 = vmatpush3.bf16.msra.mxu0 %v6417_v10 }
 0xab5   :  { %4179 = vmatmul.mubr.f32.vlgmr.msra.gmra.mrb[36].mxu0 %v3823_v52 }
 0xb88   :  { %v4180_v20 = vpop.f32.mrb[36].mxu0 }
 0xb89   :  { %v4016_v17 = vadd.f32 %v4180_v20, %v4074_v48  ;;  %v3999_v14 = vpop.f32.mrb[37].mxu0 }
 0xb8a   :  { %v4015_v31 = vadd.f32 %v4074_v48, %v3999_v14 }
 0xb8b   :  { %4019 = vst.msk [vmem:[%s8354_s7 + $0x8] sm:$0xff] %vm4017_vm0, %v4016_v17 }
 0xb8c   :  { %4018 = vst.msk [vmem:[%s8354_s7] sm:$0xff] %vm4017_vm0, %v4015_v31 }
 0xb8d   :  { %4024 = vsyncpa [#allocation6], 1 }
 0xb8e   :  { %4025 = vsyncpa [#allocation8], 1 }

</bundles_post_ra>
